<compile_context>
chip_gen: v7x
topology: tpu7x:2x2x1
jax: 0.10.0
libtpu: 0.0.40
codegen_flags: <defaults>
</compile_context>

<pallas_src>
import math

import jax
import jax.numpy as jnp
from jax.experimental import pallas as pl
from jax.experimental.pallas import tpu as pltpu


# --------------------------------------------------------------------------------------
# Kernel
# --------------------------------------------------------------------------------------
def _resblock_kernel(top_ref, body_ref, bot_ref, w1_ref, b1_ref, w2_ref, b2_ref,
                     out_ref, xrows_ref, mid_ref, patch_ref):
    # top_ref  : (1, 2, W, C)   rows [R0-2, R0-1]  (clamped at border -> gated to 0 here)
    # body_ref : (1, TH, W, C)  rows [R0, R0+TH)
    # bot_ref  : (1, 2, W, C)   rows [R0+TH, R0+TH+1] (clamped at border -> gated to 0)
    # w*_ref   : (9*C, C) bf16 im2col weights ; b*_ref : (1, C) f32
    # out_ref  : (1, TH, W, C)
    # xrows_ref: VMEM (TH+4, W+2, C) bf16  padded input slab (body + row halos)
    # mid_ref  : VMEM (TH+2, W+2, C) bf16  padded conv1(ReLU) output slab
    # patch_ref: VMEM (TH+2, W, 9*C) bf16  im2col staging buffer
    TH = body_ref.shape[1]
    W = body_ref.shape[2]
    C = body_ref.shape[3]
    Wp = W + 2
    bf16 = jnp.bfloat16
    f32 = jnp.float32

    t = pl.program_id(1)
    num_t = pl.num_programs(1)

    # ---- zero the width-padding columns of the padded slabs (tiny stores) -----------
    xrows_ref[:, 0:1, :] = jnp.zeros((TH + 4, 1, C), bf16)
    xrows_ref[:, W + 1:W + 2, :] = jnp.zeros((TH + 4, 1, C), bf16)
    mid_ref[:, 0:1, :] = jnp.zeros((TH + 2, 1, C), bf16)
    mid_ref[:, W + 1:W + 2, :] = jnp.zeros((TH + 2, 1, C), bf16)

    # ---- assemble padded bf16 input slab: [2-row top halo | TH-row body | 2-row bot] -
    top = top_ref[0].astype(bf16)
    bot = bot_ref[0].astype(bf16)
    xrows_ref[0:2, 1:W + 1, :] = jnp.where(t > 0, top, jnp.zeros_like(top))
    xrows_ref[2:TH + 2, 1:W + 1, :] = body_ref[0].astype(bf16)
    xrows_ref[TH + 2:TH + 4, 1:W + 1, :] = jnp.where(t < num_t - 1, bot,
                                                     jnp.zeros_like(bot))

    def conv3x3(src_ref, rows_out, w_ref, b_ref):
        """3x3 conv, stride 1; padding already present in the width-padded src slab.

        src_ref : (rows_out + 2, W + 2, C) bf16 slab ref
        returns : (rows_out * W, C) f32 — a single K = 9*C bf16 MXU matmul + bias.
        """
        # im2col staging: every (dy, dx) window is a full-width contiguous bf16 copy
        # out of the padded slab (no masked edge stores, no zero-fills).
        for dy in range(3):
            for dx in range(3):
                k = dy * 3 + dx
                patch_ref[0:rows_out, :, k * C:(k + 1) * C] = (
                    src_ref[dy:dy + rows_out, dx:dx + W, :])
        patches = patch_ref[0:rows_out, :, :].reshape(rows_out * W, 9 * C)
        acc = jax.lax.dot_general(patches, w_ref[...], (((1,), (0,)), ((), ())),
                                  preferred_element_type=f32)
        return acc + b_ref[...]

    # ---- conv1 + bias + ReLU over TH+2 rows (incl. the +-1 row halo conv2 needs) -----
    mid = jnp.maximum(conv3x3(xrows_ref, TH + 2, w1_ref, b1_ref), 0.0)
    mid_ref[:, 1:W + 1, :] = mid.reshape(TH + 2, W, C).astype(bf16)

    # Intermediate rows outside the image are conv2 *zero padding*, not conv1 evaluated
    # off-image: zero them only on the two border tiles (cheap @pl.when row stores).
    @pl.when(t == 0)
    def _():
        mid_ref[0:1, :, :] = jnp.zeros((1, Wp, C), bf16)

    @pl.when(t == num_t - 1)
    def _():
        mid_ref[TH + 1:TH + 2, :, :] = jnp.zeros((1, Wp, C), bf16)

    # ---- conv2 + bias over TH rows, residual add (identity re-read), store -----------
    y = conv3x3(mid_ref, TH, w2_ref, b2_ref)                             # (TH*W, C) f32
    out_ref[0] = (body_ref[0].astype(f32) + y.reshape(TH, W, C)).astype(out_ref.dtype)


# --------------------------------------------------------------------------------------
# Tiling / VMEM sizing
# --------------------------------------------------------------------------------------
def _vmem_budget_bytes():
    """Detected VMEM capacity with headroom (v5e/v6e: 128 MiB, v7x: 64 MiB/TC)."""
    cap = 64 * 1024 * 1024
    try:
        info = pltpu.get_tpu_info()
        cap = int(getattr(info, "vmem_capacity_bytes", cap)) or cap
    except Exception:
        pass
    return (cap * 3) // 4


def _vmem_bytes_estimate(th, W, C, x_bytes=4):
    """Rough per-step VMEM footprint (double-buffered blocks + scratch slabs)."""
    wp = W + 2
    io_blocks = 2 * (th * W * C * x_bytes) * 2                 # body in + out
    halos = 2 * 2 * (2 * W * C * x_bytes)                      # top + bottom
    weights = 2 * (2 * 9 * C * C * 2 + 2 * C * 4)              # (9C,C) bf16 x2, biases
    scratch = ((th + 4) * wp * C + (th + 2) * wp * C) * 2      # bf16 input/mid slabs
    scratch += (th + 2) * W * 9 * C * 2                        # bf16 im2col scratch
    return io_blocks + halos + weights + scratch


def _pick_row_tile(N, H, W, C, budget):
    """Largest even divisor of H whose working set fits the VMEM budget.

    For N == 1 the tile is capped so the grid keeps >= 2 steps (both megacore TCs
    get work under "parallel" semantics)."""
    cands = sorted((th for th in range(2, H + 1, 2) if H % th == 0), reverse=True)
    if not cands:
        # TODO(synk): support odd / non-divisor H via pl.cdiv grid + masked last tile.
        raise ValueError("H must have an even divisor (row-halo blocking)")
    if N == 1:
        multi = [th for th in cands if (H // th) >= 2]
        if multi:
            cands = multi
    for th in cands:
        if _vmem_bytes_estimate(th, W, C) <= budget:
            return th
    return cands[-1]  # best effort for huge W*C


# --------------------------------------------------------------------------------------
# Wrappers
# --------------------------------------------------------------------------------------
def pack_resblock_params(w1, b1, w2, b2):
    """OIHW torch weights -> resident (9*C, C) bf16 im2col slabs + (1, C) f32 biases.

    Call once per block; reuse across many forward calls (hoisted repack)."""
    C = w1.shape[0]
    w1_mat = jnp.transpose(w1, (2, 3, 1, 0)).reshape(9 * C, C).astype(jnp.bfloat16)
    w2_mat = jnp.transpose(w2, (2, 3, 1, 0)).reshape(9 * C, C).astype(jnp.bfloat16)
    b1_2d = b1.reshape(1, C).astype(jnp.float32)
    b2_2d = b2.reshape(1, C).astype(jnp.float32)
    return w1_mat, b1_2d, w2_mat, b2_2d


def residual_block_nobn_nhwc(x_nhwc, params, *, tile_rows=None):
    """Core entry point: NHWC activations, pre-packed params (no per-block transposes)."""
    w1_mat, b1_2d, w2_mat, b2_2d = params
    N, H, W, C = x_nhwc.shape
    assert H % 2 == 0, "row-halo blocking needs even H"  # TODO(synk): odd-H fallback

    budget = _vmem_budget_bytes()
    TH = _pick_row_tile(N, H, W, C, budget) if tile_rows is None else tile_rows
    assert H % TH == 0 and TH % 2 == 0, "tile_rows must be an even divisor of H"
    T = H // TH
    halo_blk = TH // 2          # halo specs tile H in 2-row blocks

    def top_map(n, t):   # rows [R0-2, R0-1], clamped at the top border (gated in-kernel)
        return (n, jnp.maximum(t * halo_blk - 1, 0), 0, 0)

    def body_map(n, t):
        return (n, t, 0, 0)

    def bot_map(n, t):   # rows [R0+TH, R0+TH+1], clamped at the bottom border
        return (n, jnp.minimum((t + 1) * halo_blk, H // 2 - 1), 0, 0)

    def const2(n, t):    # weights / biases: resident (constant block index)
        return (0, 0)

    return pl.pallas_call(
        _resblock_kernel,
        out_shape=jax.ShapeDtypeStruct((N, H, W, C), x_nhwc.dtype),
        grid_spec=pltpu.PrefetchScalarGridSpec(
            num_scalar_prefetch=0,
            grid=(N, T),
            in_specs=[
                pl.BlockSpec((1, 2, W, C), top_map),
                pl.BlockSpec((1, TH, W, C), body_map),
                pl.BlockSpec((1, 2, W, C), bot_map),
                pl.BlockSpec((9 * C, C), const2),
                pl.BlockSpec((1, C), const2),
                pl.BlockSpec((9 * C, C), const2),
                pl.BlockSpec((1, C), const2),
            ],
            out_specs=pl.BlockSpec((1, TH, W, C), body_map),
            scratch_shapes=[
                pltpu.VMEM((TH + 4, W + 2, C), jnp.bfloat16),   # padded input slab
                pltpu.VMEM((TH + 2, W + 2, C), jnp.bfloat16),   # padded conv1 slab
                pltpu.VMEM((TH + 2, W, 9 * C), jnp.bfloat16),   # im2col staging
            ],
        ),
        compiler_params=pltpu.CompilerParams(
            dimension_semantics=("parallel", "parallel"),
            vmem_limit_bytes=budget,
        ),
    )(x_nhwc, x_nhwc, x_nhwc, w1_mat, b1_2d, w2_mat, b2_2d)


def residual_block_nobn(x_nchw, w1, b1, w2, b2, *, tile_rows=None):
    """Convenience NCHW wrapper (layout conversion done once; in a stacked model keep
    activations NHWC and call residual_block_nobn_nhwc directly)."""
    x = jnp.transpose(x_nchw, (0, 2, 3, 1))
    params = pack_resblock_params(w1, b1, w2, b2)
    out = residual_block_nobn_nhwc(x, params, tile_rows=tile_rows)
    return jnp.transpose(out, (0, 3, 1, 2))


# --------------------------------------------------------------------------------------
# Pure-JAX reference (matches PyTorch forward, NCHW)
# --------------------------------------------------------------------------------------
def _ref_forward(x, w1, b1, w2, b2):
    dn = jax.lax.conv_dimension_numbers(x.shape, w1.shape, ('NCHW', 'OIHW', 'NCHW'))
    y = jax.lax.conv_general_dilated(x, w1, (1, 1), ((1, 1), (1, 1)),
                                     dimension_numbers=dn)
    y = jnp.maximum(y + b1[None, :, None, None], 0.0)
    z = jax.lax.conv_general_dilated(y, w2, (1, 1), ((1, 1), (1, 1)),
                                     dimension_numbers=dn)
    z = z + b2[None, :, None, None]
    return x + z


if __name__ == "__main__":
    # Small deterministic setup: nf=4 channels, 2x4x16x16 input.
    N, nf, H, W = 2, 4, 16, 16

    key = jax.random.PRNGKey(0)
    kx, kw1, kw2 = jax.random.split(key, 3)

    # kaiming_normal_(a=0, mode='fan_in') -> std = sqrt(2 / fan_in), fan_in = nf*3*3,
    # then scaled by 0.1; biases zeroed (mirrors initialize_weights(..., 0.1)).
    fan_in = nf * 3 * 3
    std = math.sqrt(2.0 / fan_in)
    w1 = jax.random.normal(kw1, (nf, nf, 3, 3), jnp.float32) * std * 0.1
    w2 = jax.random.normal(kw2, (nf, nf, 3, 3), jnp.float32) * std * 0.1
    b1 = jnp.zeros((nf,), jnp.float32)
    b2 = jnp.zeros((nf,), jnp.float32)

    x = jax.random.normal(kx, (N, nf, H, W), jnp.float32)

    ref = jax.block_until_ready(_ref_forward(x, w1, b1, w2, b2))

    # Multi-tile path (exercises the row halo / border masking) and auto-tile path.
    # bf16 matmul operands (f32 accumulation) -> relaxed tolerance vs. the f32 reference.
    for tr in (8, None):
        out = residual_block_nobn(x, w1, b1, w2, b2, tile_rows=tr)
        out = jax.block_until_ready(out)
        assert out.shape == ref.shape == (N, nf, H, W)
        assert jnp.allclose(out, ref, atol=1e-2, rtol=1e-2), (
            f"mismatch vs JAX reference (tile_rows={tr})")

    print("KERNEL_OK")
</pallas_src>

<mosaic_0001>
module attributes {stable_mosaic.version = 11 : i64} {
  func.func @_resblock_kernel(%arg0: i32, %arg1: i32, %arg2: memref<1x2x16x4xf32, #tpu.memory_space<vmem>>, %arg3: memref<1x8x16x4xf32, #tpu.memory_space<vmem>>, %arg4: memref<1x2x16x4xf32, #tpu.memory_space<vmem>>, %arg5: memref<36x4xbf16, #tpu.memory_space<vmem>>, %arg6: memref<1x4xf32, #tpu.memory_space<vmem>>, %arg7: memref<36x4xbf16, #tpu.memory_space<vmem>>, %arg8: memref<1x4xf32, #tpu.memory_space<vmem>>, %arg9: memref<1x8x16x4xf32, #tpu.memory_space<vmem>>, %arg10: memref<12x18x4xbf16, #tpu.memory_space<vmem>>, %arg11: memref<10x18x4xbf16, #tpu.memory_space<vmem>>, %arg12: memref<10x16x36xbf16, #tpu.memory_space<vmem>>) attributes {dimension_semantics = [#tpu.dimension_semantics<parallel>, #tpu.dimension_semantics<parallel>], iteration_bounds = array<i64: 2, 2>, scalar_prefetch = 0 : i64, scratch_operands = 3 : i64, tpu.core_type = #tpu.core_type<tc>, window_params = [{transform_indices = @transform_0, window_bounds = array<i64: 1, 2, 16, 4>}, {transform_indices = @transform_1, window_bounds = array<i64: 1, 8, 16, 4>}, {transform_indices = @transform_2, window_bounds = array<i64: 1, 2, 16, 4>}, {pipeline_mode = #tpu.pipeline_mode<synchronous>, transform_indices = @transform_3, window_bounds = array<i64: 36, 4>}, {pipeline_mode = #tpu.pipeline_mode<synchronous>, transform_indices = @transform_4, window_bounds = array<i64: 1, 4>}, {pipeline_mode = #tpu.pipeline_mode<synchronous>, transform_indices = @transform_5, window_bounds = array<i64: 36, 4>}, {pipeline_mode = #tpu.pipeline_mode<synchronous>, transform_indices = @transform_6, window_bounds = array<i64: 1, 4>}, {transform_indices = @transform_7, window_bounds = array<i64: 1, 8, 16, 4>}]} {
    %cst = arith.constant 0.000000e+00 : bf16
    %0 = vector.broadcast %cst : bf16 to vector<12x1x4xbf16>
    %c0 = arith.constant 0 : index
    %c0_0 = arith.constant 0 : index
    %c0_1 = arith.constant 0 : index
    %1 = vector.load %arg10[%c0, %c0_0, %c0_1] : memref<12x18x4xbf16, #tpu.memory_space<vmem>>, vector<12x1x4xbf16>
    tpu.vector_store %arg10[%c0, %c0_0, %c0_1], %0 {strides = array<i32>} : memref<12x18x4xbf16, #tpu.memory_space<vmem>>, vector<12x1x4xbf16>,
    %cst_2 = arith.constant 0.000000e+00 : bf16
    %2 = vector.broadcast %cst_2 : bf16 to vector<12x1x4xbf16>
    %c0_3 = arith.constant 0 : index
    %c17 = arith.constant 17 : index
    %c0_4 = arith.constant 0 : index
    %3 = vector.load %arg10[%c0_3, %c17, %c0_4] : memref<12x18x4xbf16, #tpu.memory_space<vmem>>, vector<12x1x4xbf16>
    tpu.vector_store %arg10[%c0_3, %c17, %c0_4], %2 {strides = array<i32>} : memref<12x18x4xbf16, #tpu.memory_space<vmem>>, vector<12x1x4xbf16>,
    %cst_5 = arith.constant 0.000000e+00 : bf16
    %4 = vector.broadcast %cst_5 : bf16 to vector<10x1x4xbf16>
    %c0_6 = arith.constant 0 : index
    %c0_7 = arith.constant 0 : index
    %c0_8 = arith.constant 0 : index
    %5 = vector.load %arg11[%c0_6, %c0_7, %c0_8] : memref<10x18x4xbf16, #tpu.memory_space<vmem>>, vector<10x1x4xbf16>
    tpu.vector_store %arg11[%c0_6, %c0_7, %c0_8], %4 {strides = array<i32>} : memref<10x18x4xbf16, #tpu.memory_space<vmem>>, vector<10x1x4xbf16>,
    %cst_9 = arith.constant 0.000000e+00 : bf16
    %6 = vector.broadcast %cst_9 : bf16 to vector<10x1x4xbf16>
    %c0_10 = arith.constant 0 : index
    %c17_11 = arith.constant 17 : index
    %c0_12 = arith.constant 0 : index
    %7 = vector.load %arg11[%c0_10, %c17_11, %c0_12] : memref<10x18x4xbf16, #tpu.memory_space<vmem>>, vector<10x1x4xbf16>
    tpu.vector_store %arg11[%c0_10, %c17_11, %c0_12], %6 {strides = array<i32>} : memref<10x18x4xbf16, #tpu.memory_space<vmem>>, vector<10x1x4xbf16>,
    %c0_13 = arith.constant 0 : index
    %c0_14 = arith.constant 0 : index
    %c0_15 = arith.constant 0 : index
    %c0_16 = arith.constant 0 : index
    %8 = vector.load %arg2[%c0_13, %c0_14, %c0_15, %c0_16] : memref<1x2x16x4xf32, #tpu.memory_space<vmem>>, vector<1x2x16x4xf32>
    %9 = vector.shape_cast %8 : vector<1x2x16x4xf32> to vector<2x16x4xf32>
    %10 = arith.truncf %9 : vector<2x16x4xf32> to vector<2x16x4xbf16>
    %c0_17 = arith.constant 0 : index
    %c0_18 = arith.constant 0 : index
    %c0_19 = arith.constant 0 : index
    %c0_20 = arith.constant 0 : index
    %11 = vector.load %arg4[%c0_17, %c0_18, %c0_19, %c0_20] : memref<1x2x16x4xf32, #tpu.memory_space<vmem>>, vector<1x2x16x4xf32>
    %12 = vector.shape_cast %11 : vector<1x2x16x4xf32> to vector<2x16x4xf32>
    %13 = arith.truncf %12 : vector<2x16x4xf32> to vector<2x16x4xbf16>
    %c0_i32 = arith.constant 0 : i32
    %14 = arith.cmpi sgt, %arg1, %c0_i32 : i32
    %cst_21 = arith.constant 0.000000e+00 : bf16
    %15 = vector.broadcast %cst_21 : bf16 to vector<2x16x4xbf16>
    %16 = arith.select %14, %10, %15 : vector<2x16x4xbf16>
    %c0_22 = arith.constant 0 : index
    %c1 = arith.constant 1 : index
    %c0_23 = arith.constant 0 : index
    %17 = vector.load %arg10[%c0_22, %c1, %c0_23] : memref<12x18x4xbf16, #tpu.memory_space<vmem>>, vector<2x16x4xbf16>
    tpu.vector_store %arg10[%c0_22, %c1, %c0_23], %16 {strides = array<i32>} : memref<12x18x4xbf16, #tpu.memory_space<vmem>>, vector<2x16x4xbf16>,
    %c0_24 = arith.constant 0 : index
    %c0_25 = arith.constant 0 : index
    %c0_26 = arith.constant 0 : index
    %c0_27 = arith.constant 0 : index
    %18 = vector.load %arg3[%c0_24, %c0_25, %c0_26, %c0_27] : memref<1x8x16x4xf32, #tpu.memory_space<vmem>>, vector<1x8x16x4xf32>
    %19 = vector.shape_cast %18 : vector<1x8x16x4xf32> to vector<8x16x4xf32>
    %20 = arith.truncf %19 : vector<8x16x4xf32> to vector<8x16x4xbf16>
    %c2 = arith.constant 2 : index
    %c1_28 = arith.constant 1 : index
    %c0_29 = arith.constant 0 : index
    %21 = vector.load %arg10[%c2, %c1_28, %c0_29] : memref<12x18x4xbf16, #tpu.memory_space<vmem>>, vector<8x16x4xbf16>
    tpu.vector_store %arg10[%c2, %c1_28, %c0_29], %20 {strides = array<i32>} : memref<12x18x4xbf16, #tpu.memory_space<vmem>>, vector<8x16x4xbf16>,
    %c1_i32 = arith.constant 1 : i32
    %22 = arith.cmpi slt, %arg1, %c1_i32 : i32
    %cst_30 = arith.constant 0.000000e+00 : bf16
    %23 = vector.broadcast %cst_30 : bf16 to vector<2x16x4xbf16>
    %24 = arith.select %22, %13, %23 : vector<2x16x4xbf16>
    %c10 = arith.constant 10 : index
    %c1_31 = arith.constant 1 : index
    %c0_32 = arith.constant 0 : index
    %25 = vector.load %arg10[%c10, %c1_31, %c0_32] : memref<12x18x4xbf16, #tpu.memory_space<vmem>>, vector<2x16x4xbf16>
    tpu.vector_store %arg10[%c10, %c1_31, %c0_32], %24 {strides = array<i32>} : memref<12x18x4xbf16, #tpu.memory_space<vmem>>, vector<2x16x4xbf16>,
    %c0_33 = arith.constant 0 : index
    %c0_34 = arith.constant 0 : index
    %c0_35 = arith.constant 0 : index
    %26 = vector.load %arg10[%c0_33, %c0_34, %c0_35] : memref<12x18x4xbf16, #tpu.memory_space<vmem>>, vector<10x16x4xbf16>
    %c0_36 = arith.constant 0 : index
    %c0_37 = arith.constant 0 : index
    %c0_38 = arith.constant 0 : index
    %27 = vector.load %arg12[%c0_36, %c0_37, %c0_38] : memref<10x16x36xbf16, #tpu.memory_space<vmem>>, vector<10x16x4xbf16>
    tpu.vector_store %arg12[%c0_36, %c0_37, %c0_38], %26 {strides = array<i32>} : memref<10x16x36xbf16, #tpu.memory_space<vmem>>, vector<10x16x4xbf16>,
    %c0_39 = arith.constant 0 : index
    %c1_40 = arith.constant 1 : index
    %c0_41 = arith.constant 0 : index
    %28 = vector.load %arg10[%c0_39, %c1_40, %c0_41] : memref<12x18x4xbf16, #tpu.memory_space<vmem>>, vector<10x16x4xbf16>
    %c0_42 = arith.constant 0 : index
    %c0_43 = arith.constant 0 : index
    %c4 = arith.constant 4 : index
    %29 = vector.load %arg12[%c0_42, %c0_43, %c4] : memref<10x16x36xbf16, #tpu.memory_space<vmem>>, vector<10x16x4xbf16>
    tpu.vector_store %arg12[%c0_42, %c0_43, %c4], %28 {strides = array<i32>} : memref<10x16x36xbf16, #tpu.memory_space<vmem>>, vector<10x16x4xbf16>,
    %c0_44 = arith.constant 0 : index
    %c2_45 = arith.constant 2 : index
    %c0_46 = arith.constant 0 : index
    %30 = vector.load %arg10[%c0_44, %c2_45, %c0_46] : memref<12x18x4xbf16, #tpu.memory_space<vmem>>, vector<10x16x4xbf16>
    %c0_47 = arith.constant 0 : index
    %c0_48 = arith.constant 0 : index
    %c8 = arith.constant 8 : index
    %31 = vector.load %arg12[%c0_47, %c0_48, %c8] : memref<10x16x36xbf16, #tpu.memory_space<vmem>>, vector<10x16x4xbf16>
    tpu.vector_store %arg12[%c0_47, %c0_48, %c8], %30 {strides = array<i32>} : memref<10x16x36xbf16, #tpu.memory_space<vmem>>, vector<10x16x4xbf16>,
    %c1_49 = arith.constant 1 : index
    %c0_50 = arith.constant 0 : index
    %c0_51 = arith.constant 0 : index
    %32 = vector.load %arg10[%c1_49, %c0_50, %c0_51] : memref<12x18x4xbf16, #tpu.memory_space<vmem>>, vector<10x16x4xbf16>
    %c0_52 = arith.constant 0 : index
    %c0_53 = arith.constant 0 : index
    %c12 = arith.constant 12 : index
    %33 = vector.load %arg12[%c0_52, %c0_53, %c12] : memref<10x16x36xbf16, #tpu.memory_space<vmem>>, vector<10x16x4xbf16>
    tpu.vector_store %arg12[%c0_52, %c0_53, %c12], %32 {strides = array<i32>} : memref<10x16x36xbf16, #tpu.memory_space<vmem>>, vector<10x16x4xbf16>,
    %c1_54 = arith.constant 1 : index
    %c1_55 = arith.constant 1 : index
    %c0_56 = arith.constant 0 : index
    %34 = vector.load %arg10[%c1_54, %c1_55, %c0_56] : memref<12x18x4xbf16, #tpu.memory_space<vmem>>, vector<10x16x4xbf16>
    %c0_57 = arith.constant 0 : index
    %c0_58 = arith.constant 0 : index
    %c16 = arith.constant 16 : index
    %35 = vector.load %arg12[%c0_57, %c0_58, %c16] : memref<10x16x36xbf16, #tpu.memory_space<vmem>>, vector<10x16x4xbf16>
    tpu.vector_store %arg12[%c0_57, %c0_58, %c16], %34 {strides = array<i32>} : memref<10x16x36xbf16, #tpu.memory_space<vmem>>, vector<10x16x4xbf16>,
    %c1_59 = arith.constant 1 : index
    %c2_60 = arith.constant 2 : index
    %c0_61 = arith.constant 0 : index
    %36 = vector.load %arg10[%c1_59, %c2_60, %c0_61] : memref<12x18x4xbf16, #tpu.memory_space<vmem>>, vector<10x16x4xbf16>
    %c0_62 = arith.constant 0 : index
    %c0_63 = arith.constant 0 : index
    %c20 = arith.constant 20 : index
    %37 = vector.load %arg12[%c0_62, %c0_63, %c20] : memref<10x16x36xbf16, #tpu.memory_space<vmem>>, vector<10x16x4xbf16>
    tpu.vector_store %arg12[%c0_62, %c0_63, %c20], %36 {strides = array<i32>} : memref<10x16x36xbf16, #tpu.memory_space<vmem>>, vector<10x16x4xbf16>,
    %c2_64 = arith.constant 2 : index
    %c0_65 = arith.constant 0 : index
    %c0_66 = arith.constant 0 : index
    %38 = vector.load %arg10[%c2_64, %c0_65, %c0_66] : memref<12x18x4xbf16, #tpu.memory_space<vmem>>, vector<10x16x4xbf16>
    %c0_67 = arith.constant 0 : index
    %c0_68 = arith.constant 0 : index
    %c24 = arith.constant 24 : index
    %39 = vector.load %arg12[%c0_67, %c0_68, %c24] : memref<10x16x36xbf16, #tpu.memory_space<vmem>>, vector<10x16x4xbf16>
    tpu.vector_store %arg12[%c0_67, %c0_68, %c24], %38 {strides = array<i32>} : memref<10x16x36xbf16, #tpu.memory_space<vmem>>, vector<10x16x4xbf16>,
    %c2_69 = arith.constant 2 : index
    %c1_70 = arith.constant 1 : index
    %c0_71 = arith.constant 0 : index
    %40 = vector.load %arg10[%c2_69, %c1_70, %c0_71] : memref<12x18x4xbf16, #tpu.memory_space<vmem>>, vector<10x16x4xbf16>
    %c0_72 = arith.constant 0 : index
    %c0_73 = arith.constant 0 : index
    %c28 = arith.constant 28 : index
    %41 = vector.load %arg12[%c0_72, %c0_73, %c28] : memref<10x16x36xbf16, #tpu.memory_space<vmem>>, vector<10x16x4xbf16>
    tpu.vector_store %arg12[%c0_72, %c0_73, %c28], %40 {strides = array<i32>} : memref<10x16x36xbf16, #tpu.memory_space<vmem>>, vector<10x16x4xbf16>,
    %c2_74 = arith.constant 2 : index
    %c2_75 = arith.constant 2 : index
    %c0_76 = arith.constant 0 : index
    %42 = vector.load %arg10[%c2_74, %c2_75, %c0_76] : memref<12x18x4xbf16, #tpu.memory_space<vmem>>, vector<10x16x4xbf16>
    %c0_77 = arith.constant 0 : index
    %c0_78 = arith.constant 0 : index
    %c32 = arith.constant 32 : index
    %43 = vector.load %arg12[%c0_77, %c0_78, %c32] : memref<10x16x36xbf16, #tpu.memory_space<vmem>>, vector<10x16x4xbf16>
    tpu.vector_store %arg12[%c0_77, %c0_78, %c32], %42 {strides = array<i32>} : memref<10x16x36xbf16, #tpu.memory_space<vmem>>, vector<10x16x4xbf16>,
    %c0_79 = arith.constant 0 : index
    %c0_80 = arith.constant 0 : index
    %c0_81 = arith.constant 0 : index
    %44 = vector.load %arg12[%c0_79, %c0_80, %c0_81] : memref<10x16x36xbf16, #tpu.memory_space<vmem>>, vector<10x16x36xbf16>
    %45 = vector.shape_cast %44 : vector<10x16x36xbf16> to vector<160x36xbf16>
    %c0_82 = arith.constant 0 : index
    %c0_83 = arith.constant 0 : index
    %46 = vector.load %arg5[%c0_82, %c0_83] : memref<36x4xbf16, #tpu.memory_space<vmem>>, vector<36x4xbf16>
    %cst_84 = arith.constant dense<0.000000e+00> : vector<160x4xf32>
    %47 = tpu.matmul %45, %46, %cst_84 {dimension_numbers = #tpu.dot_dimension_numbers<[1], [0], [0], [1], [0, 0, 1, 1], [], []>} : vector<160x36xbf16>, vector<36x4xbf16>, vector<160x4xf32> -> vector<160x4xf32>
    %c0_85 = arith.constant 0 : index
    %c0_86 = arith.constant 0 : index
    %48 = vector.load %arg6[%c0_85, %c0_86] : memref<1x4xf32, #tpu.memory_space<vmem>>, vector<1x4xf32>
    %49 = vector.broadcast %48 : vector<1x4xf32> to vector<160x4xf32>
    %50 = arith.addf %47, %49 : vector<160x4xf32>
    %cst_87 = arith.constant 0.000000e+00 : f32
    %51 = vector.broadcast %cst_87 : f32 to vector<160x4xf32>
    %52 = arith.maximumf %50, %51 : vector<160x4xf32>
    %53 = vector.shape_cast %52 : vector<160x4xf32> to vector<10x16x4xf32>
    %54 = arith.truncf %53 : vector<10x16x4xf32> to vector<10x16x4xbf16>
    %c0_88 = arith.constant 0 : index
    %c1_89 = arith.constant 1 : index
    %c0_90 = arith.constant 0 : index
    %55 = vector.load %arg11[%c0_88, %c1_89, %c0_90] : memref<10x18x4xbf16, #tpu.memory_space<vmem>>, vector<10x16x4xbf16>
    tpu.vector_store %arg11[%c0_88, %c1_89, %c0_90], %54 {strides = array<i32>} : memref<10x18x4xbf16, #tpu.memory_space<vmem>>, vector<10x16x4xbf16>,
    %c0_i32_91 = arith.constant 0 : i32
    %56 = arith.cmpi eq, %arg1, %c0_i32_91 : i32
    %57 = arith.extui %56 : i1 to i32
    %c0_i32_92 = arith.constant 0 : i32
    %58 = arith.cmpi ne, %57, %c0_i32_92 : i32
    scf.if %58 {
      %cst_165 = arith.constant 0.000000e+00 : bf16
      %94 = vector.broadcast %cst_165 : bf16 to vector<1x18x4xbf16>
      %c0_166 = arith.constant 0 : index
      %c0_167 = arith.constant 0 : index
      %c0_168 = arith.constant 0 : index
      %95 = vector.load %arg11[%c0_166, %c0_167, %c0_168] : memref<10x18x4xbf16, #tpu.memory_space<vmem>>, vector<1x18x4xbf16>
      tpu.vector_store %arg11[%c0_166, %c0_167, %c0_168], %94 {strides = array<i32>} : memref<10x18x4xbf16, #tpu.memory_space<vmem>>, vector<1x18x4xbf16>,
    } else {
    }
    %c1_i32_93 = arith.constant 1 : i32
    %59 = arith.cmpi eq, %arg1, %c1_i32_93 : i32
    %60 = arith.extui %59 : i1 to i32
    %c0_i32_94 = arith.constant 0 : i32
    %61 = arith.cmpi ne, %60, %c0_i32_94 : i32
    scf.if %61 {
      %cst_165 = arith.constant 0.000000e+00 : bf16
      %94 = vector.broadcast %cst_165 : bf16 to vector<1x18x4xbf16>
      %c9 = arith.constant 9 : index
      %c0_166 = arith.constant 0 : index
      %c0_167 = arith.constant 0 : index
      %95 = vector.load %arg11[%c9, %c0_166, %c0_167] : memref<10x18x4xbf16, #tpu.memory_space<vmem>>, vector<1x18x4xbf16>
      tpu.vector_store %arg11[%c9, %c0_166, %c0_167], %94 {strides = array<i32>} : memref<10x18x4xbf16, #tpu.memory_space<vmem>>, vector<1x18x4xbf16>,
    } else {
    }
    %c0_95 = arith.constant 0 : index
    %c0_96 = arith.constant 0 : index
    %c0_97 = arith.constant 0 : index
    %62 = vector.load %arg11[%c0_95, %c0_96, %c0_97] : memref<10x18x4xbf16, #tpu.memory_space<vmem>>, vector<8x16x4xbf16>
    %c0_98 = arith.constant 0 : index
    %c0_99 = arith.constant 0 : index
    %c0_100 = arith.constant 0 : index
    %63 = vector.load %arg12[%c0_98, %c0_99, %c0_100] : memref<10x16x36xbf16, #tpu.memory_space<vmem>>, vector<8x16x4xbf16>
    tpu.vector_store %arg12[%c0_98, %c0_99, %c0_100], %62 {strides = array<i32>} : memref<10x16x36xbf16, #tpu.memory_space<vmem>>, vector<8x16x4xbf16>,
    %c0_101 = arith.constant 0 : index
    %c1_102 = arith.constant 1 : index
    %c0_103 = arith.constant 0 : index
    %64 = vector.load %arg11[%c0_101, %c1_102, %c0_103] : memref<10x18x4xbf16, #tpu.memory_space<vmem>>, vector<8x16x4xbf16>
    %c0_104 = arith.constant 0 : index
    %c0_105 = arith.constant 0 : index
    %c4_106 = arith.constant 4 : index
    %65 = vector.load %arg12[%c0_104, %c0_105, %c4_106] : memref<10x16x36xbf16, #tpu.memory_space<vmem>>, vector<8x16x4xbf16>
    tpu.vector_store %arg12[%c0_104, %c0_105, %c4_106], %64 {strides = array<i32>} : memref<10x16x36xbf16, #tpu.memory_space<vmem>>, vector<8x16x4xbf16>,
    %c0_107 = arith.constant 0 : index
    %c2_108 = arith.constant 2 : index
    %c0_109 = arith.constant 0 : index
    %66 = vector.load %arg11[%c0_107, %c2_108, %c0_109] : memref<10x18x4xbf16, #tpu.memory_space<vmem>>, vector<8x16x4xbf16>
    %c0_110 = arith.constant 0 : index
    %c0_111 = arith.constant 0 : index
    %c8_112 = arith.constant 8 : index
    %67 = vector.load %arg12[%c0_110, %c0_111, %c8_112] : memref<10x16x36xbf16, #tpu.memory_space<vmem>>, vector<8x16x4xbf16>
    tpu.vector_store %arg12[%c0_110, %c0_111, %c8_112], %66 {strides = array<i32>} : memref<10x16x36xbf16, #tpu.memory_space<vmem>>, vector<8x16x4xbf16>,
    %c1_113 = arith.constant 1 : index
    %c0_114 = arith.constant 0 : index
    %c0_115 = arith.constant 0 : index
    %68 = vector.load %arg11[%c1_113, %c0_114, %c0_115] : memref<10x18x4xbf16, #tpu.memory_space<vmem>>, vector<8x16x4xbf16>
    %c0_116 = arith.constant 0 : index
    %c0_117 = arith.constant 0 : index
    %c12_118 = arith.constant 12 : index
    %69 = vector.load %arg12[%c0_116, %c0_117, %c12_118] : memref<10x16x36xbf16, #tpu.memory_space<vmem>>, vector<8x16x4xbf16>
    tpu.vector_store %arg12[%c0_116, %c0_117, %c12_118], %68 {strides = array<i32>} : memref<10x16x36xbf16, #tpu.memory_space<vmem>>, vector<8x16x4xbf16>,
    %c1_119 = arith.constant 1 : index
    %c1_120 = arith.constant 1 : index
    %c0_121 = arith.constant 0 : index
    %70 = vector.load %arg11[%c1_119, %c1_120, %c0_121] : memref<10x18x4xbf16, #tpu.memory_space<vmem>>, vector<8x16x4xbf16>
    %c0_122 = arith.constant 0 : index
    %c0_123 = arith.constant 0 : index
    %c16_124 = arith.constant 16 : index
    %71 = vector.load %arg12[%c0_122, %c0_123, %c16_124] : memref<10x16x36xbf16, #tpu.memory_space<vmem>>, vector<8x16x4xbf16>
    tpu.vector_store %arg12[%c0_122, %c0_123, %c16_124], %70 {strides = array<i32>} : memref<10x16x36xbf16, #tpu.memory_space<vmem>>, vector<8x16x4xbf16>,
    %c1_125 = arith.constant 1 : index
    %c2_126 = arith.constant 2 : index
    %c0_127 = arith.constant 0 : index
    %72 = vector.load %arg11[%c1_125, %c2_126, %c0_127] : memref<10x18x4xbf16, #tpu.memory_space<vmem>>, vector<8x16x4xbf16>
    %c0_128 = arith.constant 0 : index
    %c0_129 = arith.constant 0 : index
    %c20_130 = arith.constant 20 : index
    %73 = vector.load %arg12[%c0_128, %c0_129, %c20_130] : memref<10x16x36xbf16, #tpu.memory_space<vmem>>, vector<8x16x4xbf16>
    tpu.vector_store %arg12[%c0_128, %c0_129, %c20_130], %72 {strides = array<i32>} : memref<10x16x36xbf16, #tpu.memory_space<vmem>>, vector<8x16x4xbf16>,
    %c2_131 = arith.constant 2 : index
    %c0_132 = arith.constant 0 : index
    %c0_133 = arith.constant 0 : index
    %74 = vector.load %arg11[%c2_131, %c0_132, %c0_133] : memref<10x18x4xbf16, #tpu.memory_space<vmem>>, vector<8x16x4xbf16>
    %c0_134 = arith.constant 0 : index
    %c0_135 = arith.constant 0 : index
    %c24_136 = arith.constant 24 : index
    %75 = vector.load %arg12[%c0_134, %c0_135, %c24_136] : memref<10x16x36xbf16, #tpu.memory_space<vmem>>, vector<8x16x4xbf16>
    tpu.vector_store %arg12[%c0_134, %c0_135, %c24_136], %74 {strides = array<i32>} : memref<10x16x36xbf16, #tpu.memory_space<vmem>>, vector<8x16x4xbf16>,
    %c2_137 = arith.constant 2 : index
    %c1_138 = arith.constant 1 : index
    %c0_139 = arith.constant 0 : index
    %76 = vector.load %arg11[%c2_137, %c1_138, %c0_139] : memref<10x18x4xbf16, #tpu.memory_space<vmem>>, vector<8x16x4xbf16>
    %c0_140 = arith.constant 0 : index
    %c0_141 = arith.constant 0 : index
    %c28_142 = arith.constant 28 : index
    %77 = vector.load %arg12[%c0_140, %c0_141, %c28_142] : memref<10x16x36xbf16, #tpu.memory_space<vmem>>, vector<8x16x4xbf16>
    tpu.vector_store %arg12[%c0_140, %c0_141, %c28_142], %76 {strides = array<i32>} : memref<10x16x36xbf16, #tpu.memory_space<vmem>>, vector<8x16x4xbf16>,
    %c2_143 = arith.constant 2 : index
    %c2_144 = arith.constant 2 : index
    %c0_145 = arith.constant 0 : index
    %78 = vector.load %arg11[%c2_143, %c2_144, %c0_145] : memref<10x18x4xbf16, #tpu.memory_space<vmem>>, vector<8x16x4xbf16>
    %c0_146 = arith.constant 0 : index
    %c0_147 = arith.constant 0 : index
    %c32_148 = arith.constant 32 : index
    %79 = vector.load %arg12[%c0_146, %c0_147, %c32_148] : memref<10x16x36xbf16, #tpu.memory_space<vmem>>, vector<8x16x4xbf16>
    tpu.vector_store %arg12[%c0_146, %c0_147, %c32_148], %78 {strides = array<i32>} : memref<10x16x36xbf16, #tpu.memory_space<vmem>>, vector<8x16x4xbf16>,
    %c0_149 = arith.constant 0 : index
    %c0_150 = arith.constant 0 : index
    %c0_151 = arith.constant 0 : index
    %80 = vector.load %arg12[%c0_149, %c0_150, %c0_151] : memref<10x16x36xbf16, #tpu.memory_space<vmem>>, vector<8x16x36xbf16>
    %81 = vector.shape_cast %80 : vector<8x16x36xbf16> to vector<128x36xbf16>
    %c0_152 = arith.constant 0 : index
    %c0_153 = arith.constant 0 : index
    %82 = vector.load %arg7[%c0_152, %c0_153] : memref<36x4xbf16, #tpu.memory_space<vmem>>, vector<36x4xbf16>
    %cst_154 = arith.constant dense<0.000000e+00> : vector<128x4xf32>
    %83 = tpu.matmul %81, %82, %cst_154 {dimension_numbers = #tpu.dot_dimension_numbers<[1], [0], [0], [1], [0, 0, 1, 1], [], []>} : vector<128x36xbf16>, vector<36x4xbf16>, vector<128x4xf32> -> vector<128x4xf32>
    %c0_155 = arith.constant 0 : index
    %c0_156 = arith.constant 0 : index
    %84 = vector.load %arg8[%c0_155, %c0_156] : memref<1x4xf32, #tpu.memory_space<vmem>>, vector<1x4xf32>
    %85 = vector.broadcast %84 : vector<1x4xf32> to vector<128x4xf32>
    %86 = arith.addf %83, %85 : vector<128x4xf32>
    %c0_157 = arith.constant 0 : index
    %c0_158 = arith.constant 0 : index
    %c0_159 = arith.constant 0 : index
    %c0_160 = arith.constant 0 : index
    %87 = vector.load %arg3[%c0_157, %c0_158, %c0_159, %c0_160] : memref<1x8x16x4xf32, #tpu.memory_space<vmem>>, vector<1x8x16x4xf32>
    %88 = vector.shape_cast %87 : vector<1x8x16x4xf32> to vector<8x16x4xf32>
    %89 = vector.shape_cast %86 : vector<128x4xf32> to vector<8x16x4xf32>
    %90 = arith.addf %88, %89 : vector<8x16x4xf32>
    %c0_161 = arith.constant 0 : index
    %c0_162 = arith.constant 0 : index
    %c0_163 = arith.constant 0 : index
    %c0_164 = arith.constant 0 : index
    %91 = vector.load %arg9[%c0_161, %c0_162, %c0_163, %c0_164] : memref<1x8x16x4xf32, #tpu.memory_space<vmem>>, vector<1x8x16x4xf32>
    %92 = vector.shape_cast %91 : vector<1x8x16x4xf32> to vector<8x16x4xf32>
    %93 = vector.shape_cast %90 : vector<8x16x4xf32> to vector<1x8x16x4xf32>
    tpu.vector_store %arg9[%c0_161, %c0_162, %c0_163, %c0_164], %93 {strides = array<i32>} : memref<1x8x16x4xf32, #tpu.memory_space<vmem>>, vector<1x8x16x4xf32>,
    return
  }
  func.func @transform_0(%arg0: i32, %arg1: i32) -> (i32, i32, i32, i32) {
    %c4_i32 = arith.constant 4 : i32
    %0 = arith.muli %arg1, %c4_i32 : i32
    %c1_i32 = arith.constant 1 : i32
    %1 = arith.subi %0, %c1_i32 : i32
    %c0_i32 = arith.constant 0 : i32
    %2 = arith.maxsi %1, %c0_i32 : i32
    %c0_i32_0 = arith.constant 0 : i32
    %c0_i32_1 = arith.constant 0 : i32
    %c0_i32_2 = arith.constant 0 : i32
    return %arg0, %2, %c0_i32_0, %c0_i32_1 : i32, i32, i32, i32
  }
  func.func @transform_1(%arg0: i32, %arg1: i32) -> (i32, i32, i32, i32) {
    %c0_i32 = arith.constant 0 : i32
    %c0_i32_0 = arith.constant 0 : i32
    %c0_i32_1 = arith.constant 0 : i32
    return %arg0, %arg1, %c0_i32, %c0_i32_0 : i32, i32, i32, i32
  }
  func.func @transform_2(%arg0: i32, %arg1: i32) -> (i32, i32, i32, i32) {
    %c1_i32 = arith.constant 1 : i32
    %0 = arith.addi %arg1, %c1_i32 : i32
    %c4_i32 = arith.constant 4 : i32
    %1 = arith.muli %0, %c4_i32 : i32
    %c7_i32 = arith.constant 7 : i32
    %2 = arith.minsi %1, %c7_i32 : i32
    %c0_i32 = arith.constant 0 : i32
    %c0_i32_0 = arith.constant 0 : i32
    %c0_i32_1 = arith.constant 0 : i32
    return %arg0, %2, %c0_i32, %c0_i32_0 : i32, i32, i32, i32
  }
  func.func @transform_3(%arg0: i32, %arg1: i32) -> (i32, i32) {
    %c0_i32 = arith.constant 0 : i32
    %c0_i32_0 = arith.constant 0 : i32
    %c0_i32_1 = arith.constant 0 : i32
    return %c0_i32, %c0_i32_0 : i32, i32
  }
  func.func @transform_4(%arg0: i32, %arg1: i32) -> (i32, i32) {
    %c0_i32 = arith.constant 0 : i32
    %c0_i32_0 = arith.constant 0 : i32
    %c0_i32_1 = arith.constant 0 : i32
    return %c0_i32, %c0_i32_0 : i32, i32
  }
  func.func @transform_5(%arg0: i32, %arg1: i32) -> (i32, i32) {
    %c0_i32 = arith.constant 0 : i32
    %c0_i32_0 = arith.constant 0 : i32
    %c0_i32_1 = arith.constant 0 : i32
    return %c0_i32, %c0_i32_0 : i32, i32
  }
  func.func @transform_6(%arg0: i32, %arg1: i32) -> (i32, i32) {
    %c0_i32 = arith.constant 0 : i32
    %c0_i32_0 = arith.constant 0 : i32
    %c0_i32_1 = arith.constant 0 : i32
    return %c0_i32, %c0_i32_0 : i32, i32
  }
  func.func @transform_7(%arg0: i32, %arg1: i32) -> (i32, i32, i32, i32) {
    %c0_i32 = arith.constant 0 : i32
    %c0_i32_0 = arith.constant 0 : i32
    %c0_i32_1 = arith.constant 0 : i32
    return %arg0, %arg1, %c0_i32, %c0_i32_0 : i32, i32, i32, i32
  }
}

</mosaic_0001>

<bundles_post_ra>
// kernel: tpu_custom_call.1
= control target key start
LH: loop header
LB: loop body
LE: loop exit
PB: predicated region body
PF: predicated region fallthrough
CT: control target
= control target key end

     0   :  { %s5842_s24 = smov 0   ;;  %s5844_s25 = smov 0   ;;  %s6973_s0 = inlined_call_operand.vmem [shape: f32[2,16,16,4], index: 0, kind: input, shape index: {}]   ;;  %s6974_s1 = inlined_call_operand.vmem [shape: f32[2,16,16,4], index: 1, kind: input, shape index: {}]   ;;  %s6975_s2 = inlined_call_operand.vmem [shape: f32[2,16,16,4], index: 2, kind: input, shape index: {}]   ;;  %s6976_s3 = inlined_call_operand.vmem [shape: bf16[36,4], index: 3, kind: input, shape index: {}]   ;;  %s6977_s4 = inlined_call_operand.vmem [shape: f32[1,4], index: 4, kind: input, shape index: {}]   ;;  %s6978_s5 = inlined_call_operand.vmem [shape: bf16[36,4], index: 5, kind: input, shape index: {}]   ;;  %s6979_s6 = inlined_call_operand.vmem [shape: f32[1,4], index: 6, kind: input, shape index: {}]   ;;  %s6980_s7 = inlined_call_operand.vmem [shape: f32[2,16,16,4], index: 7, kind: output, shape index: {}]  }
   0x1   :  { %s5846_s26 = smov 0   ;;  %s5848_s27 = smov 0  }
   0x2   :  { %s5850_s28 = smov 0  }
   0x3 LB: > { %s26_s29 = sadd.s32 1, %s5782_s26  ;;  %s29_s30 = sadd.s32 1, %s5786_s27  ;;  %s5790_s28 = sphi %s5850_s28, %s17_s28   ;;  %s5786_s27 = sphi %s5848_s27, %s7041_s27   ;;  %s5782_s26 = sphi %s5846_s26, %s7040_s26   ;;  %s5778_s25 = sphi %s5844_s25, %s7039_s25   ;;  %s5774_s24 = sphi %s5842_s24, %s7038_s24  }
   0x4   : > { %p27_p0 = scmp.ge.s32.totalorder %s26_s29, 2  ;;  %p4946_p1 = scmp.ge.s32.totalorder %s5790_s28, 1 }
   0x5   : > { %p327_p2 = scmp.lt.s32.totalorder %s5790_s28, 5 }
   0x6   : > { %s7043_s29 = smov (%p27_p0, %s26_s29), 0  ;;  %s7045_s30 = smov (!%p27_p0, %s29_s30), %s5786_s27 }
   0x7   : > { %p328_p3 = pnand %p4946_p1, %p327_p2  ;;  %p31_p4 = scmp.ge.s32.totalorder %s7045_s30, 2 }
   0x8   : > { %p402_p5 = scmp.lt.s32.totalorder (!%p328_p3), %s5778_s25, 1  ;;  %s4953_s8 = sshll.u32 (!%p328_p3), %s5774_s24, 3  ;;  %vm6982_vm0 = vcmask (!%p328_p3), 24576   ;;  %vm459_vm1 = vsmask.f32 (!%p328_p3), 256  ;;  %vm6983_vm5 = vcmask (!%p328_p3), 27648  }
   0x9   : > { %s7047_s30 = smov (%p31_p4, %s7045_s30), 0  ;;  %331 = sbr.rel (%p328_p3) target bundleno = 1060 (0x424), region = 48 }
   0xa   : > { %p419_p6 = scmp.lt.s32.totalorder (!%p328_p3), %s4953_s8, 15  ;;  %vm5877_vm2 = vmand (!%p328_p3), %vm6982_vm0, %vm459_vm1  ;;  %v467_v1 = vld [vmem:[#allocation2 + $0x18] sm:$0x1] (!%p328_p3)  ;;  %vm497_vm3 = vsmask.f32 (!%p328_p3), 7938  ;;  %s4947_s19 = sshll.u32 (!%p328_p3), %s5774_s24, 2 }
   0xb   : > { %v468_v2 = vsel (!%p328_p3), %vm5877_vm2, 0, %v467_v1  ;;  %vm5885_vm4 = vmand (!%p328_p3), %vm6982_vm0, %vm497_vm3  ;;  %v470_v4 = vld [vmem:[#allocation2 + $0x24] sm:$0x1] (!%p328_p3)  ;;  %v505_v6 = vld [vmem:[#allocation2 + $0x20] sm:$0x1] (!%p328_p3)  ;;  %s4948_s20 = sadd.s32 (!%p328_p3), 4294967295, %s4947_s19 }
   0xc   : > { %469 = vst [vmem:[#allocation2 + $0x18] sm:$0x1] (!%p328_p3), %v468_v2  ;;  %v471_v5 = vsel (!%p328_p3), %vm5877_vm2, 0, %v470_v4  ;;  %v506_v7 = vsel (!%p328_p3), %vm5885_vm4, 0, %v505_v6  ;;  %v473_v8 = vld [vmem:[#allocation2 + $0x30] sm:$0x1] (!%p328_p3)  ;;  %vm5935_vm8 = vmand (!%p328_p3), %vm6983_vm5, %vm497_vm3 }
   0xd   : > { %472 = vst [vmem:[#allocation2 + $0x24] sm:$0x1] (!%p328_p3), %v471_v5  ;;  %507 = vst [vmem:[#allocation2 + $0x20] sm:$0x1] (!%p328_p3), %v506_v7  ;;  %v474_v9 = vsel (!%p328_p3), %vm5877_vm2, 0, %v473_v8  ;;  %p399_p7 = scmp.gt.s32.totalorder (!%p328_p3), %s4948_s20, 0 }
   0xe   : > { %v508_v10 = vld [vmem:[#allocation2 + $0x2c] sm:$0x1] (!%p328_p3)  ;;  %475 = vst [vmem:[#allocation2 + $0x30] sm:$0x1] (!%p328_p3), %v474_v9  ;;  %v502_v14 = vld [vmem:[#allocation2 + $0x14] sm:$0x1] (!%p328_p3) }
   0xf   : > { %v509_v11 = vsel (!%p328_p3), %vm5885_vm4, 0, %v508_v10  ;;  %v464_v12 = vld [vmem:[#allocation2 + $0xc] sm:$0x1] (!%p328_p3)  ;;  %v503_v15 = vsel (!%p328_p3), %vm5885_vm4, 0, %v502_v14  ;;  %v461_v16 = vld [vmem:[#allocation2] sm:$0x1] (!%p328_p3) }
  0x10   : > { %s7049_s25 = smov (!%p402_p5, %s5778_s25), 1  ;;  %s7051_s8 = smov (!%p419_p6, %s4953_s8), 15  ;;  %510 = vst [vmem:[#allocation2 + $0x2c] sm:$0x1] %v509_v11  ;;  %v465_v13 = vsel %vm5877_vm2, 0, %v464_v12  ;;  %v462_v21 = vsel %vm5877_vm2, 0, %v461_v16 }
  0x11   : > { %s5891_s9 = sshll.u32 %s7049_s25, 5  ;;  %s4954_s10 = sshll.u32 %s7051_s8, 1  ;;  %466 = vst [vmem:[#allocation2 + $0xc] sm:$0x1] %v465_v13  ;;  %v499_v17 = vld [vmem:[#allocation2 + $0x8] sm:$0x1] }
  0x12   : > { %s423_s11 = sadd.s32 %s4954_s10, %s5891_s9  ;;  %504 = vst [vmem:[#allocation2 + $0x14] sm:$0x1] %v503_v15  ;;  %463 = vst [vmem:[#allocation2] sm:$0x1] %v462_v21  ;;  %vm623_vm6 = vsmask.f32 4368 }
  0x13   : > { %s4956_s12 = sshll.u32 %s423_s11, 3  ;;  %v500_v29 = vsel %vm5885_vm4, 0, %v499_v17  ;;  %vm5929_vm7 = vmor %vm459_vm1, %vm623_vm6  ;;  %v907_v42 = vld [vmem:[#allocation2 + $0x18] sm:$0xf]  ;;  %s7053_s20 = smov (!%p399_p7, %s4948_s20), 0  ;;  %vm1507_vm9 = vcmask 1046528  }
  0x14   : > { %s5905_s15 = scalar_lea.vmem %s6974_s1, %s4956_s12  ;;  %s5910_s18 = scalar_lea.vmem %s6980_s7, %s4956_s12  ;;  %501 = vst [vmem:[#allocation2 + $0x8] sm:$0x1] %v500_v29  ;;  %v911_v47 = vld [vmem:[#allocation2 + $0x20] sm:$0x1]  ;;  %v914_v54 = vld [vmem:[#allocation2 + $0x24] sm:$0xf] }
  0x15   : > { %v682_v18 = vld [vmem:[%s5905_s15] sm:$0xff]  ;;  %v683_v19 = vld [vmem:[%s5905_s15 + $0x8] sm:$0xff]  ;;  %v684_v20 = vld [vmem:[%s5905_s15 + $0x10] sm:$0xff]  ;;  %s4949_s21 = sshll.u32 %s7053_s20, 1  ;;  %p607_p9 = scmp.gt.s32.totalorder %s5774_s24, 0  ;;  %vm1114_vm12 = vcmask 31744  }
  0x16   : > { %v5316_v22 = vpack.c.bf16 %v682_v18, %v682_v18  ;;  %v5317_v23 = vpack.c.bf16 %v683_v19, %v683_v19  ;;  %v685_v24 = vld [vmem:[%s5905_s15 + $0x18] sm:$0xff]  ;;  %v5318_v25 = vpack.c.bf16 %v684_v20, %v684_v20  ;;  %v686_v26 = vld [vmem:[%s5905_s15 + $0x20] sm:$0xff]  ;;  %v687_v34 = vld [vmem:[%s5905_s15 + $0x28] sm:$0xff]  ;;  %p404_p8 = scmp.lt.s32.totalorder %s4949_s21, 15  ;;  %s5792_s25 = smov 24   ;;  %vm1386_vm13 = vcmask 64544  }
  0x17   : > { %v5319_v27 = vpack.c.bf16 %v685_v24, %v685_v24  ;;  %v5320_v28 = vpack.c.bf16 %v686_v26, %v686_v26  ;;  %v5321_v48 = vpack.c.bf16 %v687_v34, %v687_v34  ;;  %v921_v59 = vld [vmem:[#allocation2 + $0x30] sm:$0xf]  ;;  %v918_v60 = vld [vmem:[#allocation2 + $0x2c] sm:$0x1]  ;;  %v511_v2 = vld [vmem:[#allocation2 + $0x38] sm:$0x1] }
  0x18   : > { %v747_v30 = vshrl.u32 %v5316_v22, 16  ;;  %v750_v31 = vshll.u32 %v5316_v22, 16  ;;  %v755_v32 = vshrl.u32 %v5317_v23, 16  ;;  %v758_v33 = vshll.u32 %v5317_v23, 16  ;;  %v476_v4 = vld [vmem:[#allocation2 + $0x3c] sm:$0x1] }
  0x19   : > { %v764_v35 = vshrl.u32 %v5318_v25, 16  ;;  %v767_v36 = vshll.u32 %v5318_v25, 16  ;;  %v772_v37 = vshrl.u32 %v5319_v27, 16  ;;  %v775_v38 = vshll.u32 %v5319_v27, 16  ;;  %v688_v9 = vld [vmem:[%s5905_s15 + $0x30] sm:$0xff]  ;;  %v689_v10 = vld [vmem:[%s5905_s15 + $0x38] sm:$0xff] }
  0x1a   : > { %v749_v40 = vrot.slane %v747_v30, 7  ;;  %v757_v41 = vrot.slane %v755_v32, 7  ;;  %v781_v43 = vshrl.u32 %v5320_v28, 16  ;;  %v784_v49 = vshll.u32 %v5320_v28, 16  ;;  %v514_v13 = vld [vmem:[#allocation2 + $0x44] sm:$0x1] }
  0x1b   : > { %v766_v45 = vrot.slane %v764_v35, 7  ;;  %v774_v46 = vrot.slane %v772_v37, 7  ;;  %v789_v7 = vshrl.u32 %v5321_v48, 16  ;;  %v792_v8 = vshll.u32 %v5321_v48, 16  ;;  %v479_v14 = vld [vmem:[#allocation2 + $0x48] sm:$0x1] }
  0x1c   : > { %v752_v50 = vor.u32 %v750_v31, %v749_v40  ;;  %v753_v51 = vrot.slane %v749_v40, 4  ;;  %v760_v52 = vor.u32 %v758_v33, %v757_v41  ;;  %v762_v53 = vrot.slane %v757_v41, 4  ;;  %s7055_s21 = smov (!%p404_p8, %s4949_s21), 15  ;;  %s5793_s8 = smov 12  }
  0x1d   : > { %v769_v55 = vor.u32 %v767_v36, %v766_v45  ;;  %v770_v56 = vrot.slane %v766_v45, 4  ;;  %v777_v57 = vor.u32 %v775_v38, %v774_v46  ;;  %v779_v58 = vrot.slane %v774_v46, 4  ;;  %s5978_s22 = scalar_select %p607_p9, 1, 0 }
  0x1e   : > { %v761_v61 = vsel %vm5929_vm7, %v753_v51, %v760_v52  ;;  %v908_v62 = vsel %vm5935_vm8, %v752_v50, %v907_v42  ;;  %v912_v63 = vsel %vm5877_vm2, %v762_v53, %v911_v47  ;;  %v783_v1 = vrot.slane %v781_v43, 7  ;;  %s4950_s23 = sshll.u32 %s7055_s21, 1  ;;  %s5794_s12 = smov 32  }
  0x1f   : > { %909 = vst [vmem:[#allocation2 + $0x18] sm:$0xf] %v908_v62  ;;  %910 = vst.msk [vmem:[#allocation2 + $0x1c] sm:$0xf] %vm6983_vm5, %v761_v61  ;;  %v778_v5 = vsel %vm5929_vm7, %v770_v56, %v777_v57  ;;  %v915_v6 = vsel %vm5935_vm8, %v769_v55, %v914_v54  ;;  %v919_v12 = vsel %vm5877_vm2, %v779_v58, %v918_v60  ;;  %v5959_v16 = vrot.slane %v789_v7, 7  ;;  %s5995_s10 = sadd.s32 %s5891_s9, %s4950_s23  ;;  %s5795_s13 = smov 20  }
  0x20   : > { %913 = vst [vmem:[#allocation2 + $0x20] sm:$0x1] %v912_v63  ;;  %916 = vst [vmem:[#allocation2 + $0x24] sm:$0xf] %v915_v6  ;;  %v786_v11 = vor.u32 %v784_v49, %v783_v1  ;;  %v787_v15 = vrot.slane %v783_v1, 4  ;;  %v512_v17 = vsel %vm5885_vm4, 0, %v511_v2  ;;  %v5969_v20 = vpack.c.bf16 %v688_v9, %v688_v9 }
  0x21   : > { %917 = vst.msk [vmem:[#allocation2 + $0x28] sm:$0xf] %vm6983_vm5, %v778_v5  ;;  %920 = vst [vmem:[#allocation2 + $0x2c] sm:$0x1] %v919_v12  ;;  %v477_v18 = vsel %vm5877_vm2, 0, %v476_v4  ;;  %v5323_v21 = vpack.c.bf16 %v689_v10, %v689_v10  ;;  %v515_v22 = vsel %vm5885_vm4, 0, %v514_v13  ;;  %v794_v23 = vor.u32 %v792_v8, %v5959_v16 }
  0x22   : > { %v922_v19 = vsel %vm5935_vm8, %v786_v11, %v921_v59  ;;  %513 = vst [vmem:[#allocation2 + $0x38] sm:$0x1] %v512_v17  ;;  %478 = vst [vmem:[#allocation2 + $0x3c] sm:$0x1] %v477_v18  ;;  %v480_v24 = vsel %vm5877_vm2, 0, %v479_v14  ;;  %v798_v25 = vshrl.u32 %v5969_v20, 16  ;;  %v609_v7 = vstv %s5978_s22 }
  0x23   : > { %923 = vst [vmem:[#allocation2 + $0x30] sm:$0xf] %v922_v19  ;;  %516 = vst [vmem:[#allocation2 + $0x44] sm:$0x1] %v515_v22  ;;  %v806_v26 = vshrl.u32 %v5323_v21, 16  ;;  %v795_v27 = vsel %vm5929_vm7, %v787_v15, %v794_v23  ;;  %v809_v28 = vshll.u32 %v5323_v21, 16 }
  0x24   : > { %481 = vst [vmem:[#allocation2 + $0x48] sm:$0x1] %v480_v24  ;;  %924 = vst.msk [vmem:[#allocation2 + $0x34] sm:$0xf] %vm6983_vm5, %v795_v27  ;;  %v5985_v30 = vrot.slane %v798_v25, 7  ;;  %v796_v36 = vrot.slane %v5959_v16, 4 }
  0x25   : > { %v5987_v32 = vrot.slane %v806_v26, 7  ;;  %s4952_s11 = sshll.u32 %s5995_s10, 3  ;;  %vm1235_vm10 = vsmask.f32 7424  ;;  %vm6012_vm11 = vcmp.eq.s32.totalorder %v609_v7, 1  ;;  %s5796_s14 = smov 8  }
  0x26   : > { %v5476_v29 = vld [vmem:[#allocation2 + $0x18] sm:$0xff]   ;;  %v804_v34 = vrot.slane %v5985_v30, 4  ;;  %s410_s20 = scalar_lea.vmem %s6973_s0, %s4952_s11  ;;  %s5797_s21 = smov 16   ;;  %v675_v17 = vld [vmem:[#allocation2 + $0xc] sm:$0xf]  ;;  %vm1568_vm15 = vcmask 97344  }
  0x27   : > { %v5477_v31 = vld [vmem:[#allocation2 + $0x18] sm:$0xff]   ;;  %2213 = vrot.lane.b32.xlu0 %v5476_v29, %s5792_s25  ;;  %v811_v37 = vor.u32 %v809_v28, %v5987_v32  ;;  %v5481_v40 = vld [vmem:[#allocation2 + $0x20] ss:$0 sps:$4 sm:$0x11]   ;;  %s5798_s22 = smov 28   ;;  %s5799_s23 = smov 4  }
  0x28   : > { %v5478_v33 = vld [vmem:[#allocation2 + $0x24] sm:$0xff]   ;;  %1652 = vrot.lane.b32.xlu1 %v5477_v31, %s5793_s8  ;;  %v5480_v38 = vld [vmem:[#allocation2 + $0x18] sm:$0xfe]   ;;  %v2636_v45 = vrot.slane %v5481_v40, 1  ;;  %s6170_s10 = sadd.s32 4, %s4947_s19  ;;  %p963_p12 = scmp.lt.s32.totalorder %s5774_s24, 1 }
  0x29   : > { %v5479_v35 = vld [vmem:[#allocation2 + $0x24] sm:$0xff]   ;;  %v5491_v41 = vld [vmem:[#allocation2 + $0x18] sm:$0xff]   ;;  %v812_v42 = vsel %vm5929_vm7, %v804_v34, %v811_v37  ;;  %v2635_v43 = vrot.slane %v5480_v38, 1  ;;  %v5484_v49 = vld [vmem:[#allocation2 + $0x2c] ss:$0 sps:$4 sm:$0x11]  }
  0x2a   : > { %931 = vst.msk [vmem:[#allocation2 + $0x40] sm:$0xf] %vm6983_vm5, %v812_v42  ;;  %v5483_v47 = vld [vmem:[#allocation2 + $0x24] sm:$0xfe]   ;;  %v1816_v50 = vshll.u32 %v5491_v41, 16  ;;  %v1814_v53 = vshrl.u32 %v5491_v41, 16 }
  0x2b   : > { %1654 = vrot.lane.b32.xlu0 %v5478_v33, %s5793_s8  ;;  %v5482_v46 = vld [vmem:[#allocation2 + $0x30] sm:$0xff]   ;;  %v2637_v48 = vsel %vm1507_vm9, %v2635_v43, %v2636_v45  ;;  %v2638_v51 = vrot.slane %v5483_v47, 1  ;;  %v5485_v52 = vld [vmem:[#allocation2 + $0x18] sm:$0xfe]   ;;  %v2639_v54 = vrot.slane %v5484_v49, 1  ;;  %v5495_v21 = vld [vmem:[#allocation2 + $0x24] sm:$0xff]  }
  0x2c   : > { %2215 = vrot.lane.b32.xlu1 %v5479_v35, %s5792_s25  ;;  %v5486_v55 = vld [vmem:[#allocation2 + $0x20] ss:$0 sps:$4 sm:$0x11]   ;;  %v2075_v56 = vrot.slane %v5485_v52, 1  ;;  %v1818_v57 = vrot.slane %v1816_v50, 1  ;;  %v5493_v58 = vld [vmem:[#allocation2 + $0x18] sm:$0xff]  }
  0x2d   : > { %v2640_v59 = vsel %vm1507_vm9, %v2638_v51, %v2639_v54  ;;  %v2076_v60 = vrot.slane %v5486_v55, 1  ;;  %v5487_v61 = vld [vmem:[#allocation2 + $0x24] sm:$0xfe]   ;;  %v5488_v62 = vld [vmem:[#allocation2 + $0x2c] ss:$0 sps:$4 sm:$0x11]  }
  0x2e   : > { %v1517_v1 = vrot.slane %v5487_v61, 1  ;;  %v1518_v2 = vrot.slane %v5488_v62, 1  ;;  %v5489_v4 = vld [vmem:[#allocation2 + $0x18] sm:$0xfe]   ;;  %v2365_v6 = vshrl.u32 %v5493_v58, 16  ;;  %v2367_v12 = vshll.u32 %v5493_v58, 16 }
  0x2f   : > { %2665 = vrot.lane.b32.xlu0 %v2637_v48, %s5794_s12  ;;  %v2077_v63 = vsel %vm1507_vm9, %v2075_v56, %v2076_v60  ;;  %v5490_v5 = vld [vmem:[#allocation2 + $0x20] ss:$0 sps:$4 sm:$0x11]   ;;  %v1514_v9 = vrot.slane %v5489_v4, 1  ;;  %v1819_v13 = vor.u32 %v1818_v57, %v1814_v53  ;;  %v2377_v26 = vshrl.u32 %v5495_v21, 16  ;;  %v5497_v28 = vld [vmem:[#allocation2 + $0x24] sm:$0xff]  }
  0x30   : > { %1656 = vrot.lane.b32.xlu1 %v5482_v46, %s5793_s8  ;;  %v1519_v8 = vsel %vm1507_vm9, %v1517_v1, %v1518_v2  ;;  %v5492_v10 = vld [vmem:[#allocation2 + $0x20] ss:$0 sps:$4 sm:$0x11]   ;;  %v1515_v11 = vrot.slane %v5490_v5, 1  ;;  %v2369_v19 = vrot.slane %v2367_v12, 1  ;;  %v2379_v27 = vshll.u32 %v5495_v21, 16 }
  0x31   : > { %v1821_v14 = vshll.u32 %v5492_v10, 16  ;;  %v5494_v15 = vld [vmem:[#allocation2 + $0x20] ss:$0 sps:$4 sm:$0x11]   ;;  %v5499_v33 = vld [vmem:[#allocation2 + $0x18] sm:$0xff]   ;;  %v1826_v38 = vshrl.u32 %v5497_v28, 16 }
  0x32   : > { %v1516_v18 = vsel %vm1507_vm9, %v1514_v9, %v1515_v11  ;;  %v2372_v23 = vshll.u32 %v5494_v15, 16  ;;  %v2370_v24 = vor.u32 %v2369_v19, %v2365_v6  ;;  %v5496_v25 = vld [vmem:[#allocation2 + $0x2c] ss:$0 sps:$4 sm:$0x11]   ;;  %v2381_v34 = vrot.slane %v2379_v27, 1  ;;  %v597_v48 = vld [vmem:[%s410_s20 + $0x10] sm:$0xff] }
  0x33   : > { %2667 = vrot.lane.b32.xlu0 %v2640_v59, %s5794_s12  ;;  %v1823_v22 = vrot.slane %v1821_v14, 1  ;;  %v2384_v35 = vshll.u32 %v5496_v25, 16  ;;  %v5498_v37 = vld [vmem:[#allocation2 + $0x2c] ss:$0 sps:$4 sm:$0x11]   ;;  %v1828_v41 = vshll.u32 %v5497_v28, 16 }
  0x34   : > { %2104 = vrot.lane.b32.xlu1 %v2077_v63, %s5795_s13  ;;  %v2374_v31 = vrot.slane %v2372_v23, 1  ;;  %v1261_v42 = vshrl.u32 %v5499_v33, 16  ;;  %v2382_v43 = vor.u32 %v2381_v34, %v2377_v26  ;;  %v1833_v46 = vshll.u32 %v5498_v37, 16  ;;  %v5500_v50 = vld [vmem:[#allocation2 + $0x20] ss:$0 sps:$4 sm:$0x11]  }
  0x35   : > { %v1824_v29 = vsel %vm1235_vm10, %v1819_v13, %v1823_v22  ;;  %v2386_v45 = vrot.slane %v2384_v35, 1  ;;  %v1263_v47 = vshll.u32 %v5499_v33, 16  ;;  %v1830_v49 = vrot.slane %v1828_v41, 1  ;;  %v598_v51 = vld [vmem:[%s410_s20 + $0x18] sm:$0xff]  ;;  %v595_v52 = vld [vmem:[%s410_s20] sm:$0xff]  ;;  %v596_v57 = vld [vmem:[%s410_s20 + $0x8] sm:$0xff] }
  0x36   : > { %v2375_v40 = vsel %vm1235_vm10, %v2370_v24, %v2374_v31  ;;  %v1835_v54 = vrot.slane %v1833_v46, 1  ;;  %v600_v56 = vpack.c.bf16 %v598_v51, %v597_v48  ;;  %v5502_v58 = vld [vmem:[#allocation2 + $0x24] sm:$0xff]   ;;  %v1268_v60 = vshll.u32 %v5500_v50, 16  ;;  %v5503_v1 = vld [vmem:[#allocation2 + $0x2c] ss:$0 sps:$4 sm:$0x11]  }
  0x37   : > { %1542 = vrot.lane.b32.xlu0 %v1516_v18, %s5796_s14  ;;  %v2387_v53 = vsel %vm1235_vm10, %v2382_v43, %v2386_v45  ;;  %v1265_v55 = vrot.slane %v1263_v47, 1  ;;  %v1831_v59 = vor.u32 %v1830_v49, %v1826_v38  ;;  %v599_v61 = vpack.c.bf16 %v596_v57, %v595_v52  ;;  %v925_v9 = vld [vmem:[#allocation2 + $0x38] sm:$0x1]  ;;  %v679_v25 = vld [vmem:[#allocation2 + $0x14] sm:$0x1]  ;;  %v690_v28 = vld [vmem:[%s5905_s15 + $0x40] sm:$0xff] }
  0x38   : > { %1544 = vrot.lane.b32.xlu1 %v1519_v8, %s5796_s14  ;;  %v612_v63 = vsel %vm6012_vm11, %v600_v56, 0  ;;  %v1273_v2 = vshrl.u32 %v5502_v58, 16  ;;  %v1275_v4 = vshll.u32 %v5502_v58, 16  ;;  %v1270_v6 = vrot.slane %v1268_v60, 1  ;;  %v6044_v41 = vld [vmem:[#allocation2 + $0x30] sm:$0xff]   ;;  %p429_p10 = scmp.lt.s32.totalorder %s6170_s10, 7 }
  0x39   : > { %v1266_v62 = vor.u32 %v1265_v55, %v1261_v42  ;;  %v1836_v5 = vsel %vm1235_vm10, %v1831_v59, %v1835_v54  ;;  %v4968_v7 = vcombine.low %v612_v63, %v612_v63  ;;  %v4969_v8 = vcombine.high %v612_v63, %v612_v63  ;;  %v667_v46 = vld [vmem:[#allocation2] sm:$0xf]  ;;  %v672_v50 = vld [vmem:[#allocation2 + $0x8] sm:$0x1]  ;;  %v6063_v59 = vld [vmem:[#allocation2 + $0x30] sm:$0xfe]  }
  0x3a   : > { %v611_v10 = vsel %vm6012_vm11, %v599_v61, 0  ;;  %v1277_v11 = vrot.slane %v1275_v4, 1  ;;  %v1280_v12 = vshll.u32 %v5503_v1, 16  ;;  %v926_v13 = vsel %vm5877_vm2, %v796_v36, %v925_v9  ;;  %v6056_v51 = vld [vmem:[#allocation2 + $0x24] sm:$0xfe]   ;;  %s7057_s10 = smov (!%p429_p10, %s6170_s10), 7 }
  0x3b   : > { %2484 = vrot.lane.b32.xlu0 %v2375_v40, %s5798_s22  ;;  %v1271_v14 = vsel %vm1235_vm10, %v1266_v62, %v1270_v6  ;;  %v643_v15 = vshrl.u32 %v4968_v7, 16  ;;  %v646_v18 = vshll.u32 %v4968_v7, 16  ;;  %v651_v19 = vshrl.u32 %v4969_v8, 16  ;;  %927 = vst [vmem:[#allocation2 + $0x38] sm:$0x1] %v926_v13  ;;  %s4958_s19 = sshll.u32 %s7057_s10, 1 }
  0x3c   : > { %1923 = vrot.lane.b32.xlu1 %v1824_v29, %s5797_s21  ;;  %v654_v21 = vshll.u32 %v4969_v8, 16  ;;  %v4966_v22 = vcombine.low %v611_v10, %v611_v10  ;;  %v4967_v23 = vcombine.high %v611_v10, %v611_v10  ;;  %v1278_v24 = vor.u32 %v1277_v11, %v1273_v2  ;;  %v6061_v58 = vld [vmem:[#allocation2 + $0x2c] ss:$0 sps:$4 sm:$0x11]   ;;  %v928_v1 = vld [vmem:[#allocation2 + $0x3c] sm:$0xf] }
  0x3d   : > { %v645_v16 = vrot.slane %v643_v15, 7  ;;  %v653_v26 = vrot.slane %v651_v19, 7  ;;  %v1282_v27 = vrot.slane %v1280_v12, 1  ;;  %v801_v36 = vshll.u32 %v5969_v20, 16  ;;  %v932_v11 = vld [vmem:[#allocation2 + $0x44] sm:$0x1] }
  0x3e   : > { %v629_v29 = vshll.u32 %v4966_v22, 16  ;;  %v626_v31 = vshrl.u32 %v4966_v22, 16  ;;  %v634_v33 = vshrl.u32 %v4967_v23, 16  ;;  %v637_v34 = vshll.u32 %v4967_v23, 16  ;;  %v6087_v23 = vld [vmem:[#allocation2 + $0x30] sm:$0xff]   ;;  %p6281_p11 = scmp.lt.s32.totalorder %s4958_s19, 15 }
  0x3f   : > { %1925 = vrot.lane.b32.xlu0 %v1836_v5, %s5797_s21  ;;  %v648_v35 = vor.u32 %v646_v18, %v645_v16  ;;  %v649_v37 = vrot.slane %v645_v16, 4  ;;  %v656_v38 = vor.u32 %v654_v21, %v653_v26  ;;  %v658_v40 = vrot.slane %v653_v26, 4  ;;  %s964_s11 = scalar_select %p963_p12, 1, 0 }
  0x40   : > { %2486 = vrot.lane.b32.xlu1 %v2387_v53, %s5798_s22  ;;  %v1283_v42 = vsel %vm1235_vm10, %v1278_v24, %v1282_v27  ;;  %v628_v43 = vrot.slane %v626_v31, 7  ;;  %v636_v45 = vrot.slane %v634_v33, 7  ;;  %v6047_v47 = vpack.c.bf16 %v690_v28, %v690_v28  ;;  %s7059_s19 = smov (!%p6281_p11, %s4958_s19), 15  ;;  %p5174_p13 = scmp.ne.s32.totalorder %s5774_s24, 0 }
  0x41   : > { %v657_v20 = vsel %vm5929_vm7, %v649_v37, %v656_v38  ;;  %v676_v48 = vsel %vm5935_vm8, %v648_v35, %v675_v17  ;;  %v680_v49 = vsel %vm5877_vm2, %v658_v40, %v679_v25  ;;  %v803_v52 = vor.u32 %v801_v36, %v5985_v30  ;;  %s4959_s16 = sshll.u32 %s7059_s19, 1 }
  0x42   : > { %677 = vst [vmem:[#allocation2 + $0xc] sm:$0xf] %v676_v48  ;;  %678 = vst.msk [vmem:[#allocation2 + $0x10] sm:$0xf] %vm6983_vm5, %v657_v20  ;;  %v631_v53 = vor.u32 %v629_v29, %v628_v43  ;;  %v632_v54 = vrot.slane %v628_v43, 4  ;;  %v639_v55 = vor.u32 %v637_v34, %v636_v45  ;;  %v641_v56 = vrot.slane %v636_v45, 4  ;;  %s438_s17 = sadd.s32 %s4959_s16, %s5891_s9 }
  0x43   : > { %681 = vst [vmem:[#allocation2 + $0x14] sm:$0x1] %v680_v49  ;;  %v1840_v57 = vshll.u32 %v6044_v41, 16  ;;  %v6071_v62 = vld [vmem:[#allocation2 + $0x38] ss:$0 sps:$4 sm:$0x11]   ;;  %v929_v2 = vsel %vm5935_vm8, %v803_v52, %v928_v1 }
  0x44   : > { %1360 = vrot.lane.b32.xlu1 %v1271_v14, %s5799_s23  ;;  %v640_v60 = vsel %vm5929_vm7, %v632_v54, %v639_v55  ;;  %v668_v30 = vsel %vm5935_vm8, %v631_v53, %v667_v46  ;;  %v673_v61 = vsel %vm5877_vm2, %v641_v56, %v672_v50  ;;  %v813_v63 = vrot.slane %v5987_v32, 4  ;;  %930 = vst [vmem:[#allocation2 + $0x3c] sm:$0xf] %v929_v2  ;;  %v5521_v54 = vld [vmem:[#allocation2 + $0x38] ss:$0 sps:$4 sm:$0x11]  }
  0x45   : > { %669 = vst [vmem:[#allocation2] sm:$0xf] %v668_v30  ;;  %671 = vst.msk [vmem:[#allocation2 + $0x4] sm:$0xf] %vm6983_vm5, %v640_v60  ;;  %v815_v4 = vshrl.u32 %v6047_v47, 16  ;;  %v1838_v5 = vshrl.u32 %v6044_v41, 16 }
  0x46   : > { %674 = vst [vmem:[#allocation2 + $0x8] sm:$0x1] %v673_v61  ;;  %v1842_v6 = vrot.slane %v1840_v57, 1  ;;  %v2078_v7 = vrot.slane %v6056_v51, 1  ;;  %v818_v8 = vshll.u32 %v6047_v47, 16  ;;  %v2079_v9 = vrot.slane %v6061_v58, 1 }
  0x47   : > { %v2081_v10 = vrot.slane %v6063_v59, 1  ;;  %v1845_v12 = vshll.u32 %v6071_v62, 16  ;;  %v933_v13 = vsel %vm5877_vm2, %v813_v63, %v932_v11  ;;  %v2391_v43 = vshll.u32 %v6087_v23, 16  ;;  %v6096_v57 = vld [vmem:[#allocation2 + $0x30] sm:$0xff]   ;;  %s4961_s20 = sshll.u32 %s438_s17, 3 }
  0x48   : > { %1362 = vrot.lane.b32.xlu1 %v1283_v42, %s5799_s23  ;;  %934 = vst [vmem:[#allocation2 + $0x44] sm:$0x1] %v933_v13  ;;  %v5525_v42 = vld [vmem:[#allocation2 + $0x38] ss:$0 sps:$4 sm:$0x11]   ;;  %v1843_v62 = vor.u32 %v1842_v6, %v1838_v5  ;;  %v2389_v5 = vshrl.u32 %v6087_v23, 16  ;;  %v2080_v23 = vsel %vm1507_vm9, %v2078_v7, %v2079_v9  ;;  %s6346_s19 = scalar_lea.vmem %s6975_s2, %s4961_s20 }
  0x49   : > { %v5501_v32 = vld [vmem:[#allocation2 + $0xc] sm:$0xff]   ;;  %v1847_v63 = vrot.slane %v1845_v12, 1  ;;  %v2396_v13 = vshll.u32 %v5525_v42, 16  ;;  %v2393_v6 = vrot.slane %v2391_v43, 1  ;;  %v1285_v12 = vshrl.u32 %v6096_v57, 16 }
  0x4a   : > { %1650 = vrot.lane.b32.xlu0 %v5501_v32, %s5793_s8  ;;  %v5504_v14 = vld [vmem:[#allocation2 + $0xc] sm:$0xfe]   ;;  %v5505_v15 = vld [vmem:[#allocation2 + $0x14] ss:$0 sps:$4 sm:$0x11]   ;;  %vm1680_vm1 = vcmask 130144  }
  0x4b   : > { %v5510_v18 = vld [vmem:[#allocation2 + $0xc] sm:$0xff]   ;;  %v2072_v19 = vrot.slane %v5504_v14, 1  ;;  %v2073_v21 = vrot.slane %v5505_v15, 1  ;;  %v5511_v38 = vld [vmem:[#allocation2 + $0x14] ss:$0 sps:$4 sm:$0x11]   ;;  %v2394_v7 = vor.u32 %v2393_v6, %v2389_v5 }
  0x4c   : > { %v5506_v17 = vld [vmem:[#allocation2] sm:$0xff]   ;;  %v5514_v36 = vld [vmem:[#allocation2 + $0xc] sm:$0xff]   ;;  %v1249_v29 = vshrl.u32 %v5510_v18, 16  ;;  %v1251_v35 = vshll.u32 %v5510_v18, 16  ;;  %v1256_v46 = vshll.u32 %v5511_v38, 16  ;;  %vm1951_vm3 = vcmask 162944  }
  0x4d   : > { %v5507_v22 = vld [vmem:[#allocation2 + $0x8] ss:$0 sps:$4 sm:$0x11]   ;;  %v2074_v24 = vsel %vm1507_vm9, %v2072_v19, %v2073_v21  ;;  %v1237_v25 = vshrl.u32 %v5506_v17, 16  ;;  %v1239_v16 = vshll.u32 %v5506_v17, 16  ;;  %v1804_v48 = vshll.u32 %v5514_v36, 16 }
  0x4e   : > { %v1244_v26 = vshll.u32 %v5507_v22, 16  ;;  %v5508_v27 = vld [vmem:[#allocation2] sm:$0xfe]   ;;  %2102 = vrot.lane.b32.xlu0 %v2074_v24, %s5795_s13  ;;  %v5509_v28 = vld [vmem:[#allocation2 + $0x8] ss:$0 sps:$4 sm:$0x11]   ;;  %v1848_v19 = vsel %vm1235_vm10, %v1843_v62, %v1847_v63 }
  0x4f   : > { %v1241_v31 = vrot.slane %v1239_v16, 1  ;;  %v1508_v34 = vrot.slane %v5508_v27, 1  ;;  %v1509_v37 = vrot.slane %v5509_v28, 1  ;;  %v1253_v41 = vrot.slane %v1251_v35, 1  ;;  %v5512_v20 = vld [vmem:[#allocation2 + $0xc] sm:$0xfe]  }
  0x50   : > { %v1246_v33 = vrot.slane %v1244_v26, 1  ;;  %v5513_v52 = vld [vmem:[#allocation2 + $0x14] ss:$0 sps:$4 sm:$0x11]   ;;  %v1802_v53 = vshrl.u32 %v5514_v36, 16  ;;  %v1258_v55 = vrot.slane %v1256_v46, 1 }
  0x51   : > { %v1242_v40 = vor.u32 %v1241_v31, %v1237_v25  ;;  %v1510_v45 = vsel %vm1507_vm9, %v1508_v34, %v1509_v37  ;;  %v1254_v50 = vor.u32 %v1253_v41, %v1249_v29  ;;  %v1511_v56 = vrot.slane %v5512_v20, 1  ;;  %v5515_v30 = vld [vmem:[#allocation2 + $0x14] ss:$0 sps:$4 sm:$0x11]   ;;  %v5526_v14 = vld [vmem:[#allocation2 + $0x3c] sm:$0xff]   ;;  %v691_v31 = vld [vmem:[%s5905_s15 + $0x48] sm:$0xff] }
  0x52   : > { %1538 = vrot.lane.b32.xlu1 %v1510_v45, %s5796_s14  ;;  %v1512_v60 = vrot.slane %v5513_v52, 1  ;;  %v1806_v61 = vrot.slane %v1804_v48, 1  ;;  %v1809_v32 = vshll.u32 %v5515_v30, 16  ;;  %v5527_v15 = vld [vmem:[#allocation2 + $0x44] ss:$0 sps:$4 sm:$0x11]   ;;  %v5325_v43 = vpack.c.bf16 %v691_v31, %v691_v31 }
  0x53   : > { %v1247_v49 = vsel %vm1235_vm10, %v1242_v40, %v1246_v33  ;;  %v1259_v1 = vsel %vm1235_vm10, %v1254_v50, %v1258_v55  ;;  %v2082_v21 = vrot.slane %v5521_v54, 1  ;;  %v2403_v17 = vshll.u32 %v5526_v14, 16  ;;  %v5534_v27 = vld [vmem:[#allocation2 + $0x3c] sm:$0xff]   ;;  %v5531_v28 = vld [vmem:[#allocation2 + $0x38] ss:$0 sps:$4 sm:$0x11]  }
  0x54   : > { %1356 = vrot.lane.b32.xlu0 %v1247_v49, %s5799_s23  ;;  %v1513_v2 = vsel %vm1507_vm9, %v1511_v56, %v1512_v60  ;;  %v1807_v11 = vor.u32 %v1806_v61, %v1802_v53  ;;  %v1811_v18 = vrot.slane %v1809_v32, 1  ;;  %v1287_v22 = vshll.u32 %v6096_v57, 16  ;;  %v5522_v33 = vld [vmem:[#allocation2 + $0x30] sm:$0xff]   ;;  %v5523_v34 = vld [vmem:[#allocation2 + $0x3c] sm:$0xff]  }
  0x55   : > { %v2398_v25 = vrot.slane %v2396_v13, 1  ;;  %v2401_v16 = vshrl.u32 %v5526_v14, 16  ;;  %v2408_v26 = vshll.u32 %v5527_v15, 16  ;;  %v2405_v36 = vrot.slane %v2403_v17, 1  ;;  %v5528_v35 = vld [vmem:[#allocation2 + $0x30] sm:$0xfe]  }
  0x56   : > { %1540 = vrot.lane.b32.xlu1 %v1513_v2, %s5796_s14  ;;  %v1812_v24 = vsel %vm1235_vm10, %v1807_v11, %v1811_v18  ;;  %v2083_v29 = vsel %vm1507_vm9, %v2081_v10, %v2082_v21  ;;  %v5529_v37 = vld [vmem:[#allocation2 + $0x38] ss:$0 sps:$4 sm:$0x11]   ;;  %v1292_v38 = vshll.u32 %v5531_v28, 16  ;;  %v1289_v58 = vrot.slane %v1287_v22, 1  ;;  %v692_v10 = vld [vmem:[%s5905_s15 + $0x50] sm:$0xff] }
  0x57   : > { %v5532_v51 = vld [vmem:[#allocation2 + $0x3c] sm:$0xfe]   ;;  %v5535_v40 = vld [vmem:[#allocation2 + $0x44] ss:$0 sps:$4 sm:$0x11]   ;;  %v2406_v9 = vor.u32 %v2405_v36, %v2401_v16  ;;  %v2410_v59 = vrot.slane %v2408_v26, 1  ;;  %v2399_v57 = vsel %vm1235_vm10, %v2394_v7, %v2398_v25  ;;  %v5326_v32 = vpack.c.bf16 %v692_v10, %v692_v10 }
  0x58   : > { %1358 = vrot.lane.b32.xlu0 %v1259_v1, %s5799_s23  ;;  %v1299_v41 = vshll.u32 %v5534_v27, 16  ;;  %v5533_v42 = vld [vmem:[#allocation2 + $0x44] ss:$0 sps:$4 sm:$0x11]   ;;  %v817_v45 = vrot.slane %v815_v4, 7  ;;  %v693_v46 = vld [vmem:[%s5905_s15 + $0x58] sm:$0xff]  ;;  %v1290_v60 = vor.u32 %v1289_v58, %v1285_v12 }
  0x59   : > { %v2641_v20 = vrot.slane %v5528_v35, 1  ;;  %v2642_v48 = vrot.slane %v5529_v37, 1  ;;  %v1294_v49 = vrot.slane %v1292_v38, 1  ;;  %v1304_v50 = vshll.u32 %v5535_v40, 16  ;;  %v517_v55 = vld [vmem:[#allocation2 + $0x50] sm:$0x1] }
  0x5a   : > { %1927 = vrot.lane.b32.xlu1 %v1848_v19, %s5797_s21  ;;  %v1297_v52 = vshrl.u32 %v5534_v27, 16  ;;  %v1301_v53 = vrot.slane %v1299_v41, 1  ;;  %v820_v54 = vor.u32 %v818_v8, %v817_v45  ;;  %v482_v56 = vld [vmem:[#allocation2 + $0x54] sm:$0x1]  ;;  %v2411_v4 = vsel %vm1235_vm10, %v2406_v9, %v2410_v59  ;;  %v694_v63 = vld [vmem:[%s5905_s15 + $0x60] sm:$0xff]  ;;  %v695_v59 = vld [vmem:[%s5905_s15 + $0x68] sm:$0xff] }
  0x5b   : > { %v2644_v30 = vrot.slane %v5532_v51, 1  ;;  %v6130_v61 = vld [vmem:[#allocation2 + $0x30] sm:$0xfe]   ;;  %v6132_v62 = vld [vmem:[#allocation2 + $0x38] ss:$0 sps:$4 sm:$0x11]   ;;  %v5327_v15 = vpack.c.bf16 %v693_v46, %v693_v46  ;;  %v2643_v5 = vsel %vm1507_vm9, %v2641_v20, %v2642_v48  ;;  %v1295_v6 = vsel %vm1235_vm10, %v1290_v60, %v1294_v49 }
  0x5c   : > { %1921 = vrot.lane.b32.xlu0 %v1812_v24, %s5797_s21  ;;  %v2645_v1 = vrot.slane %v5533_v42, 1  ;;  %v5538_v2 = vld [vmem:[#allocation2 + $0x3c] sm:$0xfe]   ;;  %v823_v11 = vshrl.u32 %v5325_v43, 16  ;;  %v1306_v13 = vrot.slane %v1304_v50, 1  ;;  %v821_v8 = vrot.slane %v817_v45, 4 }
  0x5d   : > { %v5539_v47 = vld [vmem:[#allocation2 + $0x44] ss:$0 sps:$4 sm:$0x11]   ;;  %v935_v14 = vld [vmem:[#allocation2 + $0x48] sm:$0xf]  ;;  %v1302_v18 = vor.u32 %v1301_v53, %v1297_v52  ;;  %v826_v21 = vshll.u32 %v5325_v43, 16  ;;  %v6146_v36 = vpack.c.bf16 %v694_v63, %v694_v63  ;;  %v6163_v49 = vpack.c.bf16 %v695_v59, %v695_v59 }
  0x5e   : > { %2108 = vrot.lane.b32.xlu1 %v2083_v29, %s5795_s13  ;;  %v825_v19 = vrot.slane %v823_v11, 7  ;;  %v936_v17 = vsel %vm5935_vm8, %v820_v54, %v935_v14  ;;  %v5542_v12 = vld [vmem:[#allocation2 + $0x3c] sm:$0xff]   ;;  %v5543_v22 = vld [vmem:[#allocation2 + $0x44] ss:$0 sps:$4 sm:$0x11]   ;;  %v518_v24 = vsel %vm5885_vm4, 0, %v517_v55  ;;  %v2646_v16 = vsel %vm1507_vm9, %v2644_v30, %v2645_v1 }
  0x5f   : > { %937 = vst [vmem:[#allocation2 + $0x48] sm:$0xf] %v936_v17  ;;  %v483_v25 = vsel %vm5877_vm2, 0, %v482_v56  ;;  %519 = vst [vmem:[#allocation2 + $0x50] sm:$0x1] %v518_v24  ;;  %v832_v27 = vshrl.u32 %v5326_v32, 16 }
  0x60   : > { %2106 = vrot.lane.b32.xlu0 %v2080_v23, %s5795_s13  ;;  %v828_v26 = vor.u32 %v826_v21, %v825_v19  ;;  %484 = vst [vmem:[#allocation2 + $0x54] sm:$0x1] %v483_v25  ;;  %v1520_v28 = vrot.slane %v6130_v61, 1  ;;  %v1521_v23 = vrot.slane %v6132_v62, 1  ;;  %v1852_v29 = vshll.u32 %v5542_v12, 16  ;;  %v5540_v30 = vld [vmem:[#allocation2 + $0x3c] sm:$0xff]  }
  0x61   : > { %v835_v31 = vshll.u32 %v5326_v32, 16  ;;  %v834_v37 = vrot.slane %v832_v27, 7  ;;  %v520_v38 = vld [vmem:[#allocation2 + $0x5c] sm:$0x1]  ;;  %v485_v58 = vld [vmem:[#allocation2 + $0x60] sm:$0x1] }
  0x62   : > { %2219 = vrot.lane.b32.xlu1 %v5523_v34, %s5792_s25  ;;  %v1523_v34 = vrot.slane %v5538_v2, 1  ;;  %v829_v35 = vsel %vm5929_vm7, %v821_v8, %v828_v26  ;;  %v1524_v51 = vrot.slane %v5539_v47, 1  ;;  %v830_v40 = vrot.slane %v825_v19, 4  ;;  %v5546_v54 = vld [vmem:[#allocation2 + $0x3c] sm:$0xfe]  }
  0x63   : > { %938 = vst.msk [vmem:[#allocation2 + $0x4c] sm:$0xf] %vm6983_vm5, %v829_v35  ;;  %v840_v7 = vshrl.u32 %v5327_v15, 16  ;;  %v843_v9 = vshll.u32 %v5327_v15, 16  ;;  %v1850_v41 = vshrl.u32 %v5542_v12, 16  ;;  %v1854_v10 = vrot.slane %v1852_v29, 1 }
  0x64   : > { %2217 = vrot.lane.b32.xlu0 %v5522_v33, %s5792_s25  ;;  %v1307_v33 = vsel %vm1235_vm10, %v1302_v18, %v1306_v13  ;;  %v1857_v42 = vshll.u32 %v5543_v22, 16  ;;  %v837_v43 = vor.u32 %v835_v31, %v834_v37  ;;  %v838_v45 = vrot.slane %v834_v37, 4  ;;  %v5547_v55 = vld [vmem:[#allocation2 + $0x44] ss:$0 sps:$4 sm:$0x11]  }
  0x65   : > { %v842_v46 = vrot.slane %v840_v7, 7  ;;  %v521_v20 = vsel %vm5885_vm4, 0, %v520_v38  ;;  %v486_v48 = vsel %vm5877_vm2, 0, %v485_v58  ;;  %v1522_v50 = vsel %vm1507_vm9, %v1520_v28, %v1521_v23 }
  0x66   : > { %2490 = vrot.lane.b32.xlu1 %v2411_v4, %s5798_s22  ;;  %522 = vst [vmem:[#allocation2 + $0x5c] sm:$0x1] %v521_v20  ;;  %487 = vst [vmem:[#allocation2 + $0x60] sm:$0x1] %v486_v48  ;;  %v1525_v52 = vsel %vm1507_vm9, %v1523_v34, %v1524_v51  ;;  %v939_v53 = vld [vmem:[#allocation2 + $0x50] sm:$0x1]  ;;  %v1855_v2 = vor.u32 %v1854_v10, %v1850_v41 }
  0x67   : > { %v845_v56 = vor.u32 %v843_v9, %v842_v46  ;;  %v940_v4 = vsel %vm5877_vm2, %v830_v40, %v939_v53  ;;  %v942_v60 = vld [vmem:[#allocation2 + $0x54] sm:$0xf]  ;;  %v1859_v61 = vrot.slane %v1857_v42, 1  ;;  %v847_v11 = vrot.slane %v842_v46, 4 }
  0x68   : > { %2488 = vrot.lane.b32.xlu0 %v2399_v57, %s5798_s22  ;;  %v849_v57 = vshrl.u32 %v6146_v36, 16  ;;  %941 = vst [vmem:[#allocation2 + $0x50] sm:$0x1] %v940_v4  ;;  %v943_v63 = vsel %vm5935_vm8, %v837_v43, %v942_v60  ;;  %v857_v47 = vshrl.u32 %v6163_v49, 16  ;;  %v2084_v15 = vrot.slane %v5546_v54, 1 }
  0x69   : > { %v846_v62 = vsel %vm5929_vm7, %v838_v45, %v845_v56  ;;  %944 = vst [vmem:[#allocation2 + $0x54] sm:$0xf] %v943_v63  ;;  %v2085_v18 = vrot.slane %v5547_v55, 1  ;;  %v1860_v17 = vsel %vm1235_vm10, %v1855_v2, %v1859_v61  ;;  %v852_v12 = vshll.u32 %v6146_v36, 16  ;;  %v697_v36 = vld [vmem:[%s5905_s15 + $0x78] sm:$0xff] }
  0x6a   : > { %1364 = vrot.lane.b32.xlu1 %v1295_v6, %s5799_s23  ;;  %v5541_v1 = vld [vmem:[#allocation2 + $0x48] sm:$0xff]   ;;  %945 = vst.msk [vmem:[#allocation2 + $0x58] sm:$0xf] %vm6983_vm5, %v846_v62  ;;  %v6181_v13 = vrot.slane %v849_v57, 7  ;;  %vm6981_vm6 = vcmask 1041408   ;;  %vm2132_vm11 = vcmask 195744  }
  0x6b   : > { %v5544_v32 = vld [vmem:[#allocation2 + $0x48] sm:$0xff]   ;;  %v2086_v37 = vsel %vm1507_vm9, %v2084_v15, %v2085_v18  ;;  %vm6985_vm0 = vcmask 294144   ;;  %v5800_v44 = vmov (!%p5174_p13), 0  }
  0x6c   : > { %2669 = vrot.lane.b32.xlu0 %v2643_v5, %s5794_s12  ;;  %v5548_v8 = vld [vmem:[#allocation2 + $0x48] sm:$0xfe]   ;;  %v1864_v14 = vshll.u32 %v5544_v32, 16  ;;  %v1862_v5 = vshrl.u32 %v5544_v32, 16  ;;  %v855_v25 = vrot.slane %v6181_v13, 4 }
  0x6d   : > { %v5552_v19 = vld [vmem:[#allocation2 + $0x48] sm:$0xff]   ;;  %v946_v21 = vld [vmem:[#allocation2 + $0x5c] sm:$0x1]  ;;  %v2087_v27 = vrot.slane %v5548_v8, 1 }
  0x6e   : > { %1366 = vrot.lane.b32.xlu1 %v1307_v33, %s5799_s23  ;;  %v947_v6 = vsel %vm5877_vm2, %v847_v11, %v946_v21  ;;  %v1866_v22 = vrot.slane %v1864_v14, 1  ;;  %v2415_v24 = vshll.u32 %v5552_v19, 16  ;;  %v5556_v28 = vld [vmem:[#allocation2 + $0x48] sm:$0xfe]   ;;  %v2413_v29 = vshrl.u32 %v5552_v19, 16 }
  0x6f   : > { %948 = vst [vmem:[#allocation2 + $0x5c] sm:$0x1] %v947_v6  ;;  %v5545_v26 = vld [vmem:[#allocation2 + $0x50] ss:$0 sps:$4 sm:$0x11]   ;;  %v5558_v35 = vld [vmem:[#allocation2 + $0x48] sm:$0xff]  }
  0x70   : > { %2671 = vrot.lane.b32.xlu0 %v2646_v16, %s5794_s12  ;;  %v6192_v16 = vrot.slane %v857_v47, 7  ;;  %v5549_v23 = vld [vmem:[#allocation2 + $0x50] ss:$0 sps:$4 sm:$0x11]   ;;  %v1867_v31 = vor.u32 %v1866_v22, %v1862_v5  ;;  %v1869_v33 = vshll.u32 %v5545_v26, 16  ;;  %v2417_v34 = vrot.slane %v2415_v24, 1 }
  0x71   : > { %v2088_v38 = vrot.slane %v5549_v23, 1  ;;  %v5553_v58 = vld [vmem:[#allocation2 + $0x50] ss:$0 sps:$4 sm:$0x11]   ;;  %v5550_v40 = vld [vmem:[#allocation2 + $0x48] sm:$0xff]   ;;  %v5554_v7 = vld [vmem:[#allocation2 + $0x54] sm:$0xff]   ;;  %v854_v24 = vor.u32 %v852_v12, %v6181_v13 }
  0x72   : > { %1548 = vrot.lane.b32.xlu1 %v1525_v52, %s5796_s14  ;;  %v1871_v51 = vrot.slane %v1869_v33, 1  ;;  %v2420_v9 = vshll.u32 %v5553_v58, 16  ;;  %v5557_v59 = vld [vmem:[#allocation2 + $0x50] ss:$0 sps:$4 sm:$0x11]   ;;  %v2647_v42 = vrot.slane %v5556_v28, 1  ;;  %v2418_v43 = vor.u32 %v2417_v34, %v2413_v29 }
  0x73   : > { %v2425_v46 = vshrl.u32 %v5554_v7, 16  ;;  %v2427_v20 = vshll.u32 %v5554_v7, 16  ;;  %v2089_v48 = vsel %vm1507_vm9, %v2087_v27, %v2088_v38  ;;  %v5559_v52 = vld [vmem:[#allocation2 + $0x50] ss:$0 sps:$4 sm:$0x11]   ;;  %v1311_v53 = vshll.u32 %v5558_v35, 16 }
  0x74   : > { %1546 = vrot.lane.b32.xlu0 %v1522_v50, %s5796_s14  ;;  %v1872_v41 = vsel %vm1235_vm10, %v1867_v31, %v1871_v51  ;;  %v2422_v45 = vrot.slane %v2420_v9, 1  ;;  %v5562_v54 = vld [vmem:[#allocation2 + $0x54] sm:$0xff]   ;;  %v2648_v57 = vrot.slane %v5557_v59, 1  ;;  %v1309_v60 = vshrl.u32 %v5558_v35, 16  ;;  %v5564_v22 = vld [vmem:[#allocation2 + $0x48] sm:$0xfe]  }
  0x75   : > { %v5551_v55 = vld [vmem:[#allocation2 + $0x54] sm:$0xff]   ;;  %v2429_v56 = vrot.slane %v2427_v20, 1  ;;  %v1316_v61 = vshll.u32 %v5559_v52, 16  ;;  %v1323_v2 = vshll.u32 %v5562_v54, 16  ;;  %v1321_v32 = vshrl.u32 %v5562_v54, 16 }
  0x76   : > { %1660 = vrot.lane.b32.xlu1 %v5541_v1, %s5793_s8  ;;  %v5555_v10 = vld [vmem:[#allocation2 + $0x5c] ss:$0 sps:$4 sm:$0x11]   ;;  %v2423_v62 = vsel %vm1235_vm10, %v2418_v43, %v2422_v45  ;;  %v5560_v63 = vld [vmem:[#allocation2 + $0x54] sm:$0xfe]   ;;  %v860_v47 = vshll.u32 %v6163_v49, 16  ;;  %v2649_v5 = vsel %vm1507_vm9, %v2647_v42, %v2648_v57 }
  0x77   : > { %v2432_v50 = vshll.u32 %v5555_v10, 16  ;;  %v5561_v1 = vld [vmem:[#allocation2 + $0x5c] ss:$0 sps:$4 sm:$0x11]   ;;  %v2430_v11 = vor.u32 %v2429_v56, %v2425_v46  ;;  %v1318_v8 = vrot.slane %v1316_v61, 1  ;;  %v2650_v14 = vrot.slane %v5560_v63, 1 }
  0x78   : > { %1658 = vrot.lane.b32.xlu0 %v5540_v30, %s5793_s8  ;;  %v1313_v30 = vrot.slane %v1311_v53, 1  ;;  %v2651_v15 = vrot.slane %v5561_v1, 1  ;;  %v6209_v18 = vld [vmem:[#allocation2 + $0x54] sm:$0xff]   ;;  %v5563_v19 = vld [vmem:[#allocation2 + $0x5c] ss:$0 sps:$4 sm:$0x11]  }
  0x79   : > { %v2434_v4 = vrot.slane %v2432_v50, 1  ;;  %v1325_v21 = vrot.slane %v1323_v2, 1  ;;  %v5565_v49 = vld [vmem:[#allocation2 + $0x50] ss:$0 sps:$4 sm:$0x11]   ;;  %v1874_v26 = vshrl.u32 %v6209_v18, 16 }
  0x7a   : > { %1931 = vrot.lane.b32.xlu1 %v1872_v41, %s5797_s21  ;;  %v1314_v6 = vor.u32 %v1313_v30, %v1309_v60  ;;  %v523_v27 = vld [vmem:[#allocation2 + $0x68] sm:$0x1]  ;;  %v1328_v23 = vshll.u32 %v5563_v19, 16  ;;  %v1876_v31 = vshll.u32 %v6209_v18, 16  ;;  %v488_v33 = vld [vmem:[#allocation2 + $0x6c] sm:$0x1] }
  0x7b   : > { %v2435_v28 = vsel %vm1235_vm10, %v2430_v11, %v2434_v4  ;;  %v696_v34 = vld [vmem:[%s5905_s15 + $0x70] sm:$0xff]  ;;  %v1526_v35 = vrot.slane %v5564_v22, 1  ;;  %v5567_v58 = vld [vmem:[#allocation2 + $0x5c] ss:$0 sps:$4 sm:$0x11]   ;;  %v1326_v59 = vor.u32 %v1325_v21, %v1321_v32  ;;  %v524_v42 = vsel %vm5885_vm4, 0, %v523_v27 }
  0x7c   : > { %1929 = vrot.lane.b32.xlu0 %v1860_v17, %s5797_s21  ;;  %v862_v17 = vor.u32 %v860_v47, %v6192_v16  ;;  %v5566_v38 = vld [vmem:[#allocation2 + $0x54] sm:$0xfe]   ;;  %v1330_v12 = vrot.slane %v1328_v23, 1  ;;  %v1319_v13 = vsel %vm1235_vm10, %v1314_v6, %v1318_v8  ;;  %v1878_v7 = vrot.slane %v1876_v31, 1  ;;  %525 = vst [vmem:[#allocation2 + $0x68] sm:$0x1] %v524_v42 }
  0x7d   : > { %v1529_v51 = vrot.slane %v5566_v38, 1  ;;  %v1530_v41 = vrot.slane %v5567_v58, 1  ;;  %v5571_v43 = vld [vmem:[#allocation2 + $0x5c] ss:$0 sps:$4 sm:$0x11]   ;;  %v489_v45 = vsel %vm5877_vm2, 0, %v488_v33  ;;  %v5330_v46 = vpack.c.bf16 %v696_v34, %v696_v34 }
  0x7e   : > { %2112 = vrot.lane.b32.xlu1 %v2089_v48, %s5795_s13  ;;  %v863_v29 = vsel %vm5929_vm7, %v855_v25, %v862_v17  ;;  %v2652_v25 = vsel %vm1507_vm9, %v2650_v14, %v2651_v15  ;;  %v526_v20 = vld [vmem:[#allocation2 + $0x74] sm:$0x1]  ;;  %490 = vst [vmem:[#allocation2 + $0x6c] sm:$0x1] %v489_v45  ;;  %v5331_v48 = vpack.c.bf16 %v697_v36, %v697_v36  ;;  %v1881_v52 = vshll.u32 %v5571_v43, 16 }
  0x7f   : > { %952 = vst.msk [vmem:[#allocation2 + $0x64] sm:$0xf] %vm6983_vm5, %v863_v29  ;;  %v5574_v53 = vld [vmem:[#allocation2 + $0x54] sm:$0xfe]   ;;  %v1331_v57 = vsel %vm1235_vm10, %v1326_v59, %v1330_v12  ;;  %v864_v60 = vrot.slane %v6192_v16, 4  ;;  %v866_v61 = vshrl.u32 %v5330_v46, 16  ;;  %v1879_v11 = vor.u32 %v1878_v7, %v1874_v26 }
  0x80   : > { %2110 = vrot.lane.b32.xlu0 %v2086_v37, %s5795_s13  ;;  %v1527_v37 = vrot.slane %v5565_v49, 1  ;;  %v5575_v54 = vld [vmem:[#allocation2 + $0x5c] ss:$0 sps:$4 sm:$0x11]   ;;  %v5568_v4 = vld [vmem:[#allocation2 + $0x54] sm:$0xff]   ;;  %v1883_v30 = vrot.slane %v1881_v52, 1  ;;  %v1531_v16 = vsel %vm1507_vm9, %v1529_v51, %v1530_v41 }
  0x81   : > { %v874_v63 = vshrl.u32 %v5331_v48, 16  ;;  %v877_v1 = vshll.u32 %v5331_v48, 16  ;;  %v527_v2 = vsel %vm5885_vm4, 0, %v526_v20  ;;  %v2090_v32 = vrot.slane %v5574_v53, 1  ;;  %v491_v29 = vld [vmem:[#allocation2 + $0x78] sm:$0x1] }
  0x82   : > { %2223 = vrot.lane.b32.xlu1 %v5551_v55, %s5792_s25  ;;  %v1528_v50 = vsel %vm1507_vm9, %v1526_v35, %v1527_v37  ;;  %v868_v47 = vrot.slane %v866_v61, 7  ;;  %528 = vst [vmem:[#allocation2 + $0x74] sm:$0x1] %v527_v2  ;;  %v2091_v15 = vrot.slane %v5575_v54, 1  ;;  %v1884_v26 = vsel %vm1235_vm10, %v1879_v11, %v1883_v30 }
  0x83   : > { %v953_v14 = vld [vmem:[#allocation2 + $0x68] sm:$0x1]  ;;  %v876_v18 = vrot.slane %v874_v63, 7 }
  0x84   : > { %2221 = vrot.lane.b32.xlu0 %v5550_v40, %s5792_s25  ;;  %v949_v40 = vld [vmem:[#allocation2 + $0x60] sm:$0xf]  ;;  %v954_v19 = vsel %vm5877_vm2, %v864_v60, %v953_v14  ;;  %v2092_v12 = vsel %vm1507_vm9, %v2090_v32, %v2091_v15 }
  0x85   : > { %v950_v10 = vsel %vm5935_vm8, %v854_v24, %v949_v40  ;;  %955 = vst [vmem:[#allocation2 + $0x68] sm:$0x1] %v954_v19  ;;  %v879_v24 = vor.u32 %v877_v1, %v876_v18  ;;  %v956_v23 = vld [vmem:[#allocation2 + $0x6c] sm:$0xf] }
  0x86   : > { %2494 = vrot.lane.b32.xlu1 %v2435_v28, %s5798_s22  ;;  %951 = vst [vmem:[#allocation2 + $0x60] sm:$0xf] %v950_v10  ;;  %v881_v28 = vrot.slane %v876_v18, 4 }
  0x88   : > { %2492 = vrot.lane.b32.xlu0 %v2423_v62, %s5798_s22  ;;  %v869_v62 = vshll.u32 %v5330_v46, 16  ;;  %v492_v46 = vsel %vm5877_vm2, 0, %v491_v29 }
  0x89   : > { %493 = vst [vmem:[#allocation2 + $0x78] sm:$0x1] %v492_v46 }
  0x8a   : > { %1368 = vrot.lane.b32.xlu1 %v1319_v13, %s5799_s23  ;;  %v871_v17 = vor.u32 %v869_v62, %v868_v47  ;;  %v960_v13 = vld [vmem:[#allocation2 + $0x74] sm:$0x1] }
  0x8b   : > { %v961_v7 = vsel %vm5877_vm2, %v881_v28, %v960_v13 }
  0x8c   : > { %2673 = vrot.lane.b32.xlu0 %v2649_v5, %s5794_s12  ;;  %v872_v5 = vrot.slane %v868_v47, 4  ;;  %v957_v33 = vsel %vm5935_vm8, %v871_v17, %v956_v23  ;;  %962 = vst [vmem:[#allocation2 + $0x74] sm:$0x1] %v961_v7  ;;  %v5573_v20 = vld [vmem:[#allocation2 + $0x68] ss:$0 sps:$4 sm:$0x11]  }
  0x8d   : > { %v5572_v21 = vld [vmem:[#allocation2 + $0x60] sm:$0xff]   ;;  %958 = vst [vmem:[#allocation2 + $0x6c] sm:$0xf] %v957_v33  ;;  %v1893_v53 = vshll.u32 %v5573_v20, 16 }
  0x8e   : > { %1370 = vrot.lane.b32.xlu1 %v1331_v57, %s5799_s23  ;;  %v5569_v22 = vld [vmem:[#allocation2 + $0x60] sm:$0xff]   ;;  %v1888_v27 = vshll.u32 %v5572_v21, 16  ;;  %v880_v31 = vsel %vm5929_vm7, %v872_v5, %v879_v24  ;;  %v1886_v36 = vshrl.u32 %v5572_v21, 16  ;;  %v5581_v54 = vld [vmem:[#allocation2 + $0x68] ss:$0 sps:$4 sm:$0x11]  }
  0x8f   : > { %v6261_v49 = vld [vmem:[#allocation2 + $0x60] sm:$0xfe]   ;;  %959 = vst.msk [vmem:[#allocation2 + $0x70] sm:$0xf] %vm6983_vm5, %v880_v31  ;;  %v1895_v30 = vrot.slane %v1893_v53, 1  ;;  %v2444_v62 = vshll.u32 %v5581_v54, 16 }
  0x90   : > { %2675 = vrot.lane.b32.xlu0 %v2652_v25, %s5794_s12  ;;  %v5580_v34 = vld [vmem:[#allocation2 + $0x60] sm:$0xff]   ;;  %v1890_v25 = vrot.slane %v1888_v27, 1  ;;  %v2093_v51 = vrot.slane %v6261_v49, 1  ;;  %v5585_v11 = vld [vmem:[#allocation2 + $0x68] ss:$0 sps:$4 sm:$0x11]  }
  0x91   : > { %v6270_v35 = vld [vmem:[#allocation2 + $0x60] sm:$0xfe]   ;;  %v2439_v58 = vshll.u32 %v5580_v34, 16  ;;  %v2437_v40 = vshrl.u32 %v5580_v34, 16  ;;  %v2446_v47 = vrot.slane %v2444_v62, 1  ;;  %v2654_v18 = vrot.slane %v5585_v11, 1 }
  0x92   : > { %1552 = vrot.lane.b32.xlu1 %v1531_v16, %s5796_s14  ;;  %v6275_v38 = vld [vmem:[#allocation2 + $0x60] sm:$0xff]   ;;  %v2653_v10 = vrot.slane %v6270_v35, 1  ;;  %v1891_v52 = vor.u32 %v1890_v25, %v1886_v36  ;;  %v602_v62 = vld [vmem:[%s6346_s19 + $0x8] sm:$0xff] }
  0x93   : > { %v5578_v41 = vld [vmem:[#allocation2 + $0x60] sm:$0xff]   ;;  %v1333_v42 = vshrl.u32 %v6275_v38, 16  ;;  %v1335_v43 = vshll.u32 %v6275_v38, 16  ;;  %v2441_v48 = vrot.slane %v2439_v58, 1 }
  0x94   : > { %1550 = vrot.lane.b32.xlu0 %v1528_v50, %s5796_s14  ;;  %v5577_v50 = vld [vmem:[#allocation2 + $0x68] ss:$0 sps:$4 sm:$0x11]   ;;  %v6306_v60 = vld [vmem:[#allocation2 + $0x60] sm:$0xfe]   ;;  %v1896_v32 = vsel %vm1235_vm10, %v1891_v52, %v1895_v30  ;;  %v2655_v27 = vsel %vm1507_vm9, %v2653_v10, %v2654_v18 }
  0x95   : > { %v2094_v57 = vrot.slane %v5577_v50, 1  ;;  %v2442_v61 = vor.u32 %v2441_v48, %v2437_v40  ;;  %v5583_v16 = vld [vmem:[#allocation2 + $0x74] ss:$0 sps:$4 sm:$0x11]   ;;  %v1532_v24 = vrot.slane %v6306_v60, 1 }
  0x96   : > { %1664 = vrot.lane.b32.xlu1 %v5569_v22, %s5793_s8  ;;  %v5582_v2 = vld [vmem:[#allocation2 + $0x6c] sm:$0xff]   ;;  %v2456_v5 = vshll.u32 %v5583_v16, 16  ;;  %v5587_v22 = vld [vmem:[#allocation2 + $0x68] ss:$0 sps:$4 sm:$0x11]  }
  0x97   : > { %v2449_v14 = vshrl.u32 %v5582_v2, 16  ;;  %v2451_v15 = vshll.u32 %v5582_v2, 16  ;;  %v5590_v19 = vld [vmem:[#allocation2 + $0x6c] sm:$0xff]   ;;  %v2095_v21 = vsel %vm1507_vm9, %v2093_v51, %v2094_v57  ;;  %v2447_v17 = vsel %vm1235_vm10, %v2442_v61, %v2446_v47  ;;  %v5589_v33 = vld [vmem:[#allocation2 + $0x74] ss:$0 sps:$4 sm:$0x11]  }
  0x98   : > { %1662 = vrot.lane.b32.xlu0 %v5568_v4, %s5793_s8  ;;  %v1337_v4 = vrot.slane %v1335_v43, 1  ;;  %v1340_v28 = vshll.u32 %v5587_v22, 16  ;;  %v5588_v23 = vld [vmem:[#allocation2 + $0x6c] sm:$0xfe]   ;;  %v1347_v34 = vshll.u32 %v5590_v19, 16  ;;  %v2458_v36 = vrot.slane %v2456_v5, 1 }
  0x99   : > { %v6243_v55 = vpop.permute.xlu0 %2213  ;;  %v2453_v49 = vrot.slane %v2451_v15, 1  ;;  %v2657_v13 = vrot.slane %v5589_v33, 1  ;;  %v5591_v25 = vld [vmem:[#allocation2 + $0x74] ss:$0 sps:$4 sm:$0x11]   ;;  %v1345_v51 = vshrl.u32 %v5590_v19, 16 }
  0x9a   : > { %v6232_v9 = vpop.permute.xlu1 %1652  ;;  %1935 = vrot.lane.b32.xlu1 %v1896_v32, %s5797_s21  ;;  %v1342_v58 = vrot.slane %v1340_v28, 1  ;;  %v5593_v40 = vld [vmem:[#allocation2 + $0x68] ss:$0 sps:$4 sm:$0x11]   ;;  %v1352_v10 = vshll.u32 %v5591_v25, 16  ;;  %v1338_v46 = vor.u32 %v1337_v4, %v1333_v42  ;;  %v5598_v57 = vld [vmem:[#allocation2 + $0x6c] sm:$0xff]  }
  0x9b   : > { %v2454_v35 = vor.u32 %v2453_v49, %v2449_v14  ;;  %v1533_v20 = vrot.slane %v5593_v40, 1  ;;  %v6333_v48 = vld [vmem:[#allocation2 + $0x6c] sm:$0xfe]   ;;  %v6335_v50 = vld [vmem:[#allocation2 + $0x74] ss:$0 sps:$4 sm:$0x11]   ;;  %v965_v14 = vstv %s964_s11 }
  0x9c   : > { %1933 = vrot.lane.b32.xlu0 %v1884_v26, %s5797_s21  ;;  %v5579_v26 = vld [vmem:[#allocation2 + $0x6c] sm:$0xff]   ;;  %v529_v53 = vld [vmem:[#allocation2 + $0x80] sm:$0x1]  ;;  %v1354_v60 = vrot.slane %v1352_v10, 1  ;;  %v1535_v38 = vrot.slane %v6333_v48, 1  ;;  %v1536_v42 = vrot.slane %v6335_v50, 1  ;;  %v1343_v2 = vsel %vm1235_vm10, %v1338_v46, %v1342_v58 }
  0x9d   : > { %v6258_v6 = vpop.permute.xlu0 %1654  ;;  %v2459_v43 = vsel %vm1235_vm10, %v2454_v35, %v2458_v36  ;;  %v1534_v30 = vsel %vm1507_vm9, %v1532_v24, %v1533_v20  ;;  %v5596_v4 = vld [vmem:[#allocation2 + $0x6c] sm:$0xff]   ;;  %v601_v61 = vld [vmem:[%s6346_s19] sm:$0xff]  ;;  %v5599_v47 = vld [vmem:[#allocation2 + $0x74] ss:$0 sps:$4 sm:$0x11]   ;;  %v1898_v16 = vshrl.u32 %v5598_v57, 16 }
  0x9e   : > { %v6245_v56 = vpop.permute.xlu1 %2215  ;;  %2116 = vrot.lane.b32.xlu1 %v2095_v21, %s5795_s13  ;;  %v605_v32 = vpack.c.bf16 %v602_v62, %v601_v61  ;;  %v1900_v15 = vshll.u32 %v5598_v57, 16  ;;  %v530_v18 = vsel %vm5885_vm4, 0, %v529_v53  ;;  %v5602_v19 = vld [vmem:[#allocation2 + $0x18] sm:$0xff]   ;;  %vm6357_vm14 = vcmp.eq.s32.totalorder %v965_v14, 1  ;;  %v5607_v22 = vld [vmem:[#allocation2 + $0x24] sm:$0xff]   ;;  %v603_v35 = vld [vmem:[%s6346_s19 + $0x10] sm:$0xff] }
  0x9f   : > { %v1905_v5 = vshll.u32 %v5599_v47, 16  ;;  %531 = vst [vmem:[#allocation2 + $0x80] sm:$0x1] %v530_v18  ;;  %1117 = vst.msk [vmem:[#allocation4 + $0x10] sm:$0xff] %vm1114_vm12, %v5602_v19  ;;  %v604_v58 = vld [vmem:[%s6346_s19 + $0x18] sm:$0xff]  ;;  %v1537_v20 = vsel %vm1507_vm9, %v1535_v38, %v1536_v42  ;;  %v5610_v57 = vld [vmem:[#allocation2] sm:$0xff]  }
  0xa0   : > { %2114 = vrot.lane.b32.xlu0 %v2092_v12, %s5795_s13  ;;  %v2656_v12 = vrot.slane %v5588_v23, 1  ;;  %v967_v24 = vsel %vm6357_vm14, %v605_v32, 0  ;;  %1118 = vst.msk [vmem:[#allocation4 + $0x18] sm:$0xff] %vm1114_vm12, %v5607_v22  ;;  %v494_v46 = vld [vmem:[#allocation2 + $0x84] sm:$0x1]  ;;  %v5615_v61 = vld [vmem:[#allocation2 + $0xc] sm:$0xff]  }
  0xa1   : > { %v6289_v59 = vpop.permute.xlu0 %2665  ;;  %v4986_v28 = vcombine.low %v967_v24, %v967_v24  ;;  %v4987_v23 = vcombine.high %v967_v24, %v967_v24  ;;  %v1907_v33 = vrot.slane %v1905_v5, 1  ;;  %1115 = vst.msk [vmem:[#allocation4] sm:$0xff] %vm1114_vm12, %v5610_v57  ;;  %1116 = vst.msk [vmem:[#allocation4 + $0x8] sm:$0xff] %vm1114_vm12, %v5615_v61  ;;  %v5620_v18 = vld [vmem:[%s6976_s3] sm:$0xff]  }
  0xa2   : > { %v6253_v8 = vpop.permute.xlu1 %1656  ;;  %2227 = vrot.lane.b32.xlu1 %v5579_v26, %s5792_s25  ;;  %v2658_v7 = vsel %vm1507_vm9, %v2656_v12, %v2657_v13  ;;  %v1902_v26 = vrot.slane %v1900_v15, 1  ;;  %v5604_v12 = vld [vmem:[#allocation2 + $0x74] ss:$0 sps:$4 sm:$0x11]   ;;  %5376 = vmatprep.subr.bf16.mxu0 %v5620_v18 }
  0xa3   : > { %v980_v13 = vshrl.u32 %v4986_v28, 16  ;;  %v983_v25 = vshll.u32 %v4986_v28, 16  ;;  %v991_v40 = vshll.u32 %v4987_v23, 16  ;;  %5377 = vmatpush3.bf16.msra.mxu0 %v5620_v18 }
  0xa4   : > { %2225 = vrot.lane.b32.xlu0 %v5578_v41, %s5792_s25  ;;  %v1349_v41 = vrot.slane %v1347_v34, 1  ;;  %v5603_v34 = vld [vmem:[#allocation2 + $0x6c] sm:$0xfe]   ;;  %v1903_v36 = vor.u32 %v1902_v26, %v1898_v16 }
  0xa5   : > { %v6308_v63 = vpop.permute.xlu0 %2667  ;;  %v2096_v10 = vrot.slane %v5603_v34, 1  ;;  %v982_v48 = vrot.slane %v980_v13, 7 }
  0xa6   : > { %v6272_v37 = vpop.permute.xlu1 %2104  ;;  %2498 = vrot.lane.b32.xlu1 %v2459_v43, %s5798_s22  ;;  %v1350_v11 = vor.u32 %v1349_v41, %v1345_v51  ;;  %v988_v51 = vshrl.u32 %v4987_v23, 16  ;;  %v1908_v41 = vsel %vm1235_vm10, %v1903_v36, %v1907_v33  ;;  %v2097_v43 = vrot.slane %v5604_v12, 1  ;;  %v5624_v23 = vld [vmem:[#allocation2 + $0x3c] sm:$0xff]   ;;  %v5625_v12 = vld [vmem:[#allocation2 + $0x48] sm:$0xff]  }
  0xa7   : > { %v985_v38 = vor.u32 %v983_v25, %v982_v48  ;;  %v986_v42 = vrot.slane %v982_v48, 4  ;;  %1120 = vst.msk [vmem:[#allocation4 + $0x28] sm:$0xff] %vm1114_vm12, %v5624_v23  ;;  %1121 = vst.msk [vmem:[#allocation4 + $0x30] sm:$0xff] %vm1114_vm12, %v5625_v12 }
  0xa8   : > { %2496 = vrot.lane.b32.xlu0 %v2447_v17, %s5798_s22  ;;  %v990_v50 = vrot.slane %v988_v51, 7 }
  0xa9   : > { %v6320_v29 = vpop.permute.xlu0 %1542 }
  0xaa   : > { %v6294_v45 = vpop.permute.xlu1 %1544  ;;  %1372 = vrot.lane.b32.xlu1 %v1343_v2, %s5799_s23  ;;  %v993_v62 = vor.u32 %v991_v40, %v990_v50  ;;  %v995_v2 = vrot.slane %v990_v50, 4 }
  0xac   : > { %2677 = vrot.lane.b32.xlu0 %v2655_v27, %s5794_s12  ;;  %v1355_v27 = vsel %vm1235_vm10, %v1350_v11, %v1354_v60  ;;  %v2098_v60 = vsel %vm1507_vm9, %v2096_v10, %v2097_v43  ;;  %v994_v16 = vsel %vm5929_vm7, %v986_v42, %v993_v62 }
  0xad   : > { %v6337_v52 = vpop.permute.xlu0 %2484  ;;  %1023 = vst.msk [vmem:[#allocation2 + $0x7c] sm:$0xf] %vm6983_vm5, %v994_v16 }
  0xae   : > { %v6310_v1 = vpop.permute.xlu1 %1923  ;;  %1374 = vrot.lane.b32.xlu1 %v1355_v27, %s5799_s23  ;;  %v5622_v27 = vld [vmem:[%s6976_s3 + $0x10] ss:$0 sps:$4 sm:$0x33]  }
  0xb0   : > { %2679 = vrot.lane.b32.xlu0 %v2658_v7, %s5794_s12  ;;  %v1020_v7 = vld [vmem:[#allocation2 + $0x78] sm:$0xf] }
  0xb1   : > { %v6361_v17 = vpop.permute.xlu0 %1925  ;;  %v1021_v14 = vsel %vm5935_vm8, %v985_v38, %v1020_v7 }
  0xb2   : > { %v6322_v31 = vpop.permute.xlu1 %2486  ;;  %1556 = vrot.lane.b32.xlu1 %v1537_v20, %s5796_s14  ;;  %1022 = vst [vmem:[#allocation2 + $0x78] sm:$0xf] %v1021_v14 }
  0xb4   : > { %1554 = vrot.lane.b32.xlu0 %v1534_v30, %s5796_s14 }
  0xb6   : > { %v1361_v54 = vpop.permute.xlu1 %1360 }
  0xb7   : > { %1389 = vst.msk [vmem:[#allocation4 + $0x10] sm:$0xff] %vm1386_vm13, %v1361_v54  ;;  %v495_v54 = vsel %vm5877_vm2, 0, %v494_v46 }
  0xb8   : > { %1666 = vrot.lane.b32.xlu0 %v5596_v4, %s5793_s8  ;;  %1571 = vst.msk [vmem:[#allocation4 + $0x10] sm:$0xff] %vm1568_vm15, %v6320_v29  ;;  %v606_v29 = vpack.c.bf16 %v604_v58, %v603_v35  ;;  %496 = vst [vmem:[#allocation2 + $0x84] sm:$0x1] %v495_v54  ;;  %v532_v4 = vld [vmem:[#allocation2 + $0x8c] sm:$0x1] }
  0xb9   : > { %v533_v47 = vsel %vm5885_vm4, 0, %v532_v4  ;;  %1683 = vst.msk [vmem:[#allocation4 + $0x10] sm:$0xff] %vm1680_vm1, %v6258_v6  ;;  %v5623_v6 = vld [vmem:[#allocation2 + $0x30] sm:$0xff]   ;;  %v5597_v40 = vld [vmem:[#allocation2 + $0x78] sm:$0xff]  }
  0xba   : > { %v1363_v49 = vpop.permute.xlu1 %1362  ;;  %v968_v30 = vsel %vm6357_vm14, %v606_v29, 0  ;;  %534 = vst [vmem:[#allocation2 + $0x8c] sm:$0x1] %v533_v47  ;;  %1954 = vst.msk [vmem:[#allocation4 + $0x10] sm:$0xff] %vm1951_vm3, %v6361_v17  ;;  %vm2243_vm14 = vcmask 228544   ;;  %1668 = vrot.lane.b32.xlu1 %v5597_v40, %s5793_s8  ;;  %v5600_v10 = vld [vmem:[#allocation2 + $0x78] sm:$0xff]  }
  0xbb   : > { %1390 = vst.msk [vmem:[#allocation4 + $0x18] sm:$0xff] %vm1386_vm13, %v1363_v49  ;;  %v4988_v11 = vcombine.low %v968_v30, %v968_v30  ;;  %v4989_v32 = vcombine.high %v968_v30, %v968_v30  ;;  %v5605_v46 = vld [vmem:[#allocation2 + $0x78] sm:$0xfe]   ;;  %v1910_v48 = vshrl.u32 %v5600_v10, 16  ;;  %v1912_v50 = vshll.u32 %v5600_v10, 16 }
  0xbc   : > { %1572 = vst.msk [vmem:[#allocation4 + $0x18] sm:$0xff] %vm1568_vm15, %v6294_v45  ;;  %v6381_v53 = vpop.permute.xlu0 %1650  ;;  %1937 = vrot.lane.b32.xlu0 %v1908_v41, %s5797_s21  ;;  %v1024_v45 = vld [vmem:[#allocation2 + $0x80] sm:$0x1]  ;;  %v2776_v41 = vsel %vm6981_vm6, %v5622_v27, 0  ;;  %v5611_v4 = vld [vmem:[#allocation2 + $0x78] sm:$0xff]  }
  0xbd   : > { %v1025_v15 = vsel %vm5877_vm2, %v995_v2, %v1024_v45  ;;  %1684 = vst.msk [vmem:[#allocation4 + $0x18] sm:$0xff] %vm1680_vm1, %v6253_v8  ;;  %v997_v21 = vshrl.u32 %v4988_v11, 16  ;;  %v1000_v5 = vshll.u32 %v4988_v11, 16  ;;  %v1005_v22 = vshrl.u32 %v4989_v32, 16  ;;  %v5621_v8 = vld [vmem:[%s6976_s3 + $0x8] sm:$0xff]   ;;  %v5608_v45 = vld [vmem:[#allocation2 + $0x78] sm:$0xff]  }
  0xbe   : > { %1026 = vst [vmem:[#allocation2 + $0x80] sm:$0x1] %v1025_v15  ;;  %v1008_v49 = vshll.u32 %v4989_v32, 16  ;;  %1119 = vst.msk [vmem:[#allocation4 + $0x20] sm:$0xff] %vm1114_vm12, %v5623_v6  ;;  %5378 = vmatprep.subr.bf16.mxu0 %v5621_v8  ;;  %v2461_v2 = vshrl.u32 %v5611_v4, 16  ;;  %v2463_v11 = vshll.u32 %v5611_v4, 16 }
  0xbf   : > { %v999_v24 = vrot.slane %v997_v21, 7  ;;  %v1007_v26 = vrot.slane %v1005_v22, 7  ;;  %v1027_v28 = vld [vmem:[#allocation2 + $0x84] sm:$0xf]  ;;  %5379 = vmatpush3.bf16.msra.mxu0 %v5621_v8  ;;  %v5628_v6 = vld [vmem:[#allocation2 + $0x6c] sm:$0xff]  }
  0xc0   : > { %2118 = vrot.lane.b32.xlu0 %v2098_v60, %s5795_s13  ;;  %v6409_v19 = vpop.permute.xlu0 %2102  ;;  %5424 = vmatprep.subr.msk.bf16.mxu0 %vm6981_vm6, %v5622_v27  ;;  %vm6986_vm6 = vcmask 261344   ;;  %v1914_v60 = vrot.slane %v1912_v50, 1  ;;  %v2465_v47 = vrot.slane %v2463_v11, 1  ;;  %1124 = vst.msk [vmem:[#allocation4 + $0x48] sm:$0xff] %vm1114_vm12, %v5628_v6 }
  0xc1   : > { %v1002_v17 = vor.u32 %v1000_v5, %v999_v24  ;;  %v1003_v33 = vrot.slane %v999_v24, 4  ;;  %v1010_v34 = vor.u32 %v1008_v49, %v1007_v26  ;;  %v1012_v35 = vrot.slane %v1007_v26, 4  ;;  %v1031_v51 = vld [vmem:[#allocation2 + $0x8c] sm:$0x1]  ;;  %v5616_v49 = vld [vmem:[#allocation2 + $0x78] sm:$0xfe]  }
  0xc2   : > { %v1915_v62 = vor.u32 %v1914_v60, %v1910_v48  ;;  %v2466_v21 = vor.u32 %v2465_v47, %v2461_v2 }
  0xc3   : > { %v1011_v58 = vsel %vm5929_vm7, %v1003_v33, %v1010_v34  ;;  %v1028_v13 = vsel %vm5935_vm8, %v1002_v17, %v1027_v28  ;;  %v1032_v7 = vsel %vm5877_vm2, %v1012_v35, %v1031_v51  ;;  %5381 = vmatpush3.bf16.msra.mxu0 %v2776_v41 }
  0xc4   : > { %v1539_v36 = vpop.permute.xlu1 %1538  ;;  %1029 = vst [vmem:[#allocation2 + $0x84] sm:$0xf] %v1028_v13  ;;  %1030 = vst.msk [vmem:[#allocation2 + $0x88] sm:$0xf] %vm6983_vm5, %v1011_v58  ;;  %2229 = vrot.lane.b32.xlu0 %v5608_v45, %s5792_s25  ;;  %vm6984_vm5 = vcmask 293888  }
  0xc5   : > { %1033 = vst [vmem:[#allocation2 + $0x8c] sm:$0x1] %v1032_v7  ;;  %v5601_v43 = vld [vmem:[#allocation2 + $0x80] ss:$0 sps:$4 sm:$0x11]  }
  0xc6   : > { %v1357_v25 = vpop.permute.xlu0 %1356  ;;  %v1917_v54 = vshll.u32 %v5601_v43, 16  ;;  %v5606_v57 = vld [vmem:[#allocation2 + $0x80] ss:$0 sps:$4 sm:$0x11]   ;;  %v538_v7 = vld [vmem:[#allocation3 + $0xc] sm:$0x1] }
  0xc7   : > { %1387 = vst.msk [vmem:[#allocation4] sm:$0xff] %vm1386_vm13, %v1357_v25  ;;  %v2100_v61 = vrot.slane %v5606_v57, 1  ;;  %v5617_v8 = vld [vmem:[#allocation2 + $0x80] ss:$0 sps:$4 sm:$0x11]   ;;  %v539_v43 = vsel %vm5877_vm2, 0, %v538_v7 }
  0xc8   : > { %1569 = vst.msk [vmem:[#allocation4] sm:$0xff] %vm1568_vm15, %v1539_v36  ;;  %v1541_v20 = vpop.permute.xlu1 %1540  ;;  %v1919_v30 = vrot.slane %v1917_v54, 1  ;;  %v2660_v17 = vrot.slane %v5617_v8, 1  ;;  %540 = vst [vmem:[#allocation3 + $0xc] sm:$0x1] %v539_v43 }
  0xc9   : > { %1681 = vst.msk [vmem:[#allocation4] sm:$0xff] %vm1680_vm1, %v6381_v53  ;;  %v2099_v53 = vrot.slane %v5605_v46, 1 }
  0xca   : > { %v1359_v29 = vpop.permute.xlu0 %1358 }
  0xcb   : > { %1388 = vst.msk [vmem:[#allocation4 + $0x8] sm:$0xff] %vm1386_vm13, %v1359_v29  ;;  %v5613_v32 = vld [vmem:[#allocation2 + $0x84] sm:$0xff]  }
  0xcc   : > { %1570 = vst.msk [vmem:[#allocation4 + $0x8] sm:$0xff] %vm1568_vm15, %v1541_v20  ;;  %v1928_v42 = vpop.permute.xlu1 %1927  ;;  %v5614_v14 = vld [vmem:[#allocation2 + $0x8c] ss:$0 sps:$4 sm:$0x11]   ;;  %v2473_v15 = vshrl.u32 %v5613_v32, 16 }
  0xcd   : > { %1682 = vst.msk [vmem:[#allocation4 + $0x8] sm:$0xff] %vm1680_vm1, %v6232_v9  ;;  %v5612_v9 = vld [vmem:[#allocation2 + $0x80] ss:$0 sps:$4 sm:$0x11]   ;;  %v2480_v22 = vshll.u32 %v5614_v14, 16 }
  0xce   : > { %1953 = vst.msk [vmem:[#allocation4 + $0x8] sm:$0xff] %vm1951_vm3, %v6310_v1  ;;  %v1922_v38 = vpop.permute.xlu0 %1921  ;;  %1955 = vst.msk [vmem:[#allocation4 + $0x18] sm:$0xff] %vm1951_vm3, %v1928_v42  ;;  %v1920_v1 = vsel %vm1235_vm10, %v1915_v62, %v1919_v30  ;;  %v2468_v16 = vshll.u32 %v5612_v9, 16  ;;  %v5618_v33 = vld [vmem:[#allocation2 + $0x84] sm:$0xfe]  }
  0xcf   : > { %2134 = vst.msk [vmem:[#allocation4 + $0x8] sm:$0xff] %vm2132_vm11, %v6272_v37  ;;  %v5626_v37 = vld [vmem:[#allocation2 + $0x54] sm:$0xff]   ;;  %1939 = vrot.lane.b32.xlu1 %v1920_v1, %s5797_s21  ;;  %v2482_v26 = vrot.slane %v2480_v22, 1  ;;  %v5619_v34 = vld [vmem:[#allocation2 + $0x8c] ss:$0 sps:$4 sm:$0x11]  }
  0xd0   : > { %1952 = vst.msk [vmem:[#allocation4] sm:$0xff] %vm1951_vm3, %v1922_v38  ;;  %v2470_v5 = vrot.slane %v2468_v16, 1  ;;  %v2662_v25 = vrot.slane %v5618_v33, 1  ;;  %v2663_v51 = vrot.slane %v5619_v34, 1  ;;  %v535_v34 = vld [vmem:[#allocation3] sm:$0x1] }
  0xd1   : > { %2245 = vst.msk [vmem:[#allocation4 + $0x8] sm:$0xff] %vm2243_vm14, %v6245_v56  ;;  %v2475_v56 = vshll.u32 %v5613_v32, 16 }
  0xd2   : > { %2133 = vst.msk [vmem:[#allocation4] sm:$0xff] %vm2132_vm11, %v6409_v19  ;;  %v2107_v18 = vpop.permute.xlu0 %2106  ;;  %v2109_v19 = vpop.permute.xlu1 %2108  ;;  %v2471_v24 = vsel %vm1235_vm10, %v2466_v21, %v2470_v5  ;;  %v2664_v46 = vsel %vm1507_vm9, %v2662_v25, %v2663_v51  ;;  %v544_v51 = vld [vmem:[#allocation3 + $0x24] sm:$0x1] }
  0xd3   : > { %2516 = vst.msk [vmem:[#allocation4 + $0x8] sm:$0xff] %vm6986_vm6, %v6322_v31  ;;  %v2101_v31 = vsel %vm1507_vm9, %v2099_v53, %v2100_v61  ;;  %2500 = vrot.lane.b32.xlu0 %v2471_v24, %s5798_s22 }
  0xd4   : > { %2244 = vst.msk [vmem:[#allocation4] sm:$0xff] %vm2243_vm14, %v6243_v55  ;;  %v5609_v55 = vld [vmem:[#allocation2 + $0x84] sm:$0xff]   ;;  %2120 = vrot.lane.b32.xlu1 %v2101_v31, %s5795_s13 }
  0xd5   : > { %2697 = vst.msk [vmem:[#allocation4 + $0x8] sm:$0xff] %vm6985_vm0, %v6308_v63  ;;  %v2477_v63 = vrot.slane %v2475_v56, 1 }
  0xd6   : > { %2515 = vst.msk [vmem:[#allocation4] sm:$0xff] %vm6986_vm6, %v6337_v52  ;;  %v5627_v52 = vld [vmem:[#allocation2 + $0x60] sm:$0xff]   ;;  %v2218_v27 = vpop.permute.xlu0 %2217  ;;  %v2220_v28 = vpop.permute.xlu1 %2219 }
  0xd7   : > { %2696 = vst.msk [vmem:[#allocation4] sm:$0xff] %vm6985_vm0, %v6289_v59  ;;  %v2659_v59 = vrot.slane %v5616_v49, 1  ;;  %v2478_v23 = vor.u32 %v2477_v63, %v2473_v15 }
  0xd8   : > { %2135 = vst.msk [vmem:[#allocation4 + $0x10] sm:$0xff] %vm2132_vm11, %v2107_v18  ;;  %2136 = vst.msk [vmem:[#allocation4 + $0x18] sm:$0xff] %vm2132_vm11, %v2109_v19  ;;  %2231 = vrot.lane.b32.xlu1 %v5609_v55, %s5792_s25 }
  0xd9   : > { %1122 = vst.msk [vmem:[#allocation4 + $0x38] sm:$0xff] %vm1114_vm12, %v5626_v37  ;;  %1123 = vst.msk [vmem:[#allocation4 + $0x40] sm:$0xff] %vm1114_vm12, %v5627_v52  ;;  %v2661_v35 = vsel %vm1507_vm9, %v2659_v59, %v2660_v17  ;;  %v2483_v13 = vsel %vm1235_vm10, %v2478_v23, %v2482_v26 }
  0xda   : > { %2246 = vst.msk [vmem:[#allocation4 + $0x10] sm:$0xff] %vm2243_vm14, %v2218_v27  ;;  %2247 = vst.msk [vmem:[#allocation4 + $0x18] sm:$0xff] %vm2243_vm14, %v2220_v28  ;;  %v2489_v36 = vpop.permute.xlu0 %2488  ;;  %v2491_v12 = vpop.permute.xlu1 %2490  ;;  %2681 = vrot.lane.b32.xlu0 %v2661_v35, %s5794_s12  ;;  %v536_v35 = vsel %vm5877_vm2, 0, %v535_v34 }
  0xdb   : > { %2517 = vst.msk [vmem:[#allocation4 + $0x10] sm:$0xff] %vm6986_vm6, %v2489_v36  ;;  %2518 = vst.msk [vmem:[#allocation4 + $0x18] sm:$0xff] %vm6986_vm6, %v2491_v12  ;;  %v568_v36 = vld [vmem:[#allocation3 + $0x14] sm:$0x1] }
  0xdc   : > { %v2707_v40 = vld [vmem:[#allocation4 + $0x8] sm:$0xff]  ;;  %2502 = vrot.lane.b32.xlu1 %v2483_v13, %s5798_s22  ;;  %537 = vst [vmem:[#allocation3] sm:$0x1] %v536_v35  ;;  %v569_v12 = vsel %vm5885_vm4, 0, %v568_v36 }
  0xdd   : > { %570 = vst [vmem:[#allocation3 + $0x14] sm:$0x1] %v569_v12  ;;  %v589_v12 = vld [vmem:[#allocation3 + $0x68] sm:$0x1] }
  0xde   : > { %v2706_v58 = vld [vmem:[#allocation4] sm:$0xff]  ;;  %v2670_v41 = vpop.permute.xlu0 %2669  ;;  %v1365_v10 = vpop.permute.xlu1 %1364 }
  0xdf   : > { %5382 = vmatprep.mubr.msk.bf16.mxu0 %vm6984_vm5, %v2706_v58  ;;  %2698 = vst.msk [vmem:[#allocation4 + $0x10] sm:$0xff] %vm6985_vm0, %v2670_v41  ;;  %v565_v58 = vld [vmem:[#allocation3 + $0x8] sm:$0x1] }
  0xe0   : > { %5383 = vmatmul.mubr.msk.bf16.vlgmr.msra.gmra.mrb[0].mxu0 %vm6984_vm5, %v2707_v40  ;;  %1391 = vst.msk [vmem:[#allocation4 + $0x20] sm:$0xff] %vm1386_vm13, %v1365_v10  ;;  %2683 = vrot.lane.b32.xlu1 %v2664_v46, %s5794_s12  ;;  %v566_v25 = vsel %vm5885_vm4, 0, %v565_v58  ;;  %v545_v40 = vsel %vm5877_vm2, 0, %v544_v51  ;;  %v541_v46 = vld [vmem:[#allocation3 + $0x18] sm:$0x1] }
  0xe1   : > { %567 = vst [vmem:[#allocation3 + $0x8] sm:$0x1] %v566_v25  ;;  %546 = vst [vmem:[#allocation3 + $0x24] sm:$0x1] %v545_v40  ;;  %v590_v25 = vsel %vm5885_vm4, 0, %v589_v12 }
  0xe2   : > { %v2672_v29 = vpop.permute.xlu0 %2671  ;;  %v1367_v20 = vpop.permute.xlu1 %1366  ;;  %591 = vst [vmem:[#allocation3 + $0x68] sm:$0x1] %v590_v25 }
  0xe3   : > { %2699 = vst.msk [vmem:[#allocation4 + $0x18] sm:$0xff] %vm6985_vm0, %v2672_v29 }
  0xe4   : > { %1392 = vst.msk [vmem:[#allocation4 + $0x28] sm:$0xff] %vm1386_vm13, %v1367_v20  ;;  %v542_v20 = vsel %vm5877_vm2, 0, %v541_v46 }
  0xe5   : > { %543 = vst [vmem:[#allocation3 + $0x18] sm:$0x1] %v542_v20  ;;  %v3171_v20 = vld [vmem:[#allocation3] sm:$0xf] }
  0xe6   : > { %v1547_v48 = vpop.permute.xlu0 %1546  ;;  %v1549_v50 = vpop.permute.xlu1 %1548  ;;  %v2708_v54 = vld [vmem:[#allocation4 + $0x10] sm:$0xff] }
  0xe7   : > { %1573 = vst.msk [vmem:[#allocation4 + $0x20] sm:$0xff] %vm1568_vm15, %v1547_v48  ;;  %1574 = vst.msk [vmem:[#allocation4 + $0x28] sm:$0xff] %vm1568_vm15, %v1549_v50  ;;  %5386 = vmatprep.mubr.msk.bf16.mxu0 %vm6984_vm5, %v2708_v54  ;;  %v574_v48 = vld [vmem:[#allocation3 + $0x2c] sm:$0x1]  ;;  %v571_v54 = vld [vmem:[#allocation3 + $0x20] sm:$0x1] }
  0xe8   : > { %v575_v50 = vsel %vm5885_vm4, 0, %v574_v48 }
  0xe9   : > { %576 = vst [vmem:[#allocation3 + $0x2c] sm:$0x1] %v575_v50 }
  0xea   : > { %v1659_v57 = vpop.permute.xlu0 %1658  ;;  %v1661_v45 = vpop.permute.xlu1 %1660  ;;  %v2709_v60 = vld [vmem:[#allocation4 + $0x18] sm:$0xff] }
  0xeb   : > { %1685 = vst.msk [vmem:[#allocation4 + $0x20] sm:$0xff] %vm1680_vm1, %v1659_v57  ;;  %1686 = vst.msk [vmem:[#allocation4 + $0x28] sm:$0xff] %vm1680_vm1, %v1661_v45  ;;  %5387 = vmatmul.mubr.msk.bf16.gmra.mrb[4].mxu0 %vm6984_vm5, %v2709_v60  ;;  %v572_v57 = vsel %vm5885_vm4, 0, %v571_v54  ;;  %v550_v45 = vld [vmem:[#allocation3 + $0x3c] sm:$0x1] }
  0xec   : > { %573 = vst [vmem:[#allocation3 + $0x20] sm:$0x1] %v572_v57  ;;  %v3182_v57 = vld [vmem:[#allocation3 + $0x14] sm:$0x1] }
  0xee   : > { %v1930_v30 = vpop.permute.xlu0 %1929  ;;  %v1932_v53 = vpop.permute.xlu1 %1931 }
  0xef   : > { %1956 = vst.msk [vmem:[#allocation4 + $0x20] sm:$0xff] %vm1951_vm3, %v1930_v30  ;;  %1957 = vst.msk [vmem:[#allocation4 + $0x28] sm:$0xff] %vm1951_vm3, %v1932_v53  ;;  %v551_v30 = vsel %vm5877_vm2, 0, %v550_v45 }
  0xf0   : > { %552 = vst [vmem:[#allocation3 + $0x3c] sm:$0x1] %v551_v30 }
  0xf2   : > { %v2111_v4 = vpop.permute.xlu0 %2110  ;;  %v2113_v38 = vpop.permute.xlu1 %2112 }
  0xf3   : > { %2137 = vst.msk [vmem:[#allocation4 + $0x20] sm:$0xff] %vm2132_vm11, %v2111_v4  ;;  %2138 = vst.msk [vmem:[#allocation4 + $0x28] sm:$0xff] %vm2132_vm11, %v2113_v38  ;;  %v547_v38 = vld [vmem:[#allocation3 + $0x30] sm:$0x1] }
  0xf6   : > { %v2222_v61 = vpop.permute.xlu0 %2221  ;;  %v2224_v62 = vpop.permute.xlu1 %2223 }
  0xf7   : > { %2248 = vst.msk [vmem:[#allocation4 + $0x20] sm:$0xff] %vm2243_vm14, %v2222_v61  ;;  %2249 = vst.msk [vmem:[#allocation4 + $0x28] sm:$0xff] %vm2243_vm14, %v2224_v62  ;;  %v580_v62 = vld [vmem:[#allocation3 + $0x44] sm:$0x1] }
  0xfa   : > { %v2493_v42 = vpop.permute.xlu0 %2492  ;;  %v2495_v11 = vpop.permute.xlu1 %2494 }
  0xfb   : > { %2519 = vst.msk [vmem:[#allocation4 + $0x20] sm:$0xff] %vm6986_vm6, %v2493_v42  ;;  %2520 = vst.msk [vmem:[#allocation4 + $0x28] sm:$0xff] %vm6986_vm6, %v2495_v11  ;;  %v548_v42 = vsel %vm5877_vm2, 0, %v547_v38  ;;  %v577_v11 = vld [vmem:[#allocation3 + $0x38] sm:$0x1] }
  0xfc   : > { %549 = vst [vmem:[#allocation3 + $0x30] sm:$0x1] %v548_v42 }
  0xfe   : > { %v2674_v2 = vpop.permute.xlu0 %2673  ;;  %v1369_v32 = vpop.permute.xlu1 %1368 }
  0xff   : > { %2700 = vst.msk [vmem:[#allocation4 + $0x20] sm:$0xff] %vm6985_vm0, %v2674_v2  ;;  %v581_v2 = vsel %vm5885_vm4, 0, %v580_v62 }
 0x100   : > { %1393 = vst.msk [vmem:[#allocation4 + $0x30] sm:$0xff] %vm1386_vm13, %v1369_v32  ;;  %582 = vst [vmem:[#allocation3 + $0x44] sm:$0x1] %v581_v2  ;;  %v556_v32 = vld [vmem:[#allocation3 + $0x54] sm:$0x1] }
 0x102   : > { %v2676_v9 = vpop.permute.xlu0 %2675  ;;  %v1371_v37 = vpop.permute.xlu1 %1370 }
 0x103   : > { %2701 = vst.msk [vmem:[#allocation4 + $0x28] sm:$0xff] %vm6985_vm0, %v2676_v9  ;;  %v578_v9 = vsel %vm5885_vm4, 0, %v577_v11 }
 0x104   : > { %1394 = vst.msk [vmem:[#allocation4 + $0x38] sm:$0xff] %vm1386_vm13, %v1371_v37  ;;  %579 = vst [vmem:[#allocation3 + $0x38] sm:$0x1] %v578_v9 }
 0x106   : > { %v1551_v1 = vpop.permute.xlu0 %1550  ;;  %v2710_v47 = vld [vmem:[#allocation4 + $0x20] sm:$0xff]  ;;  %v1553_v15 = vpop.permute.xlu1 %1552 }
 0x107   : > { %1575 = vst.msk [vmem:[#allocation4 + $0x30] sm:$0xff] %vm1568_vm15, %v1551_v1  ;;  %5390 = vmatprep.mubr.msk.bf16.mxu0 %vm6984_vm5, %v2710_v47  ;;  %1576 = vst.msk [vmem:[#allocation4 + $0x38] sm:$0xff] %vm1568_vm15, %v1553_v15  ;;  %v557_v1 = vsel %vm5877_vm2, 0, %v556_v32  ;;  %v553_v47 = vld [vmem:[#allocation3 + $0x48] sm:$0x1] }
 0x108   : > { %558 = vst [vmem:[#allocation3 + $0x54] sm:$0x1] %v557_v1  ;;  %v554_v37 = vsel %vm5877_vm2, 0, %v553_v47  ;;  %v583_v15 = vld [vmem:[#allocation3 + $0x50] sm:$0x1] }
 0x109   : > { %555 = vst [vmem:[#allocation3 + $0x48] sm:$0x1] %v554_v37 }
 0x10a   : > { %v1663_v16 = vpop.permute.xlu0 %1662  ;;  %v2711_v14 = vld [vmem:[#allocation4 + $0x28] sm:$0xff]  ;;  %v1665_v18 = vpop.permute.xlu1 %1664 }
 0x10b   : > { %1687 = vst.msk [vmem:[#allocation4 + $0x30] sm:$0xff] %vm1680_vm1, %v1663_v16  ;;  %5391 = vmatmul.mubr.msk.bf16.gmra.mrb[8].mxu0 %vm6984_vm5, %v2711_v14  ;;  %1688 = vst.msk [vmem:[#allocation4 + $0x38] sm:$0xff] %vm1680_vm1, %v1665_v18  ;;  %v586_v16 = vld [vmem:[#allocation3 + $0x5c] sm:$0x1]  ;;  %v562_v18 = vld [vmem:[#allocation3 + $0x6c] sm:$0x1] }
 0x10c   : > { %v587_v14 = vsel %vm5885_vm4, 0, %v586_v16 }
 0x10d   : > { %588 = vst [vmem:[#allocation3 + $0x5c] sm:$0x1] %v587_v14 }
 0x10e   : > { %v1934_v56 = vpop.permute.xlu0 %1933  ;;  %v1936_v21 = vpop.permute.xlu1 %1935 }
 0x10f   : > { %1958 = vst.msk [vmem:[#allocation4 + $0x30] sm:$0xff] %vm1951_vm3, %v1934_v56  ;;  %1959 = vst.msk [vmem:[#allocation4 + $0x38] sm:$0xff] %vm1951_vm3, %v1936_v21  ;;  %v584_v56 = vsel %vm5885_vm4, 0, %v583_v15 }
 0x110   : > { %585 = vst [vmem:[#allocation3 + $0x50] sm:$0x1] %v584_v56 }
 0x112   : > { %v2115_v19 = vpop.permute.xlu0 %2114  ;;  %v2117_v5 = vpop.permute.xlu1 %2116 }
 0x113   : > { %2139 = vst.msk [vmem:[#allocation4 + $0x30] sm:$0xff] %vm2132_vm11, %v2115_v19  ;;  %2140 = vst.msk [vmem:[#allocation4 + $0x38] sm:$0xff] %vm2132_vm11, %v2117_v5  ;;  %v563_v19 = vsel %vm5877_vm2, 0, %v562_v18 }
 0x114   : > { %564 = vst [vmem:[#allocation3 + $0x6c] sm:$0x1] %v563_v19 }
 0x116   : > { %v2226_v31 = vpop.permute.xlu0 %2225  ;;  %v2228_v22 = vpop.permute.xlu1 %2227 }
 0x117   : > { %2250 = vst.msk [vmem:[#allocation4 + $0x30] sm:$0xff] %vm2243_vm14, %v2226_v31  ;;  %2251 = vst.msk [vmem:[#allocation4 + $0x38] sm:$0xff] %vm2243_vm14, %v2228_v22  ;;  %v6580_v31 = vld [vmem:[%s6977_s4] ss:$0 sm:$0xff] }
 0x11a   : > { %v2497_v55 = vpop.permute.xlu0 %2496  ;;  %v2499_v52 = vpop.permute.xlu1 %2498 }
 0x11b   : > { %2521 = vst.msk [vmem:[#allocation4 + $0x30] sm:$0xff] %vm6986_vm6, %v2497_v55  ;;  %2522 = vst.msk [vmem:[#allocation4 + $0x38] sm:$0xff] %vm6986_vm6, %v2499_v52 }
 0x11e   : > { %v2678_v63 = vpop.permute.xlu0 %2677  ;;  %v1373_v24 = vpop.permute.xlu1 %1372 }
 0x11f   : > { %2702 = vst.msk [vmem:[#allocation4 + $0x30] sm:$0xff] %vm6985_vm0, %v2678_v63 }
 0x120   : > { %1395 = vst.msk [vmem:[#allocation4 + $0x40] sm:$0xff] %vm1386_vm13, %v1373_v24 }
 0x122   : > { %v2680_v49 = vpop.permute.xlu0 %2679  ;;  %v1375_v59 = vpop.permute.xlu1 %1374 }
 0x123   : > { %2703 = vst.msk [vmem:[#allocation4 + $0x38] sm:$0xff] %vm6985_vm0, %v2680_v49 }
 0x124   : > { %1396 = vst.msk [vmem:[#allocation4 + $0x48] sm:$0xff] %vm1386_vm13, %v1375_v59 }
 0x126   : > { %v1555_v8 = vpop.permute.xlu0 %1554  ;;  %v2712_v6 = vld [vmem:[#allocation4 + $0x30] sm:$0xff]  ;;  %v1557_v23 = vpop.permute.xlu1 %1556 }
 0x127   : > { %5394 = vmatprep.mubr.msk.bf16.mxu0 %vm6984_vm5, %v2712_v6  ;;  %1577 = vst.msk [vmem:[#allocation4 + $0x40] sm:$0xff] %vm1568_vm15, %v1555_v8  ;;  %1578 = vst.msk [vmem:[#allocation4 + $0x48] sm:$0xff] %vm1568_vm15, %v1557_v23 }
 0x12a   : > { %v1667_v26 = vpop.permute.xlu0 %1666  ;;  %v2713_v27 = vld [vmem:[#allocation4 + $0x38] sm:$0xff] }
 0x12b   : > { %1689 = vst.msk [vmem:[#allocation4 + $0x40] sm:$0xff] %vm1680_vm1, %v1667_v26  ;;  %5395 = vmatmul.mubr.msk.bf16.gmra.mrb[12].mxu0 %vm6984_vm5, %v2713_v27  ;;  %v559_v27 = vld [vmem:[#allocation3 + $0x60] sm:$0x1] }
 0x12c   : > { %v1669_v33 = vpop.permute.xlu1 %1668 }
 0x12d   : > { %1690 = vst.msk [vmem:[#allocation4 + $0x48] sm:$0xff] %vm1680_vm1, %v1669_v33  ;;  %v592_v33 = vld [vmem:[#allocation3 + $0x74] sm:$0x1] }
 0x12e   : > { %v1938_v28 = vpop.permute.xlu0 %1937  ;;  %v593_v36 = vsel %vm5885_vm4, 0, %v592_v33  ;;  %vm7000_vm4 = vcmask 27648  }
 0x12f   : > { %1960 = vst.msk [vmem:[#allocation4 + $0x40] sm:$0xff] %vm1951_vm3, %v1938_v28  ;;  %594 = vst [vmem:[#allocation3 + $0x74] sm:$0x1] %v593_v36 }
 0x132   : > { %v2119_v17 = vpop.permute.xlu0 %2118 }
 0x133   : > { %2141 = vst.msk [vmem:[#allocation4 + $0x40] sm:$0xff] %vm2132_vm11, %v2119_v17  ;;  %v560_v17 = vsel %vm5877_vm2, 0, %v559_v27 }
 0x134   : > { %561 = vst [vmem:[#allocation3 + $0x60] sm:$0x1] %v560_v17 }
 0x136   : > { %v2230_v13 = vpop.permute.xlu0 %2229 }
 0x137   : > { %2252 = vst.msk [vmem:[#allocation4 + $0x40] sm:$0xff] %vm2243_vm14, %v2230_v13 }
 0x141   : > { %v1940_v7 = vpop.permute.xlu1 %1939 }
 0x142   : > { %1961 = vst.msk [vmem:[#allocation4 + $0x48] sm:$0xff] %vm1951_vm3, %v1940_v7 }
 0x145   : > { %v2501_v10 = vpop.permute.xlu0 %2500 }
 0x146   : > { %v2121_v41 = vpop.permute.xlu1 %2120  ;;  %2523 = vst.msk [vmem:[#allocation4 + $0x40] sm:$0xff] %vm6986_vm6, %v2501_v10 }
 0x147   : > { %2142 = vst.msk [vmem:[#allocation4 + $0x48] sm:$0xff] %vm2132_vm11, %v2121_v41  ;;  %v3178_v41 = vld [vmem:[#allocation3 + $0xc] sm:$0xf] }
 0x14a   : > { %v2232_v43 = vpop.permute.xlu1 %2231 }
 0x14b   : > { %2253 = vst.msk [vmem:[#allocation4 + $0x48] sm:$0xff] %vm2243_vm14, %v2232_v43 }
 0x14c   : > { %v2682_v29 = vpop.permute.xlu0 %2681 }
 0x14d   : > { %2704 = vst.msk [vmem:[#allocation4 + $0x40] sm:$0xff] %vm6985_vm0, %v2682_v29 }
 0x14e   : > { %v2503_v60 = vpop.permute.xlu1 %2502 }
 0x14f   : > { %2524 = vst.msk [vmem:[#allocation4 + $0x48] sm:$0xff] %vm6986_vm6, %v2503_v60  ;;  %vm7008_vm6 = vcmask (!%p5174_p13), 24576  }
 0x152   : > { %v2684_v4 = vpop.permute.xlu1 %2683 }
 0x153   : > { %2705 = vst.msk [vmem:[#allocation4 + $0x48] sm:$0xff] %vm6985_vm0, %v2684_v4 }
 0x154   : > { %v2714_v53 = vld [vmem:[#allocation4 + $0x40] sm:$0xff] }
 0x155   : > { %5398 = vmatprep.mubr.msk.bf16.mxu0 %vm6984_vm5, %v2714_v53 }
 0x15a   : > { %v2715_v61 = vld [vmem:[#allocation4 + $0x48] sm:$0xff] }
 0x15b   : > { %5399 = vmatmul.mubr.msk.bf16.gmra.mrb[16].mxu0 %vm6984_vm5, %v2715_v61  ;;  %v3175_v61 = vld [vmem:[#allocation3 + $0x8] sm:$0x1]  ;;  %vm7001_vm5 = vmmov %vm7000_vm4 }
 0x1b3   : > { %v5384_v21 = vpop.f32.mrb[0].mxu0 }
 0x1b4   : > { %v2821_v55 = vadd.f32 %v5384_v21, %v6580_v31  ;;  %v2812_v5 = vpop.f32.mrb[1].mxu0 }
 0x1b5   : > { %v2813_v63 = vadd.f32 %v6580_v31, %v2812_v5  ;;  %v5385_v22 = vpop.f32.mrb[2].mxu0 }
 0x1b6   : > { %v2893_v49 = vmax.f32 %v2821_v55, 0.0  ;;  %v2824_v52 = vadd.f32 %v5385_v22, %v6580_v31  ;;  %v2815_v8 = vpop.f32.mrb[3].mxu0 }
 0x1b7   : > { %v2891_v6 = vmax.f32 %v2813_v63, 0.0  ;;  %v2816_v24 = vadd.f32 %v6580_v31, %v2815_v8 }
 0x1b8   : > { %v5334_v26 = vpack.c.bf16 %v2893_v49, %v2893_v49  ;;  %v2894_v59 = vmax.f32 %v2824_v52, 0.0 }
 0x1b9   : > { %v5332_v28 = vpack.c.bf16 %v2891_v6, %v2891_v6  ;;  %v2892_v23 = vmax.f32 %v2816_v24, 0.0 }
 0x1ba   : > { %v2989_v34 = vshrl.u32 %v5334_v26, 16  ;;  %v5335_v35 = vpack.c.bf16 %v2894_v59, %v2894_v59  ;;  %v2992_v40 = vshll.u32 %v5334_v26, 16 }
 0x1bb   : > { %v2972_v58 = vshrl.u32 %v5332_v28, 16  ;;  %v5333_v13 = vpack.c.bf16 %v2892_v23, %v2892_v23  ;;  %v2975_v43 = vshll.u32 %v5332_v28, 16  ;;  %v3192_v28 = vld [vmem:[#allocation3 + $0x24] sm:$0xf] }
 0x1bc   : > { %v2991_v51 = vrot.slane %v2989_v34, 7  ;;  %v2997_v7 = vshrl.u32 %v5335_v35, 16  ;;  %v3000_v50 = vshll.u32 %v5335_v35, 16  ;;  %v3185_v35 = vld [vmem:[#allocation3 + $0x18] sm:$0xf] }
 0x1bd   : > { %v2974_v10 = vrot.slane %v2972_v58, 7  ;;  %v2980_v46 = vshrl.u32 %v5333_v13, 16  ;;  %v2983_v60 = vshll.u32 %v5333_v13, 16  ;;  %v3196_v13 = vld [vmem:[#allocation3 + $0x2c] sm:$0x1] }
 0x1be   : > { %v2994_v29 = vor.u32 %v2992_v40, %v2991_v51  ;;  %v2999_v48 = vrot.slane %v2997_v7, 7  ;;  %v2995_v30 = vrot.slane %v2991_v51, 4  ;;  %v5388_v32 = vpop.f32.mrb[4].mxu0 }
 0x1bf   : > { %v2977_v54 = vor.u32 %v2975_v43, %v2974_v10  ;;  %v2982_v45 = vrot.slane %v2980_v46, 7  ;;  %v2978_v38 = vrot.slane %v2974_v10, 4  ;;  %v2837_v37 = vadd.f32 %v5388_v32, %v6580_v31  ;;  %v2828_v16 = vpop.f32.mrb[5].mxu0  ;;  %v3189_v43 = vld [vmem:[#allocation3 + $0x20] sm:$0x1] }
 0x1c0   : > { %v3179_v3 = vsel %vm5935_vm8, %v2994_v29, %v3178_v41  ;;  %v3002_v4 = vor.u32 %v3000_v50, %v2999_v48  ;;  %v3004_v53 = vrot.slane %v2999_v48, 4  ;;  %v2829_v14 = vadd.f32 %v6580_v31, %v2828_v16  ;;  %v5389_v15 = vpop.f32.mrb[6].mxu0 }
 0x1c1   : > { %3180 = vst [vmem:[#allocation3 + $0xc] sm:$0xf] %v3179_v3  ;;  %v3172_v42 = vsel %vm5935_vm8, %v2977_v54, %v3171_v20  ;;  %v2985_v62 = vor.u32 %v2983_v60, %v2982_v45  ;;  %v2987_v2 = vrot.slane %v2982_v45, 4  ;;  %v2897_v56 = vmax.f32 %v2837_v37, 0.0  ;;  %v2831_v19 = vpop.f32.mrb[7].mxu0 }
 0x1c2   : > { %3173 = vst [vmem:[#allocation3] sm:$0xf] %v3172_v42  ;;  %v3003_v11 = vsel %vm5929_vm7, %v2995_v30, %v3002_v4  ;;  %v3183_v9 = vsel %vm5877_vm2, %v3004_v53, %v3182_v57  ;;  %v2840_v18 = vadd.f32 %v5389_v15, %v6580_v31  ;;  %v2895_v21 = vmax.f32 %v2829_v14, 0.0 }
 0x1c3   : > { %3181 = vst.msk [vmem:[#allocation3 + $0x10] sm:$0xf] %vm7000_vm4, %v3003_v11  ;;  %3184 = vst [vmem:[#allocation3 + $0x14] sm:$0x1] %v3183_v9  ;;  %v2986_v1 = vsel %vm5929_vm7, %v2978_v38, %v2985_v62  ;;  %v3176_v47 = vsel %vm5877_vm2, %v2987_v2, %v3175_v61  ;;  %v2832_v55 = vadd.f32 %v6580_v31, %v2831_v19  ;;  %v3206_v19 = vld [vmem:[#allocation3 + $0x3c] sm:$0xf] }
 0x1c4   : > { %3174 = vst.msk [vmem:[#allocation3 + $0x4] sm:$0xf] %vm7001_vm5, %v2986_v1  ;;  %3177 = vst [vmem:[#allocation3 + $0x8] sm:$0x1] %v3176_v47  ;;  %v5338_v5 = vpack.c.bf16 %v2897_v56, %v2897_v56  ;;  %v2898_v63 = vmax.f32 %v2840_v18, 0.0  ;;  %v5336_v22 = vpack.c.bf16 %v2895_v21, %v2895_v21 }
 0x1c5   : > { %v2896_v49 = vmax.f32 %v2832_v55, 0.0  ;;  %vm7002_vm5 = vmmov %vm7000_vm4  ;;  %3248 = vst.msk [vmem:[#allocation3 + $0x8] sm:$0x1] (!%p5174_p13), %vm7008_vm6, %v5800_v44 }
 0x1c6   : > { %v3023_v52 = vshrl.u32 %v5338_v5, 16  ;;  %v5339_v8 = vpack.c.bf16 %v2898_v63, %v2898_v63  ;;  %v3006_v6 = vshrl.u32 %v5336_v22, 16  ;;  %v3026_v59 = vshll.u32 %v5338_v5, 16 }
 0x1c7   : > { %v5337_v24 = vpack.c.bf16 %v2896_v49, %v2896_v49  ;;  %v3009_v17 = vshll.u32 %v5336_v22, 16  ;;  %v3199_v22 = vld [vmem:[#allocation3 + $0x30] sm:$0xf] }
 0x1c8   : > { %v3025_v26 = vrot.slane %v3023_v52, 7  ;;  %v3031_v27 = vshrl.u32 %v5339_v8, 16  ;;  %v3008_v23 = vrot.slane %v3006_v6, 7  ;;  %v3034_v12 = vshll.u32 %v5339_v8, 16  ;;  %v3210_v6 = vld [vmem:[#allocation3 + $0x44] sm:$0x1] }
 0x1c9   : > { %v3014_v33 = vshrl.u32 %v5337_v24, 16  ;;  %v3017_v51 = vshll.u32 %v5337_v24, 16 }
 0x1ca   : > { %v3028_v34 = vor.u32 %v3026_v59, %v3025_v26  ;;  %v3033_v36 = vrot.slane %v3031_v27, 7  ;;  %v3011_v58 = vor.u32 %v3009_v17, %v3008_v23  ;;  %v3029_v40 = vrot.slane %v3025_v26, 4  ;;  %v3203_v17 = vld [vmem:[#allocation3 + $0x38] sm:$0x1] }
 0x1cb   : > { %v3016_v25 = vrot.slane %v3014_v33, 7  ;;  %v3012_v46 = vrot.slane %v3008_v23, 4 }
 0x1cc   : > { %v3193_v7 = vsel %vm5935_vm8, %v3028_v34, %v3192_v28  ;;  %v3036_v41 = vor.u32 %v3034_v12, %v3033_v36  ;;  %v3038_v10 = vrot.slane %v3033_v36, 4  ;;  %v3186_v29 = vsel %vm5935_vm8, %v3011_v58, %v3185_v35 }
 0x1cd   : > { %3194 = vst [vmem:[#allocation3 + $0x24] sm:$0xf] %v3193_v7  ;;  %v3019_v20 = vor.u32 %v3017_v51, %v3016_v25  ;;  %v3021_v48 = vrot.slane %v3016_v25, 4  ;;  %3187 = vst [vmem:[#allocation3 + $0x18] sm:$0xf] %v3186_v29 }
 0x1ce   : > { %v3037_v50 = vsel %vm5929_vm7, %v3029_v40, %v3036_v41  ;;  %v3197_v54 = vsel %vm5877_vm2, %v3038_v10, %v3196_v13 }
 0x1cf   : > { %3195 = vst.msk [vmem:[#allocation3 + $0x28] sm:$0xf] %vm7002_vm5, %v3037_v50  ;;  %3198 = vst [vmem:[#allocation3 + $0x2c] sm:$0x1] %v3197_v54  ;;  %v3020_v57 = vsel %vm5929_vm7, %v3012_v46, %v3019_v20  ;;  %v3190_v45 = vsel %vm5877_vm2, %v3021_v48, %v3189_v43 }
 0x1d0   : > { %3188 = vst.msk [vmem:[#allocation3 + $0x1c] sm:$0xf] %vm7000_vm4, %v3020_v57  ;;  %3191 = vst [vmem:[#allocation3 + $0x20] sm:$0x1] %v3190_v45 }
 0x1d1   : > { %vm7003_vm5 = vmmov %vm7000_vm4 }
 0x1de   : > { %v5392_v60 = vpop.f32.mrb[8].mxu0 }
 0x1df   : > { %v2853_v30 = vadd.f32 %v5392_v60, %v6580_v31  ;;  %v2844_v3 = vpop.f32.mrb[9].mxu0 }
 0x1e0   : > { %v2845_v4 = vadd.f32 %v6580_v31, %v2844_v3  ;;  %v5393_v53 = vpop.f32.mrb[10].mxu0 }
 0x1e1   : > { %v2901_v61 = vmax.f32 %v2853_v30, 0.0  ;;  %v2856_v38 = vadd.f32 %v5393_v53, %v6580_v31  ;;  %v2847_v42 = vpop.f32.mrb[11].mxu0 }
 0x1e2   : > { %v2899_v62 = vmax.f32 %v2845_v4, 0.0  ;;  %v2848_v2 = vadd.f32 %v6580_v31, %v2847_v42  ;;  %v3220_v42 = vld [vmem:[#allocation3 + $0x54] sm:$0xf] }
 0x1e3   : > { %v5342_v11 = vpack.c.bf16 %v2901_v61, %v2901_v61  ;;  %v2902_v9 = vmax.f32 %v2856_v38, 0.0 }
 0x1e4   : > { %v5340_v32 = vpack.c.bf16 %v2899_v62, %v2899_v62  ;;  %v2900_v1 = vmax.f32 %v2848_v2, 0.0 }
 0x1e5   : > { %v3057_v47 = vshrl.u32 %v5342_v11, 16  ;;  %v5343_v37 = vpack.c.bf16 %v2902_v9, %v2902_v9  ;;  %v3060_v56 = vshll.u32 %v5342_v11, 16 }
 0x1e6   : > { %v3040_v16 = vshrl.u32 %v5340_v32, 16  ;;  %v5341_v14 = vpack.c.bf16 %v2900_v1, %v2900_v1  ;;  %v3043_v55 = vshll.u32 %v5340_v32, 16  ;;  %v3213_v32 = vld [vmem:[#allocation3 + $0x48] sm:$0xf] }
 0x1e7   : > { %v3059_v15 = vrot.slane %v3057_v47, 7  ;;  %v3065_v18 = vshrl.u32 %v5343_v37, 16  ;;  %v3068_v52 = vshll.u32 %v5343_v37, 16 }
 0x1e8   : > { %v3042_v21 = vrot.slane %v3040_v16, 7  ;;  %v3048_v5 = vshrl.u32 %v5341_v14, 16  ;;  %v3051_v26 = vshll.u32 %v5341_v14, 16  ;;  %v3224_v16 = vld [vmem:[#allocation3 + $0x5c] sm:$0x1] }
 0x1e9   : > { %v3062_v63 = vor.u32 %v3060_v56, %v3059_v15  ;;  %v3067_v49 = vrot.slane %v3065_v18, 7  ;;  %v3063_v59 = vrot.slane %v3059_v15, 4 }
 0x1ea   : > { %v3045_v8 = vor.u32 %v3043_v55, %v3042_v21  ;;  %v3050_v24 = vrot.slane %v3048_v5, 7  ;;  %v3046_v33 = vrot.slane %v3042_v21, 4  ;;  %v3217_v55 = vld [vmem:[#allocation3 + $0x50] sm:$0x1] }
 0x1eb   : > { %v3207_v27 = vsel %vm5935_vm8, %v3062_v63, %v3206_v19  ;;  %v3070_v28 = vor.u32 %v3068_v52, %v3067_v49  ;;  %v3072_v23 = vrot.slane %v3067_v49, 4 }
 0x1ec   : > { %3208 = vst [vmem:[#allocation3 + $0x3c] sm:$0xf] %v3207_v27  ;;  %v3200_v34 = vsel %vm5935_vm8, %v3045_v8, %v3199_v22  ;;  %v3053_v35 = vor.u32 %v3051_v26, %v3050_v24  ;;  %v3055_v36 = vrot.slane %v3050_v24, 4 }
 0x1ed   : > { %3201 = vst [vmem:[#allocation3 + $0x30] sm:$0xf] %v3200_v34  ;;  %v3071_v12 = vsel %vm5929_vm7, %v3063_v59, %v3070_v28  ;;  %v3211_v58 = vsel %vm5877_vm2, %v3072_v23, %v3210_v6 }
 0x1ee   : > { %3209 = vst.msk [vmem:[#allocation3 + $0x40] sm:$0xf] %vm7003_vm5, %v3071_v12  ;;  %3212 = vst [vmem:[#allocation3 + $0x44] sm:$0x1] %v3211_v58  ;;  %v3054_v13 = vsel %vm5929_vm7, %v3046_v33, %v3053_v35  ;;  %v3204_v25 = vsel %vm5877_vm2, %v3055_v36, %v3203_v17 }
 0x1ef   : > { %3202 = vst.msk [vmem:[#allocation3 + $0x34] sm:$0xf] %vm7000_vm4, %v3054_v13  ;;  %3205 = vst [vmem:[#allocation3 + $0x38] sm:$0x1] %v3204_v25 }
 0x1f0   : > { %vm7004_vm5 = vmmov %vm7000_vm4 }
 0x1fe   : > { %v5396_v51 = vpop.f32.mrb[12].mxu0 }
 0x1ff   : > { %v2869_v40 = vadd.f32 %v5396_v51, %v6580_v31  ;;  %v2860_v7 = vpop.f32.mrb[13].mxu0 }
 0x200   : > { %v2861_v41 = vadd.f32 %v6580_v31, %v2860_v7  ;;  %v5397_v10 = vpop.f32.mrb[14].mxu0 }
 0x201   : > { %v2905_v43 = vmax.f32 %v2869_v40, 0.0  ;;  %v2872_v46 = vadd.f32 %v5397_v10, %v6580_v31  ;;  %v2863_v29 = vpop.f32.mrb[15].mxu0 }
 0x202   : > { %v2903_v20 = vmax.f32 %v2861_v41, 0.0  ;;  %v2864_v48 = vadd.f32 %v6580_v31, %v2863_v29  ;;  %v3234_v29 = vld [vmem:[#allocation3 + $0x6c] sm:$0xf] }
 0x203   : > { %v5346_v50 = vpack.c.bf16 %v2905_v43, %v2905_v43  ;;  %v2906_v54 = vmax.f32 %v2872_v46, 0.0 }
 0x204   : > { %v5344_v57 = vpack.c.bf16 %v2903_v20, %v2903_v20  ;;  %v2904_v45 = vmax.f32 %v2864_v48, 0.0 }
 0x205   : > { %v3091_v60 = vshrl.u32 %v5346_v50, 16  ;;  %v5347_v30 = vpack.c.bf16 %v2906_v54, %v2906_v54  ;;  %v3094_v61 = vshll.u32 %v5346_v50, 16 }
 0x206   : > { %v3074_v3 = vshrl.u32 %v5344_v57, 16  ;;  %v5345_v4 = vpack.c.bf16 %v2904_v45, %v2904_v45  ;;  %v3077_v2 = vshll.u32 %v5344_v57, 16  ;;  %v3227_v57 = vld [vmem:[#allocation3 + $0x60] sm:$0xf] }
 0x207   : > { %v3093_v53 = vrot.slane %v3091_v60, 7  ;;  %v3099_v38 = vshrl.u32 %v5347_v30, 16  ;;  %v3102_v47 = vshll.u32 %v5347_v30, 16  ;;  %v3238_v30 = vld [vmem:[#allocation3 + $0x74] sm:$0x1] }
 0x208   : > { %v3076_v62 = vrot.slane %v3074_v3, 7  ;;  %v3082_v11 = vshrl.u32 %v5345_v4, 16  ;;  %v3085_v15 = vshll.u32 %v5345_v4, 16 }
 0x209   : > { %v3096_v9 = vor.u32 %v3094_v61, %v3093_v53  ;;  %v3101_v1 = vrot.slane %v3099_v38, 7  ;;  %v3097_v56 = vrot.slane %v3093_v53, 4 }
 0x20a   : > { %v3079_v37 = vor.u32 %v3077_v2, %v3076_v62  ;;  %v3084_v14 = vrot.slane %v3082_v11, 7  ;;  %v3080_v5 = vrot.slane %v3076_v62, 4  ;;  %v3231_v62 = vld [vmem:[#allocation3 + $0x68] sm:$0x1] }
 0x20b   : > { %v3221_v18 = vsel %vm5935_vm8, %v3096_v9, %v3220_v42  ;;  %v3104_v19 = vor.u32 %v3102_v47, %v3101_v1  ;;  %v3106_v21 = vrot.slane %v3101_v1, 4 }
 0x20c   : > { %3222 = vst [vmem:[#allocation3 + $0x54] sm:$0xf] %v3221_v18  ;;  %v3214_v63 = vsel %vm5935_vm8, %v3079_v37, %v3213_v32  ;;  %v3087_v22 = vor.u32 %v3085_v15, %v3084_v14  ;;  %v3089_v49 = vrot.slane %v3084_v14, 4 }
 0x20d   : > { %3215 = vst [vmem:[#allocation3 + $0x48] sm:$0xf] %v3214_v63  ;;  %v3105_v52 = vsel %vm5929_vm7, %v3097_v56, %v3104_v19  ;;  %v3225_v8 = vsel %vm5877_vm2, %v3106_v21, %v3224_v16 }
 0x20e   : > { %3223 = vst.msk [vmem:[#allocation3 + $0x58] sm:$0xf] %vm7004_vm5, %v3105_v52  ;;  %3226 = vst [vmem:[#allocation3 + $0x5c] sm:$0x1] %v3225_v8  ;;  %v3088_v6 = vsel %vm5929_vm7, %v3080_v5, %v3087_v22  ;;  %v3218_v24 = vsel %vm5877_vm2, %v3089_v49, %v3217_v55 }
 0x20f   : > { %3216 = vst.msk [vmem:[#allocation3 + $0x4c] sm:$0xf] %vm7000_vm4, %v3088_v6  ;;  %3219 = vst [vmem:[#allocation3 + $0x50] sm:$0x1] %v3218_v24 }
 0x210   : > { %vm7005_vm5 = vmmov %vm7000_vm4 }
 0x22e   : > { %v5400_v26 = vpop.f32.mrb[16].mxu0 }
 0x22f   : > { %v2885_v59 = vadd.f32 %v5400_v26, %v6580_v31  ;;  %v2876_v27 = vpop.f32.mrb[17].mxu0 }
 0x230   : > { %v2877_v28 = vadd.f32 %v6580_v31, %v2876_v27  ;;  %v5401_v23 = vpop.f32.mrb[18].mxu0 }
 0x231   : > { %v2909_v17 = vmax.f32 %v2885_v59, 0.0  ;;  %v2888_v33 = vadd.f32 %v5401_v23, %v6580_v31  ;;  %v2879_v34 = vpop.f32.mrb[19].mxu0 }
 0x232   : > { %v2907_v35 = vmax.f32 %v2877_v28, 0.0  ;;  %v2880_v36 = vadd.f32 %v6580_v31, %v2879_v34 }
 0x233   : > { %v5350_v12 = vpack.c.bf16 %v2909_v17, %v2909_v17  ;;  %v2910_v58 = vmax.f32 %v2888_v33, 0.0 }
 0x234   : > { %v5348_v13 = vpack.c.bf16 %v2907_v35, %v2907_v35  ;;  %v2908_v25 = vmax.f32 %v2880_v36, 0.0 }
 0x235   : > { %v3125_v51 = vshrl.u32 %v5350_v12, 16  ;;  %v5351_v40 = vpack.c.bf16 %v2910_v58, %v2910_v58  ;;  %v3128_v43 = vshll.u32 %v5350_v12, 16 }
 0x236   : > { %v3108_v7 = vshrl.u32 %v5348_v13, 16  ;;  %v5349_v41 = vpack.c.bf16 %v2908_v25, %v2908_v25  ;;  %v3111_v48 = vshll.u32 %v5348_v13, 16 }
 0x237   : > { %v3127_v10 = vrot.slane %v3125_v51, 7  ;;  %v3133_v46 = vshrl.u32 %v5351_v40, 16  ;;  %v3136_v60 = vshll.u32 %v5351_v40, 16 }
 0x238   : > { %v3110_v20 = vrot.slane %v3108_v7, 7  ;;  %v3116_v50 = vshrl.u32 %v5349_v41, 16  ;;  %v3119_v4 = vshll.u32 %v5349_v41, 16 }
 0x239   : > { %v3130_v54 = vor.u32 %v3128_v43, %v3127_v10  ;;  %v3135_v45 = vrot.slane %v3133_v46, 7  ;;  %v3131_v53 = vrot.slane %v3127_v10, 4  ;;  %3244 = sbr.rel (%p5174_p13) target bundleno = 578 (0x242), region = 52 }
 0x23a   : > { %v3113_v31 = vor.u32 %v3111_v48, %v3110_v20  ;;  %v3118_v3 = vrot.slane %v3116_v50, 7  ;;  %v3114_v2 = vrot.slane %v3110_v20, 4 }
 0x23b   : > { %v3235_v61 = vsel %vm5935_vm8, %v3130_v54, %v3234_v29  ;;  %v3138_v38 = vor.u32 %v3136_v60, %v3135_v45  ;;  %v3140_v42 = vrot.slane %v3135_v45, 4 }
 0x23c   : > { %3236 = vst [vmem:[#allocation3 + $0x6c] sm:$0xf] %v3235_v61  ;;  %v3228_v11 = vsel %vm5935_vm8, %v3113_v31, %v3227_v57  ;;  %v3121_v9 = vor.u32 %v3119_v4, %v3118_v3  ;;  %v3123_v32 = vrot.slane %v3118_v3, 4  ;;  %vm7006_vm8 = vcmask (!%p5174_p13), 27648  }
 0x23d   : > { %3229 = vst [vmem:[#allocation3 + $0x60] sm:$0xf] %v3228_v11  ;;  %v3139_v1 = vsel %vm5929_vm7, %v3131_v53, %v3138_v38  ;;  %v3239_v47 = vsel %vm5877_vm2, %v3140_v42, %v3238_v30  ;;  %3245 = vst.msk [vmem:[#allocation3] sm:$0xf] (!%p5174_p13), %vm7006_vm8, %v5800_v44 }
 0x23e   : > { %3237 = vst.msk [vmem:[#allocation3 + $0x70] sm:$0xf] %vm7005_vm5, %v3139_v1  ;;  %3240 = vst [vmem:[#allocation3 + $0x74] sm:$0x1] %v3239_v47  ;;  %v3122_v37 = vsel %vm5929_vm7, %v3114_v2, %v3121_v9  ;;  %v3232_v16 = vsel %vm5877_vm2, %v3123_v32, %v3231_v62 }
 0x23f   : > { %3230 = vst.msk [vmem:[#allocation3 + $0x64] sm:$0xf] %vm7000_vm4, %v3122_v37  ;;  %3233 = vst [vmem:[#allocation3 + $0x68] sm:$0x1] %v3232_v16 }
 0x240   : > { %vm7007_vm0 = vmmov %vm7006_vm8 }
 0x241   : > { %3246 = vst.msk [vmem:[#allocation3 + $0x4] sm:$0xf] %vm7007_vm0, %v5800_v44 }
 0x242 PF: > { %p5175_p0 = scmp.ne.s32.totalorder %s5774_s24, 1 }
 0x243   : > { %v5801_v39 = vmov (!%p5175_p0), 0   ;;  %vm7009_vm7 = vcmask (!%p5175_p0), 27648   ;;  %vm7011_vm5 = vcmask (!%p5175_p0), 24576  }
 0x244   : > { %3252 = sbr.rel (%p5175_p0) target bundleno = 587 (0x24b), region = 56  ;;  %3254 = vst.msk [vmem:[#allocation3 + $0x6c] sm:$0xf] (!%p5175_p0), %vm7009_vm7, %v5801_v39  ;;  %vm7010_vm2 = vmmov (!%p5175_p0), %vm7009_vm7 }
 0x245   : > { %3255 = vst.msk [vmem:[#allocation3 + $0x70] sm:$0xf] (!%p5175_p0), %vm7010_vm2, %v5801_v39 }
 0x246   : > { %3257 = vst.msk [vmem:[#allocation3 + $0x74] sm:$0x1] (!%p5175_p0), %vm7011_vm5, %v5801_v39 }
 0x24b PF: > { %v5629_v0 = vld [vmem:[#allocation3 + $0xc] sm:$0xff]   ;;  %v5630_v14 = vld [vmem:[#allocation3] sm:$0xfe]   ;;  %v5631_v15 = vld [vmem:[#allocation3 + $0x8] ss:$0 sps:$4 sm:$0x11]  }
 0x24c   : > { %3747 = vrot.lane.b32.xlu0 %v5629_v0, %s5793_s8  ;;  %v5632_v56 = vld [vmem:[#allocation3] sm:$0xff]   ;;  %v3634_v18 = vrot.slane %v5630_v14, 1  ;;  %v3635_v19 = vrot.slane %v5631_v15, 1  ;;  %v5633_v21 = vld [vmem:[#allocation3 + $0x8] ss:$0 sps:$4 sm:$0x11]  }
 0x24d   : > { %v3419_v55 = vshrl.u32 %v5632_v56, 16  ;;  %v3421_v5 = vshll.u32 %v5632_v56, 16  ;;  %v5636_v63 = vld [vmem:[#allocation3 + $0xc] sm:$0xff]   ;;  %v3426_v49 = vshll.u32 %v5633_v21, 16  ;;  %v5638_v33 = vld [vmem:[#allocation3 + $0x18] sm:$0xff]   ;;  %v5651_v9 = vld [vmem:[#allocation3 + $0x24] sm:$0xff]  }
 0x24e   : > { %v3636_v22 = vsel %vm1507_vm9, %v3634_v18, %v3635_v19  ;;  %v5634_v52 = vld [vmem:[#allocation3 + $0xc] sm:$0xfe]   ;;  %v5635_v6 = vld [vmem:[#allocation3 + $0x14] ss:$0 sps:$4 sm:$0x11]   ;;  %v3431_v23 = vshrl.u32 %v5636_v63, 16 }
 0x24f   : > { %3658 = vrot.lane.b32.xlu1 %v3636_v22, %s5796_s14  ;;  %v3423_v8 = vrot.slane %v3421_v5, 1  ;;  %v3428_v24 = vrot.slane %v3426_v49, 1  ;;  %v3637_v26 = vrot.slane %v5634_v52, 1  ;;  %v3638_v27 = vrot.slane %v5635_v6, 1  ;;  %v5639_v58 = vld [vmem:[#allocation3 + $0xc] sm:$0xff]   ;;  %v5641_v40 = vld [vmem:[#allocation3 + $0x18] sm:$0xff]  }
 0x250   : > { %v5637_v28 = vld [vmem:[#allocation3 + $0x14] ss:$0 sps:$4 sm:$0x11]   ;;  %v3433_v17 = vshll.u32 %v5636_v63, 16  ;;  %v3868_v7 = vshrl.u32 %v5639_v58, 16  ;;  %v3870_v41 = vshll.u32 %v5639_v58, 16 }
 0x251   : > { %v3424_v59 = vor.u32 %v3423_v8, %v3419_v55  ;;  %v3639_v35 = vsel %vm1507_vm9, %v3637_v26, %v3638_v27  ;;  %v3438_v12 = vshll.u32 %v5637_v28, 16  ;;  %v5640_v13 = vld [vmem:[#allocation3 + $0x14] ss:$0 sps:$4 sm:$0x11]   ;;  %v3880_v29 = vshrl.u32 %v5641_v40, 16  ;;  %v5649_v62 = vld [vmem:[#allocation3 + $0x18] sm:$0xff]  }
 0x252   : > { %v3435_v36 = vrot.slane %v3433_v17, 1  ;;  %v3875_v10 = vshll.u32 %v5640_v13, 16  ;;  %v5642_v43 = vld [vmem:[#allocation3 + $0x20] ss:$0 sps:$4 sm:$0x11]   ;;  %v3882_v20 = vshll.u32 %v5641_v40, 16 }
 0x253   : > { %v3429_v34 = vsel %vm1235_vm10, %v3424_v59, %v3428_v24  ;;  %3660 = vrot.lane.b32.xlu1 %v3639_v35, %s5796_s14  ;;  %v3440_v51 = vrot.slane %v3438_v12, 1  ;;  %v3872_v48 = vrot.slane %v3870_v41, 1  ;;  %v3887_v54 = vshll.u32 %v5642_v43, 16  ;;  %v5643_v45 = vld [vmem:[#allocation3 + $0xc] sm:$0xfe]   ;;  %v5647_v37 = vld [vmem:[#allocation3 + $0x18] sm:$0xff]  }
 0x254   : > { %3514 = vrot.lane.b32.xlu0 %v3429_v34, %s5799_s23  ;;  %v3436_v25 = vor.u32 %v3435_v36, %v3431_v23  ;;  %v3877_v50 = vrot.slane %v3875_v10, 1  ;;  %v3884_v57 = vrot.slane %v3882_v20, 1  ;;  %v5644_v60 = vld [vmem:[#allocation3 + $0x14] ss:$0 sps:$4 sm:$0x11]   ;;  %v4083_v4 = vrot.slane %v5643_v45, 1 }
 0x255   : > { %v3873_v31 = vor.u32 %v3872_v48, %v3868_v7  ;;  %v3889_v30 = vrot.slane %v3887_v54, 1  ;;  %v4084_v53 = vrot.slane %v5644_v60, 1  ;;  %v5645_v61 = vld [vmem:[#allocation3 + $0x18] sm:$0xfe]   ;;  %v4317_v47 = vshrl.u32 %v5649_v62, 16  ;;  %v5648_v15 = vld [vmem:[#allocation3 + $0x24] sm:$0xff]  }
 0x256   : > { %v3441_v46 = vsel %vm1235_vm10, %v3436_v25, %v3440_v51  ;;  %v3885_v3 = vor.u32 %v3884_v57, %v3880_v29  ;;  %v5646_v42 = vld [vmem:[#allocation3 + $0x20] ss:$0 sps:$4 sm:$0x11]   ;;  %v4086_v11 = vrot.slane %v5645_v61, 1  ;;  %v4319_v16 = vshll.u32 %v5649_v62, 16  ;;  %v5655_v55 = vld [vmem:[#allocation3 + $0x18] sm:$0xff]  }
 0x257   : > { %3749 = vrot.lane.b32.xlu1 %v5638_v33, %s5793_s8  ;;  %v3878_v38 = vsel %vm1235_vm10, %v3873_v31, %v3877_v50  ;;  %v4085_v32 = vsel %vm1507_vm9, %v4083_v4, %v4084_v53  ;;  %v4087_v1 = vrot.slane %v5646_v42, 1  ;;  %v4329_v44 = vshrl.u32 %v5651_v9, 16  ;;  %v5650_v0 = vld [vmem:[#allocation3 + $0x20] ss:$0 sps:$4 sm:$0x11]   ;;  %v5659_v34 = vld [vmem:[#allocation3 + $0x24] sm:$0xff]  }
 0x258   : > { %3516 = vrot.lane.b32.xlu0 %v3441_v46, %s5799_s23  ;;  %v3890_v2 = vsel %vm1235_vm10, %v3885_v3, %v3889_v30  ;;  %v4331_v14 = vshll.u32 %v5651_v9, 16  ;;  %v4321_v56 = vrot.slane %v4319_v16, 1  ;;  %v4324_v18 = vshll.u32 %v5650_v0, 16  ;;  %v5652_v19 = vld [vmem:[#allocation3 + $0x2c] ss:$0 sps:$4 sm:$0x11]  }
 0x259   : > { %v4088_v39 = vsel %vm1507_vm9, %v4086_v11, %v4087_v1  ;;  %v4336_v49 = vshll.u32 %v5652_v19, 16  ;;  %v5653_v52 = vld [vmem:[#allocation3 + $0x18] sm:$0xfe]   ;;  %v5654_v8 = vld [vmem:[#allocation3 + $0x20] ss:$0 sps:$4 sm:$0x11]  }
 0x25a   : > { %v4333_v21 = vrot.slane %v4331_v14, 1  ;;  %v4322_v5 = vor.u32 %v4321_v56, %v4317_v47  ;;  %v4326_v63 = vrot.slane %v4324_v18, 1  ;;  %v3443_v6 = vshrl.u32 %v5655_v55, 16  ;;  %v5656_v23 = vld [vmem:[#allocation3 + $0x20] ss:$0 sps:$4 sm:$0x11]  }
 0x25b   : > { %3965 = vrot.lane.b32.xlu1 %v3890_v2, %s5797_s21  ;;  %v4338_v26 = vrot.slane %v4336_v49, 1  ;;  %v4532_v59 = vrot.slane %v5653_v52, 1  ;;  %v3445_v27 = vshll.u32 %v5655_v55, 16  ;;  %v4533_v28 = vrot.slane %v5654_v8, 1  ;;  %v5657_v36 = vld [vmem:[#allocation3 + $0x24] sm:$0xfe]  }
 0x25c   : > { %3963 = vrot.lane.b32.xlu0 %v3878_v38, %s5797_s21  ;;  %v4334_v22 = vor.u32 %v4333_v21, %v4329_v44  ;;  %v4327_v24 = vsel %vm1235_vm10, %v4322_v5, %v4326_v63  ;;  %v3450_v35 = vshll.u32 %v5656_v23, 16  ;;  %v5658_v12 = vld [vmem:[#allocation3 + $0x2c] ss:$0 sps:$4 sm:$0x11]   ;;  %v4535_v51 = vrot.slane %v5657_v36, 1  ;;  %v5667_v20 = vld [vmem:[#allocation3 + $0x24] sm:$0xff]  }
 0x25d   : > { %v3447_v33 = vrot.slane %v3445_v27, 1  ;;  %v4534_v58 = vsel %vm1507_vm9, %v4532_v59, %v4533_v28  ;;  %v4536_v40 = vrot.slane %v5658_v12, 1  ;;  %v5660_v7 = vld [vmem:[#allocation3 + $0x2c] ss:$0 sps:$4 sm:$0x11]   ;;  %v3455_v41 = vshrl.u32 %v5659_v34, 16 }
 0x25e   : > { %v4339_v17 = vsel %vm1235_vm10, %v4334_v22, %v4338_v26  ;;  %v3452_v25 = vrot.slane %v3450_v35, 1  ;;  %v3457_v10 = vshll.u32 %v5659_v34, 16  ;;  %v3462_v46 = vshll.u32 %v5660_v7, 16  ;;  %v5661_v29 = vld [vmem:[#allocation3 + $0x18] sm:$0xfe]   ;;  %v5665_v42 = vld [vmem:[#allocation3 + $0x24] sm:$0xff]  }
 0x25f   : > { %4109 = vrot.lane.b32.xlu1 %v4088_v39, %s5795_s13  ;;  %v3448_v13 = vor.u32 %v3447_v33, %v3443_v6  ;;  %v4537_v48 = vsel %vm1507_vm9, %v4535_v51, %v4536_v40  ;;  %v5662_v54 = vld [vmem:[#allocation3 + $0x20] ss:$0 sps:$4 sm:$0x11]   ;;  %v3640_v45 = vrot.slane %v5661_v29, 1  ;;  %v5663_v30 = vld [vmem:[#allocation3 + $0x24] sm:$0xfe]  }
 0x260   : > { %4107 = vrot.lane.b32.xlu0 %v4085_v32, %s5795_s13  ;;  %v3459_v50 = vrot.slane %v3457_v10, 1  ;;  %v3464_v57 = vrot.slane %v3462_v46, 1  ;;  %v3641_v31 = vrot.slane %v5662_v54, 1  ;;  %v5664_v3 = vld [vmem:[#allocation3 + $0x2c] ss:$0 sps:$4 sm:$0x11]  }
 0x261   : > { %v3453_v43 = vsel %vm1235_vm10, %v3448_v13, %v3452_v25  ;;  %v3643_v61 = vrot.slane %v5663_v30, 1  ;;  %v3644_v38 = vrot.slane %v5664_v3, 1  ;;  %v3892_v62 = vshrl.u32 %v5667_v20, 16  ;;  %v5668_v9 = vld [vmem:[#allocation3 + $0x2c] ss:$0 sps:$4 sm:$0x11]  }
 0x262   : > { %v3460_v60 = vor.u32 %v3459_v50, %v3455_v41  ;;  %v3642_v53 = vsel %vm1507_vm9, %v3640_v45, %v3641_v31  ;;  %v3894_v2 = vshll.u32 %v5667_v20, 16  ;;  %v5669_v32 = vld [vmem:[#allocation3 + $0x30] sm:$0xff]   ;;  %v5670_v16 = vld [vmem:[#allocation3 + $0x38] ss:$0 sps:$4 sm:$0x11]   ;;  %v5679_v33 = vld [vmem:[#allocation3 + $0x3c] sm:$0xff]  }
 0x263   : > { %4198 = vrot.lane.b32.xlu1 %v5648_v15, %s5792_s25  ;;  %v3645_v11 = vsel %vm1507_vm9, %v3643_v61, %v3644_v38  ;;  %v5666_v1 = vld [vmem:[#allocation3 + $0x30] sm:$0xff]   ;;  %v3904_v44 = vshrl.u32 %v5669_v32, 16  ;;  %v3906_v39 = vshll.u32 %v5669_v32, 16  ;;  %v3911_v56 = vshll.u32 %v5670_v16, 16  ;;  %v5671_v18 = vld [vmem:[#allocation3 + $0x24] sm:$0xfe]  }
 0x264   : > { %4196 = vrot.lane.b32.xlu0 %v5647_v37, %s5792_s25  ;;  %v3465_v4 = vsel %vm1235_vm10, %v3460_v60, %v3464_v57  ;;  %v3896_v47 = vrot.slane %v3894_v2, 1  ;;  %v3899_v37 = vshll.u32 %v5668_v9, 16  ;;  %v5672_v19 = vld [vmem:[#allocation3 + $0x2c] ss:$0 sps:$4 sm:$0x11]   ;;  %v5677_v21 = vld [vmem:[#allocation3 + $0x30] sm:$0xff]  }
 0x265   : > { %v3908_v15 = vrot.slane %v3906_v39, 1  ;;  %v3913_v63 = vrot.slane %v3911_v56, 1  ;;  %v4089_v22 = vrot.slane %v5671_v18, 1  ;;  %v4090_v49 = vrot.slane %v5672_v19, 1  ;;  %v5673_v52 = vld [vmem:[#allocation3 + $0x30] sm:$0xfe]  }
 0x266   : > { %v3897_v0 = vor.u32 %v3896_v47, %v3892_v62  ;;  %v3901_v14 = vrot.slane %v3899_v37, 1  ;;  %v5674_v8 = vld [vmem:[#allocation3 + $0x38] ss:$0 sps:$4 sm:$0x11]   ;;  %v4341_v27 = vshrl.u32 %v5677_v21, 16  ;;  %v4343_v28 = vshll.u32 %v5677_v21, 16 }
 0x267   : > { %4414 = vrot.lane.b32.xlu1 %v4339_v17, %s5798_s22  ;;  %v3909_v5 = vor.u32 %v3908_v15, %v3904_v44  ;;  %v4093_v26 = vrot.slane %v5674_v8, 1  ;;  %v4091_v59 = vsel %vm1507_vm9, %v4089_v22, %v4090_v49  ;;  %v5675_v23 = vld [vmem:[#allocation3 + $0x30] sm:$0xff]   ;;  %v5678_v17 = vld [vmem:[#allocation3 + $0x38] ss:$0 sps:$4 sm:$0x11]   ;;  %v5676_v12 = vld [vmem:[#allocation3 + $0x3c] sm:$0xff]  }
 0x268   : > { %4412 = vrot.lane.b32.xlu0 %v4327_v24, %s5798_s22  ;;  %v3902_v55 = vsel %vm1235_vm10, %v3897_v0, %v3901_v14  ;;  %v4092_v24 = vrot.slane %v5673_v52, 1  ;;  %v4345_v35 = vrot.slane %v4343_v28, 1  ;;  %v5683_v36 = vld [vmem:[#allocation3 + $0x30] sm:$0xff]   ;;  %v5680_v13 = vld [vmem:[#allocation3 + $0x44] ss:$0 sps:$4 sm:$0x11]  }
 0x269   : > { %v3914_v6 = vsel %vm1235_vm10, %v3909_v5, %v3913_v63  ;;  %v4353_v25 = vshrl.u32 %v5679_v33, 16  ;;  %v4355_v51 = vshll.u32 %v5679_v33, 16  ;;  %v4360_v10 = vshll.u32 %v5680_v13, 16  ;;  %v5682_v29 = vld [vmem:[#allocation3 + $0x38] ss:$0 sps:$4 sm:$0x11]  }
 0x26a   : > { %v4094_v34 = vsel %vm1507_vm9, %v4092_v24, %v4093_v26  ;;  %v4346_v40 = vor.u32 %v4345_v35, %v4341_v27  ;;  %v3467_v46 = vshrl.u32 %v5683_v36, 16  ;;  %v3469_v20 = vshll.u32 %v5683_v36, 16  ;;  %v5684_v60 = vld [vmem:[#allocation3 + $0x38] ss:$0 sps:$4 sm:$0x11]   ;;  %v5687_v30 = vld [vmem:[#allocation3 + $0x3c] sm:$0xff]  }
 0x26b   : > { %3518 = vrot.lane.b32.xlu1 %v3453_v43, %s5799_s23  ;;  %v4357_v41 = vrot.slane %v4355_v51, 1  ;;  %v5681_v43 = vld [vmem:[#allocation3 + $0x30] sm:$0xfe]   ;;  %v4362_v50 = vrot.slane %v4360_v10, 1  ;;  %v4539_v45 = vrot.slane %v5682_v29, 1  ;;  %v3479_v32 = vshrl.u32 %v5687_v30, 16 }
 0x26c   : > { %4556 = vrot.lane.b32.xlu0 %v4534_v58, %s5794_s12  ;;  %v4348_v58 = vshll.u32 %v5678_v17, 16  ;;  %v4538_v54 = vrot.slane %v5681_v43, 1  ;;  %v3471_v31 = vrot.slane %v3469_v20, 1  ;;  %v5685_v61 = vld [vmem:[#allocation3 + $0x3c] sm:$0xfe]   ;;  %v5697_v26 = vld [vmem:[#allocation3 + $0x48] sm:$0xff]  }
 0x26d   : > { %v5686_v38 = vld [vmem:[#allocation3 + $0x44] ss:$0 sps:$4 sm:$0x11]   ;;  %v4541_v2 = vrot.slane %v5685_v61, 1  ;;  %v5689_v16 = vld [vmem:[#allocation3 + $0x30] sm:$0xfe]  }
 0x26e   : > { %v4350_v7 = vrot.slane %v4348_v58, 1  ;;  %v5688_v9 = vld [vmem:[#allocation3 + $0x44] ss:$0 sps:$4 sm:$0x11]   ;;  %v3646_v15 = vrot.slane %v5689_v16, 1  ;;  %v5695_v22 = vld [vmem:[#allocation3 + $0x3c] sm:$0xff]  }
 0x26f   : > { %3520 = vrot.lane.b32.xlu1 %v3465_v4, %s5799_s23  ;;  %v3472_v4 = vor.u32 %v3471_v31, %v3467_v46  ;;  %v3486_v37 = vshll.u32 %v5688_v9, 16  ;;  %v5690_v39 = vld [vmem:[#allocation3 + $0x38] ss:$0 sps:$4 sm:$0x11]   ;;  %v5691_v19 = vld [vmem:[#allocation3 + $0x3c] sm:$0xfe]  }
 0x270   : > { %4558 = vrot.lane.b32.xlu0 %v4537_v48, %s5794_s12  ;;  %v4358_v48 = vor.u32 %v4357_v41, %v4353_v25  ;;  %v4351_v57 = vsel %vm1235_vm10, %v4346_v40, %v4350_v7  ;;  %v3647_v18 = vrot.slane %v5690_v39, 1  ;;  %v5692_v21 = vld [vmem:[#allocation3 + $0x44] ss:$0 sps:$4 sm:$0x11]   ;;  %v3649_v5 = vrot.slane %v5691_v19, 1  ;;  %v5693_v52 = vld [vmem:[#allocation3 + $0x3c] sm:$0xff]  }
 0x271   : > { %v3488_v14 = vrot.slane %v3486_v37, 1  ;;  %v3650_v63 = vrot.slane %v5692_v21, 1  ;;  %v5696_v8 = vld [vmem:[#allocation3 + $0x44] ss:$0 sps:$4 sm:$0x11]   ;;  %v3918_v24 = vshll.u32 %v5695_v22, 16 }
 0x272   : > { %v4363_v3 = vsel %vm1235_vm10, %v4358_v48, %v4362_v50  ;;  %v3648_v49 = vsel %vm1507_vm9, %v3646_v15, %v3647_v18  ;;  %v5694_v27 = vld [vmem:[#allocation3 + $0x48] sm:$0xff]   ;;  %v5698_v17 = vld [vmem:[#allocation3 + $0x50] ss:$0 sps:$4 sm:$0x11]   ;;  %v3928_v33 = vshrl.u32 %v5697_v26, 16  ;;  %v5707_v31 = vld [vmem:[#allocation3 + $0x54] sm:$0xff]  }
 0x273   : > { %3664 = vrot.lane.b32.xlu1 %v3645_v11, %s5796_s14  ;;  %v4542_v11 = vrot.slane %v5686_v38, 1  ;;  %v3920_v28 = vrot.slane %v3918_v24, 1  ;;  %v5699_v58 = vld [vmem:[#allocation3 + $0x3c] sm:$0xfe]   ;;  %v5701_v43 = vld [vmem:[#allocation3 + $0x48] sm:$0xfe]  }
 0x274   : > { %3662 = vrot.lane.b32.xlu0 %v3642_v53, %s5796_s14  ;;  %v3474_v53 = vshll.u32 %v5684_v60, 16  ;;  %v5700_v25 = vld [vmem:[#allocation3 + $0x44] ss:$0 sps:$4 sm:$0x11]   ;;  %v4095_v40 = vrot.slane %v5699_v58, 1  ;;  %v4098_v20 = vrot.slane %v5701_v43, 1 }
 0x275   : > { %v4543_v0 = vsel %vm1507_vm9, %v4541_v2, %v4542_v11  ;;  %v4096_v10 = vrot.slane %v5700_v25, 1  ;;  %v5702_v46 = vld [vmem:[#allocation3 + $0x50] ss:$0 sps:$4 sm:$0x11]   ;;  %v5705_v50 = vld [vmem:[#allocation3 + $0x48] sm:$0xff]   ;;  %v4377_v38 = vshrl.u32 %v5707_v31, 16 }
 0x276   : > { %v3476_v62 = vrot.slane %v3474_v53, 1  ;;  %v4099_v48 = vrot.slane %v5702_v46, 1  ;;  %v4367_v60 = vshll.u32 %v5705_v50, 16  ;;  %v5708_v61 = vld [vmem:[#allocation3 + $0x5c] ss:$0 sps:$4 sm:$0x11]  }
 0x277   : > { %3753 = vrot.lane.b32.xlu1 %v5666_v1, %s5793_s8  ;;  %v3481_v1 = vshll.u32 %v5687_v30, 16  ;;  %v5703_v30 = vld [vmem:[#allocation3 + $0x48] sm:$0xff]   ;;  %v5710_v37 = vld [vmem:[#allocation3 + $0x50] ss:$0 sps:$4 sm:$0x11]   ;;  %vm7012_vm0 = vcmask 1041408  }
 0x278   : > { %3751 = vrot.lane.b32.xlu0 %v5665_v42, %s5793_s8  ;;  %v4540_v42 = vsel %vm1507_vm9, %v4538_v54, %v4539_v45  ;;  %v3477_v47 = vsel %vm1235_vm10, %v3472_v4, %v3476_v62  ;;  %v4097_v54 = vsel %vm1507_vm9, %v4095_v40, %v4096_v10  ;;  %v4365_v45 = vshrl.u32 %v5705_v50, 16  ;;  %v5711_v2 = vld [vmem:[#allocation3 + $0x48] sm:$0xff]   ;;  %v5719_v25 = vld [vmem:[#allocation3 + $0x54] sm:$0xfe]   ;;  %v5725_v10 = vld [vmem:[#allocation3 + $0x60] sm:$0xff]  }
 0x279   : > { %v3483_v44 = vrot.slane %v3481_v1, 1  ;;  %v4369_v4 = vrot.slane %v4367_v60, 1  ;;  %v4379_v62 = vshll.u32 %v5707_v31, 16  ;;  %v5709_v1 = vld [vmem:[#allocation3 + $0x48] sm:$0xfe]   ;;  %v3491_v15 = vshrl.u32 %v5711_v2, 16 }
 0x27a   : > { %v5723_v40 = vld [vmem:[#allocation3 + $0x54] sm:$0xff]   ;;  %v5724_v50 = vld [vmem:[#allocation3 + $0x5c] ss:$0 sps:$4 sm:$0x11]   ;;  %v3952_v60 = vshrl.u32 %v5725_v10, 16  ;;  %v5722_v31 = vld [vmem:[#allocation3 + $0x60] sm:$0xff]  }
 0x27b   : > { %3969 = vrot.lane.b32.xlu1 %v3914_v6, %s5797_s21  ;;  %v3484_v56 = vor.u32 %v3483_v44, %v3479_v32  ;;  %v3916_v6 = vshrl.u32 %v5695_v22, 16  ;;  %v4370_v11 = vor.u32 %v4369_v4, %v4365_v45  ;;  %v4384_v32 = vshll.u32 %v5708_v61, 16  ;;  %v5715_v22 = vld [vmem:[#allocation3 + $0x54] sm:$0xff]  }
 0x27c   : > { %3967 = vrot.lane.b32.xlu0 %v3902_v55, %s5797_s21  ;;  %v4544_v44 = vrot.slane %v5709_v1, 1  ;;  %v5729_v1 = vld [vmem:[#allocation3 + $0x60] sm:$0xfe]   ;;  %vm7016_vm4 = vcmask 294144   ;;  %vm7018_vm7 = vcmask 293888  }
 0x27d   : > { %v3489_v55 = vsel %vm1235_vm10, %v3484_v56, %v3488_v14  ;;  %v3921_v35 = vor.u32 %v3920_v28, %v3916_v6  ;;  %v4386_v16 = vrot.slane %v4384_v32, 1  ;;  %v5712_v14 = vld [vmem:[#allocation3 + $0x50] ss:$0 sps:$4 sm:$0x11]   ;;  %v3493_v56 = vshll.u32 %v5711_v2, 16  ;;  %vm7017_vm8 = vmmov %vm7016_vm4 }
 0x27e   : > { %v3498_v21 = vshll.u32 %v5712_v14, 16  ;;  %v5717_v28 = vld [vmem:[#allocation3 + $0x48] sm:$0xfe]   ;;  %v5728_v2 = vld [vmem:[#allocation3 + $0x5c] ss:$0 sps:$4 sm:$0x11]   ;;  %vm7019_vm2 = vmmov %vm7018_vm7 }
 0x27f   : > { %4113 = vrot.lane.b32.xlu1 %v4094_v34, %s5795_s13  ;;  %v3930_v34 = vshll.u32 %v5697_v26, 16  ;;  %v3495_v19 = vrot.slane %v3493_v56, 1  ;;  %v5716_v26 = vld [vmem:[#allocation3 + $0x5c] ss:$0 sps:$4 sm:$0x11]  }
 0x280   : > { %4111 = vrot.lane.b32.xlu0 %v4091_v59, %s5795_s13  ;;  %v3651_v59 = vsel %vm1507_vm9, %v3649_v5, %v3650_v63  ;;  %v5714_v63 = vld [vmem:[#allocation3 + $0x5c] ss:$0 sps:$4 sm:$0x11]  }
 0x281   : > { %v3932_v13 = vrot.slane %v3930_v34, 1  ;;  %v4548_v24 = vrot.slane %v5714_v63, 1  ;;  %v5718_v34 = vld [vmem:[#allocation3 + $0x50] ss:$0 sps:$4 sm:$0x11]  }
 0x283   : > { %4202 = vrot.lane.b32.xlu1 %v5676_v12, %s5792_s25  ;;  %v3935_v12 = vshll.u32 %v5698_v17, 16  ;;  %v3933_v41 = vor.u32 %v3932_v13, %v3928_v33  ;;  %v3510_v33 = vshll.u32 %v5716_v26, 16  ;;  %v3653_v13 = vrot.slane %v5718_v34, 1  ;;  %v5744_v34 = vld [vmem:[#allocation3 + $0x18] sm:$0xff]  }
 0x284   : > { %4200 = vrot.lane.b32.xlu0 %v5675_v23, %s5792_s25  ;;  %v3923_v23 = vshll.u32 %v5696_v8, 16  ;;  %3324 = vst.msk [vmem:[#allocation4 + $0x10] sm:$0xff] %vm1114_vm12, %v5744_v34 }
 0x285   : > { %v3937_v51 = vrot.slane %v3935_v12, 1  ;;  %v3512_v58 = vrot.slane %v3510_v33, 1 }
 0x286   : > { %v3925_v36 = vrot.slane %v3923_v23, 1 }
 0x287   : > { %4418 = vrot.lane.b32.xlu1 %v4363_v3, %s5798_s22  ;;  %v3938_v29 = vsel %vm1235_vm10, %v3933_v41, %v3937_v51  ;;  %v4100_v3 = vsel %vm1507_vm9, %v4098_v20, %v4099_v48  ;;  %v5720_v51 = vld [vmem:[#allocation3 + $0x5c] ss:$0 sps:$4 sm:$0x11]   ;;  %v3655_v41 = vrot.slane %v5719_v25, 1  ;;  %v3942_v20 = vshll.u32 %v5723_v40, 16  ;;  %v5721_v48 = vld [vmem:[#allocation3 + $0x54] sm:$0xff]  }
 0x288   : > { %4416 = vrot.lane.b32.xlu0 %v4351_v57, %s5798_s22  ;;  %v3926_v7 = vsel %vm1235_vm10, %v3921_v35, %v3925_v36  ;;  %v5706_v57 = vld [vmem:[#allocation3 + $0x50] ss:$0 sps:$4 sm:$0x11]   ;;  %v3652_v35 = vrot.slane %v5717_v28, 1  ;;  %v3656_v43 = vrot.slane %v5720_v51, 1 }
 0x289   : > { %v4372_v53 = vshll.u32 %v5706_v57, 16  ;;  %v3944_v45 = vrot.slane %v3942_v20, 1  ;;  %v5738_v28 = vld [vmem:[#allocation3 + $0xc] sm:$0xff]   ;;  %v5746_v20 = vld [vmem:[#allocation3 + $0x24] sm:$0xff]  }
 0x28a   : > { %v3654_v46 = vsel %vm1507_vm9, %v3652_v35, %v3653_v13  ;;  %v3657_v57 = vsel %vm1507_vm9, %v3655_v41, %v3656_v43  ;;  %3323 = vst.msk [vmem:[#allocation4 + $0x8] sm:$0xff] %vm1114_vm12, %v5738_v28  ;;  %v5741_v41 = vld [vmem:[#allocation3 + $0x6c] sm:$0xfe]   ;;  %v5745_v43 = vld [vmem:[%s6978_s5 + $0x8] sm:$0xff]   ;;  %3325 = vst.msk [vmem:[#allocation4 + $0x18] sm:$0xff] %vm1114_vm12, %v5746_v20 }
 0x28b   : > { %3522 = vrot.lane.b32.xlu1 %v3477_v47, %s5799_s23  ;;  %v4374_v9 = vrot.slane %v4372_v53, 1  ;;  %v4381_v47 = vrot.slane %v4379_v62, 1 }
 0x28c   : > { %4560 = vrot.lane.b32.xlu0 %v4540_v42, %s5794_s12  ;;  %v5704_v42 = vld [vmem:[#allocation3 + $0x54] sm:$0xff]  }
 0x28d   : > { %v4382_v39 = vor.u32 %v4381_v47, %v4377_v38  ;;  %v4375_v18 = vsel %vm1235_vm10, %v4370_v11, %v4374_v9  ;;  %v5733_v11 = vld [vmem:[#allocation3] sm:$0xff]  }
 0x28e   : > { %3322 = vst.msk [vmem:[#allocation4] sm:$0xff] %vm1114_vm12, %v5733_v11 }
 0x28f   : > { %3524 = vrot.lane.b32.xlu1 %v3489_v55, %s5799_s23  ;;  %v5713_v55 = vld [vmem:[#allocation3 + $0x54] sm:$0xfe]   ;;  %v4387_v5 = vsel %vm1235_vm10, %v4382_v39, %v4386_v16  ;;  %v5730_v16 = vld [vmem:[#allocation3 + $0x68] ss:$0 sps:$4 sm:$0x11]   ;;  %v5734_v39 = vld [vmem:[#allocation3 + $0x60] sm:$0xff]  }
 0x290   : > { %4562 = vrot.lane.b32.xlu0 %v4543_v0, %s5794_s12  ;;  %v4545_v0 = vrot.slane %v5710_v37, 1  ;;  %v4547_v8 = vrot.slane %v5713_v55, 1  ;;  %v4102_v37 = vrot.slane %v5728_v2, 1  ;;  %v4105_v14 = vrot.slane %v5730_v16, 1 }
 0x291   : > { %v4391_v55 = vshll.u32 %v5734_v39, 16 }
 0x292   : > { %v4546_v6 = vsel %vm1507_vm9, %v4544_v44, %v4545_v0  ;;  %v4549_v36 = vsel %vm1507_vm9, %v4547_v8, %v4548_v24  ;;  %v4104_v44 = vrot.slane %v5729_v1, 1 }
 0x293   : > { %3668 = vrot.lane.b32.xlu1 %v3651_v59, %s5796_s14  ;;  %v3503_v59 = vshrl.u32 %v5715_v22, 16  ;;  %v4393_v24 = vrot.slane %v4391_v55, 1 }
 0x294   : > { %3666 = vrot.lane.b32.xlu0 %v3648_v49, %s5796_s14  ;;  %v3496_v49 = vor.u32 %v3495_v19, %v3491_v15  ;;  %v5736_v15 = vld [vmem:[#allocation3 + $0x6c] sm:$0xff]   ;;  %v4389_v19 = vshrl.u32 %v5734_v39, 16  ;;  %v4106_v63 = vsel %vm1507_vm9, %v4104_v44, %v4105_v14 }
 0x295   : > { %v4403_v26 = vshll.u32 %v5736_v15, 16 }
 0x297   : > { %3757 = vrot.lane.b32.xlu1 %v5694_v27, %s5793_s8  ;;  %v3505_v27 = vshll.u32 %v5715_v22, 16  ;;  %v4405_v33 = vrot.slane %v4403_v26, 1 }
 0x298   : > { %3755 = vrot.lane.b32.xlu0 %v5693_v52, %s5793_s8  ;;  %v3500_v52 = vrot.slane %v3498_v21, 1  ;;  %v5731_v21 = vld [vmem:[#allocation3 + $0x60] sm:$0xff]  }
 0x299   : > { %v3507_v17 = vrot.slane %v3505_v27, 1 }
 0x29a   : > { %v3501_v23 = vsel %vm1235_vm10, %v3496_v49, %v3500_v52  ;;  %v5737_v52 = vld [vmem:[#allocation3 + $0x74] ss:$0 sps:$4 sm:$0x11]  }
 0x29b   : > { %3973 = vrot.lane.b32.xlu1 %v3938_v29, %s5797_s21  ;;  %v3508_v12 = vor.u32 %v3507_v17, %v3503_v59  ;;  %v3940_v29 = vshrl.u32 %v5723_v40, 16  ;;  %v4408_v27 = vshll.u32 %v5737_v52, 16  ;;  %v4394_v17 = vor.u32 %v4393_v24, %v4389_v19 }
 0x29c   : > { %3971 = vrot.lane.b32.xlu0 %v3926_v7, %s5797_s21 }
 0x29d   : > { %v3513_v7 = vsel %vm1235_vm10, %v3508_v12, %v3512_v58  ;;  %v3945_v53 = vor.u32 %v3944_v45, %v3940_v29  ;;  %v4410_v35 = vrot.slane %v4408_v27, 1  ;;  %v5740_v12 = vld [vmem:[#allocation3 + $0x68] ss:$0 sps:$4 sm:$0x11]   ;;  %v4553_v29 = vrot.slane %v5741_v41, 1 }
 0x29f   : > { %4117 = vrot.lane.b32.xlu1 %v4100_v3, %s5795_s13  ;;  %v5726_v3 = vld [vmem:[#allocation3 + $0x68] ss:$0 sps:$4 sm:$0x11]  }
 0x2a0   : > { %4115 = vrot.lane.b32.xlu0 %v4097_v54, %s5795_s13  ;;  %v3954_v54 = vshll.u32 %v5725_v10, 16  ;;  %v3959_v38 = vshll.u32 %v5726_v3, 16  ;;  %v5742_v10 = vld [vmem:[#allocation3 + $0x74] ss:$0 sps:$4 sm:$0x11]  }
 0x2a2   : > { %v3956_v4 = vrot.slane %v3954_v54, 1  ;;  %v3961_v9 = vrot.slane %v3959_v38, 1 }
 0x2a3   : > { %4206 = vrot.lane.b32.xlu1 %v5704_v42, %s5792_s25  ;;  %v5727_v42 = vld [vmem:[#allocation3 + $0x54] sm:$0xfe]  }
 0x2a4   : > { %4204 = vrot.lane.b32.xlu0 %v5703_v30, %s5792_s25  ;;  %v3947_v30 = vshll.u32 %v5724_v50, 16  ;;  %v3957_v62 = vor.u32 %v3956_v4, %v3952_v60  ;;  %v4101_v32 = vrot.slane %v5727_v42, 1  ;;  %v5748_v50 = vld [vmem:[#allocation3 + $0x30] sm:$0xff]   ;;  %v5747_v60 = vld [vmem:[%s6978_s5 + $0x10] ss:$0 sps:$4 sm:$0x33]  }
 0x2a5   : > { %3326 = vst.msk [vmem:[#allocation4 + $0x20] sm:$0xff] %vm1114_vm12, %v5748_v50  ;;  %v5750_v4 = vld [vmem:[#allocation3 + $0x48] sm:$0xff]  }
 0x2a6   : > { %v3949_v61 = vrot.slane %v3947_v30, 1  ;;  %v3962_v0 = vsel %vm1235_vm10, %v3957_v62, %v3961_v9  ;;  %v4103_v56 = vsel %vm1507_vm9, %v4101_v32, %v4102_v37  ;;  %3328 = vst.msk [vmem:[#allocation4 + $0x30] sm:$0xff] %vm1114_vm12, %v5750_v4 }
 0x2a7   : > { %4422 = vrot.lane.b32.xlu1 %v4387_v5, %s5798_s22  ;;  %v4401_v5 = vshrl.u32 %v5736_v15, 16 }
 0x2a8   : > { %4420 = vrot.lane.b32.xlu0 %v4375_v18, %s5798_s22  ;;  %v3950_v47 = vsel %vm1235_vm10, %v3945_v53, %v3949_v61  ;;  %v5735_v18 = vld [vmem:[#allocation3 + $0x68] ss:$0 sps:$4 sm:$0x11]   ;;  %v5751_v53 = vld [vmem:[#allocation3 + $0x54] sm:$0xff]  }
 0x2a9   : > { %v4396_v49 = vshll.u32 %v5735_v18, 16  ;;  %v4406_v58 = vor.u32 %v4405_v33, %v4401_v5  ;;  %3329 = vst.msk [vmem:[#allocation4 + $0x38] sm:$0xff] %vm1114_vm12, %v5751_v53 }
 0x2ab   : > { %3526 = vrot.lane.b32.xlu1 %v3501_v23, %s5799_s23  ;;  %v4398_v59 = vrot.slane %v4396_v49, 1  ;;  %v5743_v23 = vld [vmem:[%s6978_s5] sm:$0xff]  }
 0x2ac   : > { %4564 = vrot.lane.b32.xlu0 %v4546_v6, %s5794_s12  ;;  %v5732_v6 = vld [vmem:[#allocation3 + $0x6c] sm:$0xff]   ;;  %5402 = vmatprep.subr.bf16.mxu1 %v5743_v23 }
 0x2ad   : > { %5403 = vmatpush3.bf16.msra.mxu1 %v5743_v23  ;;  %v4399_v51 = vsel %vm1235_vm10, %v4394_v17, %v4398_v59 }
 0x2ae   : > { %5404 = vmatprep.subr.bf16.mxu1 %v5745_v43 }
 0x2af   : > { %3528 = vrot.lane.b32.xlu1 %v3513_v7, %s5799_s23  ;;  %v4551_v7 = vrot.slane %v5740_v12, 1 }
 0x2b0   : > { %4566 = vrot.lane.b32.xlu0 %v4549_v36, %s5794_s12  ;;  %v5739_v36 = vld [vmem:[#allocation3 + $0x60] sm:$0xfe]  }
 0x2b1   : > { %v4550_v40 = vrot.slane %v5739_v36, 1  ;;  %5405 = vmatpush3.bf16.msra.mxu1 %v5745_v43 }
 0x2b2   : > { %5425 = vmatprep.subr.msk.bf16.mxu1 %vm7012_vm0, %v5747_v60 }
 0x2b3   : > { %3672 = vrot.lane.b32.xlu1 %v3657_v57, %s5796_s14  ;;  %v4552_v45 = vsel %vm1507_vm9, %v4550_v40, %v4551_v7 }
 0x2b4   : > { %3670 = vrot.lane.b32.xlu0 %v3654_v46, %s5796_s14  ;;  %v4411_v46 = vsel %vm1235_vm10, %v4406_v58, %v4410_v35  ;;  %vm7013_vm10 = vmmov %vm7012_vm0 }
 0x2b5   : > { %v4648_v3 = vsel %vm7013_vm10, %v5747_v60, 0  ;;  %vm7022_vm10 = vmmov %vm7016_vm4 }
 0x2b6   : > { %5407 = vmatpush3.bf16.msra.mxu1 %v4648_v3 }
 0x2b7   : > { %3761 = vrot.lane.b32.xlu1 %v5722_v31, %s5793_s8  ;;  %v5749_v31 = vld [vmem:[#allocation3 + $0x3c] sm:$0xff]  }
 0x2b8   : > { %3759 = vrot.lane.b32.xlu0 %v5721_v48, %s5793_s8  ;;  %v4554_v48 = vrot.slane %v5742_v10, 1  ;;  %3327 = vst.msk [vmem:[#allocation4 + $0x28] sm:$0xff] %vm1114_vm12, %v5749_v31 }
 0x2ba   : > { %v4555_v30 = vsel %vm1507_vm9, %v4553_v29, %v4554_v48  ;;  %vm7014_vm9 = vcmask 261344  }
 0x2bb   : > { %3977 = vrot.lane.b32.xlu1 %v3962_v0, %s5797_s21  ;;  %vm7015_vm6 = vmmov %vm7014_vm9 }
 0x2bc   : > { %3975 = vrot.lane.b32.xlu0 %v3950_v47, %s5797_s21  ;;  %vm7020_vm5 = vmmov %vm7015_vm6 }
 0x2bd   : > { %vm7021_vm0 = vmmov %vm7020_vm5 }
 0x2be   : > { %v3748_v22 = vpop.permute.xlu0 %3747 }
 0x2bf   : > { %4121 = vrot.lane.b32.xlu1 %v4106_v63, %s5795_s13 }
 0x2c0   : > { %4119 = vrot.lane.b32.xlu0 %v4103_v56, %s5795_s13 }
 0x2c1   : > { %v3659_v8 = vpop.permute.xlu1 %3658 }
 0x2c3   : > { %4210 = vrot.lane.b32.xlu1 %v5732_v6, %s5792_s25 }
 0x2c4   : > { %4208 = vrot.lane.b32.xlu0 %v5731_v21, %s5792_s25 }
 0x2c5   : > { %v3661_v25 = vpop.permute.xlu1 %3660 }
 0x2c6   : > { %v3515_v13 = vpop.permute.xlu0 %3514 }
 0x2c7   : > { %3538 = vst.msk [vmem:[#allocation4] sm:$0xff] %vm1386_vm13, %v3515_v13  ;;  %4426 = vrot.lane.b32.xlu1 %v4411_v46, %s5798_s22 }
 0x2c8   : > { %3682 = vst.msk [vmem:[#allocation4] sm:$0xff] %vm1568_vm15, %v3659_v8  ;;  %4424 = vrot.lane.b32.xlu0 %v4399_v51, %s5798_s22 }
 0x2c9   : > { %3771 = vst.msk [vmem:[#allocation4] sm:$0xff] %vm1680_vm1, %v3748_v22  ;;  %v3750_v57 = vpop.permute.xlu1 %3749 }
 0x2ca   : > { %v3517_v54 = vpop.permute.xlu0 %3516 }
 0x2cb   : > { %3539 = vst.msk [vmem:[#allocation4 + $0x8] sm:$0xff] %vm1386_vm13, %v3517_v54  ;;  %4570 = vrot.lane.b32.xlu1 %v4555_v30, %s5794_s12 }
 0x2cc   : > { %3683 = vst.msk [vmem:[#allocation4 + $0x8] sm:$0xff] %vm1568_vm15, %v3661_v25  ;;  %4568 = vrot.lane.b32.xlu0 %v4552_v45, %s5794_s12 }
 0x2cd   : > { %3772 = vst.msk [vmem:[#allocation4 + $0x8] sm:$0xff] %vm1680_vm1, %v3750_v57  ;;  %v3966_v38 = vpop.permute.xlu1 %3965 }
 0x2ce   : > { %v3964_v61 = vpop.permute.xlu0 %3963  ;;  %3988 = vst.msk [vmem:[#allocation4 + $0x8] sm:$0xff] %vm1951_vm3, %v3966_v38 }
 0x2cf   : > { %3987 = vst.msk [vmem:[#allocation4] sm:$0xff] %vm1951_vm3, %v3964_v61 }
 0x2d1   : > { %v4110_v62 = vpop.permute.xlu1 %4109 }
 0x2d2   : > { %v4108_v42 = vpop.permute.xlu0 %4107  ;;  %4132 = vst.msk [vmem:[#allocation4 + $0x8] sm:$0xff] %vm2132_vm11, %v4110_v62 }
 0x2d3   : > { %4131 = vst.msk [vmem:[#allocation4] sm:$0xff] %vm2132_vm11, %v4108_v42  ;;  %v6892_v42 = vld [vmem:[%s6979_s6] ss:$0 sm:$0xff] }
 0x2d5   : > { %v4199_v11 = vpop.permute.xlu1 %4198 }
 0x2d6   : > { %v4197_v2 = vpop.permute.xlu0 %4196  ;;  %4221 = vst.msk [vmem:[#allocation4 + $0x8] sm:$0xff] %vm2243_vm14, %v4199_v11 }
 0x2d7   : > { %4220 = vst.msk [vmem:[#allocation4] sm:$0xff] %vm2243_vm14, %v4197_v2  ;;  %v4749_v2 = vld [vmem:[%s5905_s15 + $0x10] sm:$0xff] }
 0x2d9   : > { %v4415_v32 = vpop.permute.xlu1 %4414 }
 0x2da   : > { %v4413_v9 = vpop.permute.xlu0 %4412  ;;  %4437 = vst.msk [vmem:[#allocation4 + $0x8] sm:$0xff] %vm7015_vm6, %v4415_v32  ;;  %vm7024_vm6 = vmmov %vm7019_vm2  ;;  %v4747_v32 = vld [vmem:[%s5905_s15] sm:$0xff] }
 0x2db   : > { %4436 = vst.msk [vmem:[#allocation4] sm:$0xff] %vm7014_vm9, %v4413_v9  ;;  %vm7023_vm9 = vmmov %vm7016_vm4 }
 0x2dd   : > { %v3519_v47 = vpop.permute.xlu1 %3518 }
 0x2de   : > { %v4557_v1 = vpop.permute.xlu0 %4556  ;;  %3540 = vst.msk [vmem:[#allocation4 + $0x10] sm:$0xff] %vm1386_vm13, %v3519_v47 }
 0x2df   : > { %4580 = vst.msk [vmem:[#allocation4] sm:$0xff] %vm7016_vm4, %v4557_v1  ;;  %vm7025_vm4 = vmmov %vm7019_vm2 }
 0x2e1   : > { %v3521_v16 = vpop.permute.xlu1 %3520 }
 0x2e2   : > { %v4559_v37 = vpop.permute.xlu0 %4558  ;;  %3541 = vst.msk [vmem:[#allocation4 + $0x18] sm:$0xff] %vm1386_vm13, %v3521_v16 }
 0x2e3   : > { %4581 = vst.msk [vmem:[#allocation4 + $0x8] sm:$0xff] %vm7017_vm8, %v4559_v37  ;;  %vm7026_vm8 = vmmov %vm7021_vm0  ;;  %v4750_v37 = vld [vmem:[%s5905_s15 + $0x18] sm:$0xff] }
 0x2e5   : > { %v3665_v0 = vpop.permute.xlu1 %3664 }
 0x2e6   : > { %v3663_v44 = vpop.permute.xlu0 %3662  ;;  %v4588_v39 = vld [vmem:[#allocation4] sm:$0xff]  ;;  %3685 = vst.msk [vmem:[#allocation4 + $0x18] sm:$0xff] %vm1568_vm15, %v3665_v0 }
 0x2e7   : > { %3684 = vst.msk [vmem:[#allocation4 + $0x10] sm:$0xff] %vm1568_vm15, %v3663_v44  ;;  %5408 = vmatprep.mubr.msk.bf16.mxu1 %vm7018_vm7, %v4588_v39  ;;  %vm7027_vm7 = vmmov %vm7021_vm0  ;;  %v4748_v0 = vld [vmem:[%s5905_s15 + $0x8] sm:$0xff] }
 0x2e9   : > { %v3754_v56 = vpop.permute.xlu1 %3753 }
 0x2ea   : > { %v3752_v14 = vpop.permute.xlu0 %3751  ;;  %v4589_v15 = vld [vmem:[#allocation4 + $0x8] sm:$0xff]  ;;  %3774 = vst.msk [vmem:[#allocation4 + $0x18] sm:$0xff] %vm1680_vm1, %v3754_v56 }
 0x2eb   : > { %3773 = vst.msk [vmem:[#allocation4 + $0x10] sm:$0xff] %vm1680_vm1, %v3752_v14  ;;  %5409 = vmatmul.mubr.msk.bf16.vlgmr.msra.gmra.mrb[0].mxu1 %vm7019_vm2, %v4589_v15  ;;  %vm7028_vm2 = vmmov %vm7023_vm9 }
 0x2ed   : > { %v3970_v19 = vpop.permute.xlu1 %3969 }
 0x2ee   : > { %v3968_v18 = vpop.permute.xlu0 %3967  ;;  %3990 = vst.msk [vmem:[#allocation4 + $0x18] sm:$0xff] %vm1951_vm3, %v3970_v19 }
 0x2ef   : > { %3989 = vst.msk [vmem:[#allocation4 + $0x10] sm:$0xff] %vm1951_vm3, %v3968_v18 }
 0x2f1   : > { %v4114_v55 = vpop.permute.xlu1 %4113 }
 0x2f2   : > { %v4112_v21 = vpop.permute.xlu0 %4111  ;;  %4134 = vst.msk [vmem:[#allocation4 + $0x18] sm:$0xff] %vm2132_vm11, %v4114_v55 }
 0x2f3   : > { %4133 = vst.msk [vmem:[#allocation4 + $0x10] sm:$0xff] %vm2132_vm11, %v4112_v21  ;;  %v4753_v21 = vld [vmem:[%s5905_s15 + $0x30] sm:$0xff] }
 0x2f5   : > { %v4203_v63 = vpop.permute.xlu1 %4202 }
 0x2f6   : > { %v4201_v5 = vpop.permute.xlu0 %4200  ;;  %4223 = vst.msk [vmem:[#allocation4 + $0x18] sm:$0xff] %vm2243_vm14, %v4203_v63  ;;  %v4751_v63 = vld [vmem:[%s5905_s15 + $0x20] sm:$0xff] }
 0x2f7   : > { %4222 = vst.msk [vmem:[#allocation4 + $0x10] sm:$0xff] %vm2243_vm14, %v4201_v5 }
 0x2f9   : > { %v4419_v49 = vpop.permute.xlu1 %4418 }
 0x2fa   : > { %v4417_v22 = vpop.permute.xlu0 %4416  ;;  %4439 = vst.msk [vmem:[#allocation4 + $0x18] sm:$0xff] %vm7021_vm0, %v4419_v49  ;;  %vm7030_vm0 = vmmov %vm7025_vm4 }
 0x2fb   : > { %4438 = vst.msk [vmem:[#allocation4 + $0x10] sm:$0xff] %vm7020_vm5, %v4417_v22  ;;  %vm7029_vm5 = vmmov %vm7028_vm2 }
 0x2fd   : > { %v3523_v8 = vpop.permute.xlu1 %3522 }
 0x2fe   : > { %v4561_v52 = vpop.permute.xlu0 %4560  ;;  %3542 = vst.msk [vmem:[#allocation4 + $0x20] sm:$0xff] %vm1386_vm13, %v3523_v8 }
 0x2ff   : > { %4582 = vst.msk [vmem:[#allocation4 + $0x10] sm:$0xff] %vm7022_vm10, %v4561_v52  ;;  %vm7031_vm10 = vmmov %vm7030_vm0  ;;  %v4754_v52 = vld [vmem:[%s5905_s15 + $0x38] sm:$0xff] }
 0x301   : > { %v3525_v24 = vpop.permute.xlu1 %3524 }
 0x302   : > { %v4563_v6 = vpop.permute.xlu0 %4562  ;;  %3543 = vst.msk [vmem:[#allocation4 + $0x28] sm:$0xff] %vm1386_vm13, %v3525_v24 }
 0x303   : > { %4583 = vst.msk [vmem:[#allocation4 + $0x18] sm:$0xff] %vm7023_vm9, %v4563_v6 }
 0x305   : > { %v3669_v27 = vpop.permute.xlu1 %3668 }
 0x306   : > { %v3667_v26 = vpop.permute.xlu0 %3666  ;;  %v4590_v59 = vld [vmem:[#allocation4 + $0x10] sm:$0xff]  ;;  %3687 = vst.msk [vmem:[#allocation4 + $0x28] sm:$0xff] %vm1568_vm15, %v3669_v27 }
 0x307   : > { %3686 = vst.msk [vmem:[#allocation4 + $0x20] sm:$0xff] %vm1568_vm15, %v3667_v26  ;;  %5412 = vmatprep.mubr.msk.bf16.mxu1 %vm7024_vm6, %v4590_v59  ;;  %v4752_v26 = vld [vmem:[%s5905_s15 + $0x28] sm:$0xff] }
 0x309   : > { %v3758_v17 = vpop.permute.xlu1 %3757 }
 0x30a   : > { %v3756_v28 = vpop.permute.xlu0 %3755  ;;  %v4591_v23 = vld [vmem:[#allocation4 + $0x18] sm:$0xff]  ;;  %3776 = vst.msk [vmem:[#allocation4 + $0x28] sm:$0xff] %vm1680_vm1, %v3758_v17 }
 0x30b   : > { %3775 = vst.msk [vmem:[#allocation4 + $0x20] sm:$0xff] %vm1680_vm1, %v3756_v28  ;;  %5413 = vmatmul.mubr.msk.bf16.gmra.mrb[4].mxu1 %vm7025_vm4, %v4591_v23 }
 0x30d   : > { %v3974_v34 = vpop.permute.xlu1 %3973 }
 0x30e   : > { %v3972_v33 = vpop.permute.xlu0 %3971  ;;  %3992 = vst.msk [vmem:[#allocation4 + $0x28] sm:$0xff] %vm1951_vm3, %v3974_v34 }
 0x30f   : > { %3991 = vst.msk [vmem:[#allocation4 + $0x20] sm:$0xff] %vm1951_vm3, %v3972_v33  ;;  %v4757_v33 = vld [vmem:[%s5905_s15 + $0x50] sm:$0xff] }
 0x311   : > { %v4118_v36 = vpop.permute.xlu1 %4117 }
 0x312   : > { %v4116_v35 = vpop.permute.xlu0 %4115  ;;  %4136 = vst.msk [vmem:[#allocation4 + $0x28] sm:$0xff] %vm2132_vm11, %v4118_v36  ;;  %v4755_v36 = vld [vmem:[%s5905_s15 + $0x40] sm:$0xff] }
 0x313   : > { %4135 = vst.msk [vmem:[#allocation4 + $0x20] sm:$0xff] %vm2132_vm11, %v4116_v35 }
 0x315   : > { %v4207_v58 = vpop.permute.xlu1 %4206 }
 0x316   : > { %v4205_v12 = vpop.permute.xlu0 %4204  ;;  %4225 = vst.msk [vmem:[#allocation4 + $0x28] sm:$0xff] %vm2243_vm14, %v4207_v58 }
 0x317   : > { %4224 = vst.msk [vmem:[#allocation4 + $0x20] sm:$0xff] %vm2243_vm14, %v4205_v12 }
 0x319   : > { %v4423_v25 = vpop.permute.xlu1 %4422 }
 0x31a   : > { %v4421_v13 = vpop.permute.xlu0 %4420  ;;  %4441 = vst.msk [vmem:[#allocation4 + $0x28] sm:$0xff] %vm7027_vm7, %v4423_v25 }
 0x31b   : > { %4440 = vst.msk [vmem:[#allocation4 + $0x20] sm:$0xff] %vm7026_vm8, %v4421_v13  ;;  %v4758_v13 = vld [vmem:[%s5905_s15 + $0x58] sm:$0xff] }
 0x31d   : > { %v3527_v40 = vpop.permute.xlu1 %3526 }
 0x31e   : > { %v4565_v51 = vpop.permute.xlu0 %4564  ;;  %3544 = vst.msk [vmem:[#allocation4 + $0x30] sm:$0xff] %vm1386_vm13, %v3527_v40 }
 0x31f   : > { %4584 = vst.msk [vmem:[#allocation4 + $0x20] sm:$0xff] %vm7028_vm2, %v4565_v51 }
 0x321   : > { %v3529_v41 = vpop.permute.xlu1 %3528 }
 0x322   : > { %v4567_v7 = vpop.permute.xlu0 %4566  ;;  %3545 = vst.msk [vmem:[#allocation4 + $0x38] sm:$0xff] %vm1386_vm13, %v3529_v41  ;;  %vm7032_vm13 = vmmov %vm7027_vm7 }
 0x323   : > { %4585 = vst.msk [vmem:[#allocation4 + $0x28] sm:$0xff] %vm7029_vm5, %v4567_v7  ;;  %v4756_v7 = vld [vmem:[%s5905_s15 + $0x48] sm:$0xff] }
 0x325   : > { %v3673_v46 = vpop.permute.xlu1 %3672 }
 0x326   : > { %v3671_v10 = vpop.permute.xlu0 %3670  ;;  %v4592_v43 = vld [vmem:[#allocation4 + $0x20] sm:$0xff]  ;;  %3689 = vst.msk [vmem:[#allocation4 + $0x38] sm:$0xff] %vm1568_vm15, %v3673_v46 }
 0x327   : > { %3688 = vst.msk [vmem:[#allocation4 + $0x30] sm:$0xff] %vm1568_vm15, %v3671_v10  ;;  %5416 = vmatprep.mubr.msk.bf16.mxu1 %vm7030_vm0, %v4592_v43  ;;  %vm7033_vm15 = vmmov %vm7027_vm7 }
 0x329   : > { %v3762_v48 = vpop.permute.xlu1 %3761 }
 0x32a   : > { %v3760_v29 = vpop.permute.xlu0 %3759  ;;  %v4593_v20 = vld [vmem:[#allocation4 + $0x28] sm:$0xff]  ;;  %3778 = vst.msk [vmem:[#allocation4 + $0x38] sm:$0xff] %vm1680_vm1, %v3762_v48 }
 0x32b   : > { %3777 = vst.msk [vmem:[#allocation4 + $0x30] sm:$0xff] %vm1680_vm1, %v3760_v29  ;;  %5417 = vmatmul.mubr.msk.bf16.gmra.mrb[8].mxu1 %vm7031_vm10, %v4593_v20  ;;  %vm7034_vm1 = vmmov %vm7028_vm2  ;;  %v4761_v20 = vld [vmem:[%s5905_s15 + $0x70] sm:$0xff] }
 0x32d   : > { %v3978_v54 = vpop.permute.xlu1 %3977 }
 0x32e   : > { %v3976_v50 = vpop.permute.xlu0 %3975  ;;  %3994 = vst.msk [vmem:[#allocation4 + $0x38] sm:$0xff] %vm1951_vm3, %v3978_v54  ;;  %v4759_v54 = vld [vmem:[%s5905_s15 + $0x60] sm:$0xff] }
 0x32f   : > { %3993 = vst.msk [vmem:[#allocation4 + $0x30] sm:$0xff] %vm1951_vm3, %v3976_v50  ;;  %vm7035_vm3 = vmmov %vm7034_vm1 }
 0x331   : > { %v4122_v45 = vpop.permute.xlu1 %4121 }
 0x332   : > { %v4120_v57 = vpop.permute.xlu0 %4119  ;;  %4138 = vst.msk [vmem:[#allocation4 + $0x38] sm:$0xff] %vm2132_vm11, %v4122_v45 }
 0x333   : > { %4137 = vst.msk [vmem:[#allocation4 + $0x30] sm:$0xff] %vm2132_vm11, %v4120_v57  ;;  %vm7036_vm11 = vmmov %vm7030_vm0 }
 0x335   : > { %v4211_v31 = vpop.permute.xlu1 %4210 }
 0x336   : > { %v4209_v60 = vpop.permute.xlu0 %4208  ;;  %4227 = vst.msk [vmem:[#allocation4 + $0x38] sm:$0xff] %vm2243_vm14, %v4211_v31 }
 0x337   : > { %4226 = vst.msk [vmem:[#allocation4 + $0x30] sm:$0xff] %vm2243_vm14, %v4209_v60  ;;  %vm7037_vm14 = vmmov %vm7030_vm0  ;;  %v4762_v60 = vld [vmem:[%s5905_s15 + $0x78] sm:$0xff] }
 0x339   : > { %v4427_v3 = vpop.permute.xlu1 %4426 }
 0x33a   : > { %v4425_v30 = vpop.permute.xlu0 %4424  ;;  %4443 = vst.msk [vmem:[#allocation4 + $0x38] sm:$0xff] %vm7033_vm15, %v4427_v3 }
 0x33b   : > { %4442 = vst.msk [vmem:[#allocation4 + $0x30] sm:$0xff] %vm7032_vm13, %v4425_v30 }
 0x33d   : > { %v4571_v53 = vpop.permute.xlu1 %4570 }
 0x33e   : > { %v4569_v4 = vpop.permute.xlu0 %4568  ;;  %4587 = vst.msk [vmem:[#allocation4 + $0x38] sm:$0xff] %vm7035_vm3, %v4571_v53 }
 0x33f   : > { %4586 = vst.msk [vmem:[#allocation4 + $0x30] sm:$0xff] %vm7034_vm1, %v4569_v4  ;;  %v4760_v4 = vld [vmem:[%s5905_s15 + $0x68] sm:$0xff] }
 0x345   : > { %v4595_v38 = vld [vmem:[#allocation4 + $0x38] sm:$0xff] }
 0x346   : > { %v4594_v61 = vld [vmem:[#allocation4 + $0x30] sm:$0xff] }
 0x347   : > { %5420 = vmatprep.mubr.msk.bf16.mxu1 %vm7036_vm11, %v4594_v61 }
 0x348   : > { %5421 = vmatmul.mubr.msk.bf16.gmra.mrb[12].mxu1 %vm7037_vm14, %v4595_v38 }
 0x3be   : > { %v5410_v62 = vpop.f32.mrb[0].mxu1 }
 0x3bf   : > { %v4693_v11 = vadd.f32 %v5410_v62, %v6892_v42  ;;  %v4684_v9 = vpop.f32.mrb[1].mxu1 }
 0x3c0   : > { %v4685_v1 = vadd.f32 %v6892_v42, %v4684_v9  ;;  %v5411_v47 = vpop.f32.mrb[2].mxu1 }
 0x3c1   : > { %v4765_v16 = vadd.f32 %v4749_v2, %v4693_v11  ;;  %v4696_v44 = vadd.f32 %v5411_v47, %v6892_v42  ;;  %v4687_v39 = vpop.f32.mrb[3].mxu1 }
 0x3c2   : > { %v4763_v14 = vadd.f32 %v4747_v32, %v4685_v1  ;;  %v4688_v15 = vadd.f32 %v6892_v42, %v4687_v39 }
 0x3c3   : > { %4781 = vst.msk [vmem:[%s5910_s18 + $0x10] sm:$0xff] %vm1114_vm12, %v4765_v16  ;;  %v4766_v56 = vadd.f32 %v4750_v37, %v4696_v44 }
 0x3c4   : > { %4779 = vst.msk [vmem:[%s5910_s18] sm:$0xff] %vm1114_vm12, %v4763_v14  ;;  %v4764_v18 = vadd.f32 %v4748_v0, %v4688_v15 }
 0x3c5   : > { %4782 = vst.msk [vmem:[%s5910_s18 + $0x18] sm:$0xff] %vm1114_vm12, %v4766_v56 }
 0x3c6   : > { %4780 = vst.msk [vmem:[%s5910_s18 + $0x8] sm:$0xff] %vm1114_vm12, %v4764_v18 }
 0x3de   : > { %v5414_v19 = vpop.f32.mrb[4].mxu1 }
 0x3df   : > { %v4709_v55 = vadd.f32 %v5414_v19, %v6892_v42  ;;  %v4700_v5 = vpop.f32.mrb[5].mxu1 }
 0x3e0   : > { %v4701_v22 = vadd.f32 %v6892_v42, %v4700_v5  ;;  %v5415_v49 = vpop.f32.mrb[6].mxu1 }
 0x3e1   : > { %v4769_v8 = vadd.f32 %v4753_v21, %v4709_v55  ;;  %v4712_v6 = vadd.f32 %v5415_v49, %v6892_v42  ;;  %v4703_v24 = vpop.f32.mrb[7].mxu1 }
 0x3e2   : > { %v4767_v59 = vadd.f32 %v4751_v63, %v4701_v22  ;;  %v4704_v27 = vadd.f32 %v6892_v42, %v4703_v24 }
 0x3e3   : > { %4785 = vst.msk [vmem:[%s5910_s18 + $0x30] sm:$0xff] %vm1114_vm12, %v4769_v8  ;;  %v4770_v28 = vadd.f32 %v4754_v52, %v4712_v6 }
 0x3e4   : > { %4783 = vst.msk [vmem:[%s5910_s18 + $0x20] sm:$0xff] %vm1114_vm12, %v4767_v59  ;;  %v4768_v23 = vadd.f32 %v4752_v26, %v4704_v27 }
 0x3e5   : > { %4786 = vst.msk [vmem:[%s5910_s18 + $0x38] sm:$0xff] %vm1114_vm12, %v4770_v28 }
 0x3e6   : > { %4784 = vst.msk [vmem:[%s5910_s18 + $0x28] sm:$0xff] %vm1114_vm12, %v4768_v23 }
 0x3fe   : > { %v5418_v17 = vpop.f32.mrb[8].mxu1 }
 0x3ff   : > { %v4725_v34 = vadd.f32 %v5418_v17, %v6892_v42  ;;  %v4716_v35 = vpop.f32.mrb[9].mxu1 }
 0x400   : > { %v4717_v12 = vadd.f32 %v6892_v42, %v4716_v35  ;;  %v5419_v58 = vpop.f32.mrb[10].mxu1 }
 0x401   : > { %v4773_v25 = vadd.f32 %v4757_v33, %v4725_v34  ;;  %v4728_v51 = vadd.f32 %v5419_v58, %v6892_v42  ;;  %v4719_v40 = vpop.f32.mrb[11].mxu1 }
 0x402   : > { %v4771_v41 = vadd.f32 %v4755_v36, %v4717_v12  ;;  %v4720_v10 = vadd.f32 %v6892_v42, %v4719_v40 }
 0x403   : > { %4789 = vst.msk [vmem:[%s5910_s18 + $0x50] sm:$0xff] %vm1114_vm12, %v4773_v25  ;;  %v4774_v43 = vadd.f32 %v4758_v13, %v4728_v51 }
 0x404   : > { %4787 = vst.msk [vmem:[%s5910_s18 + $0x40] sm:$0xff] %vm1114_vm12, %v4771_v41  ;;  %v4772_v46 = vadd.f32 %v4756_v7, %v4720_v10 }
 0x405   : > { %4790 = vst.msk [vmem:[%s5910_s18 + $0x58] sm:$0xff] %vm1114_vm12, %v4774_v43 }
 0x406   : > { %4788 = vst.msk [vmem:[%s5910_s18 + $0x48] sm:$0xff] %vm1114_vm12, %v4772_v46 }
 0x41b   : > { %v5422_v29 = vpop.f32.mrb[12].mxu1 }
 0x41c   : > { %v4741_v48 = vadd.f32 %v5422_v29, %v6892_v42  ;;  %v4732_v50 = vpop.f32.mrb[13].mxu1 }
 0x41d   : > { %v4733_v57 = vadd.f32 %v6892_v42, %v4732_v50  ;;  %v5423_v45 = vpop.f32.mrb[14].mxu1 }
 0x41e   : > { %v4777_v31 = vadd.f32 %v4761_v20, %v4741_v48  ;;  %v4744_v30 = vadd.f32 %v5423_v45, %v6892_v42  ;;  %v4735_v3 = vpop.f32.mrb[15].mxu1 }
 0x41f   : > { %v4775_v53 = vadd.f32 %v4759_v54, %v4733_v57  ;;  %v4736_v61 = vadd.f32 %v6892_v42, %v4735_v3 }
 0x420   : > { %4793 = vst.msk [vmem:[%s5910_s18 + $0x70] sm:$0xff] %vm1114_vm12, %v4777_v31  ;;  %v4778_v38 = vadd.f32 %v4762_v60, %v4744_v30 }
 0x421   : > { %4791 = vst.msk [vmem:[%s5910_s18 + $0x60] sm:$0xff] %vm1114_vm12, %v4775_v53  ;;  %v4776_v62 = vadd.f32 %v4760_v4, %v4736_v61 }
 0x422   : > { %4794 = vst.msk [vmem:[%s5910_s18 + $0x78] sm:$0xff] %vm1114_vm12, %v4778_v38 }
 0x423   : > { %4792 = vst.msk [vmem:[%s5910_s18 + $0x68] sm:$0xff] %vm1114_vm12, %v4776_v62 }
 0x424 PF: > { %s17_s28 = sadd.s32 1, %s5790_s28   ;;  %s7038_s24 = smov %s5782_s26 }
 0x425   : > { %p14_p1 = scmp.ge.s32.totalorder %s17_s28, 6   ;;  %s7039_s25 = smov %s5786_s27 }
 0x426   : > { %s7040_s26 = smov %s7043_s29  ;;  %s7041_s27 = smov %s7047_s30 }
 0x427   :  { %16 = sbr.rel (!%p14_p1) target bundleno = 3 (0x3), region = 98 }

</bundles_post_ra>
